<compile_context>
chip_gen: v7x
topology: tpu7x:2x2x1
jax: 0.10.0
libtpu: 0.0.40
codegen_flags: <defaults>
</compile_context>

<pallas_src>
import math

import jax
import jax.numpy as jnp
from jax.experimental import pallas as pl
from jax.experimental.pallas import tpu as pltpu


# ---------------------------------------------------------------------------
# Fused RU kernel
# ---------------------------------------------------------------------------

def _make_ru_kernel(H, W, Cin, Cout, has_conv1, out_dtype):
    HW = H * W
    Wp, Hp = W + 2, H + 2
    L = Hp * Wp            # flattened padded-image length
    G = Wp + 1             # guard so every tap shift stays in-bounds
    # Tap offsets in the flattened padded domain, dh-major / dw-minor so they
    # line up with the K ordering of the repacked (Cout, 9*Cout) weights.
    offsets = [(dh - 1) * Wp + (dw - 1) for dh in range(3) for dw in range(3)]

    def kernel(*refs):
        if has_conv1:
            (x_ref, w1_ref, b1_ref, w2_ref, b2_ref, w3_ref, b3_ref,
             o_ref, flat_ref, col_ref, y_ref, work_ref) = refs
        else:
            (x_ref, w2_ref, b2_ref, w3_ref, b3_ref,
             o_ref, flat_ref, col_ref, y_ref, work_ref) = refs

        # Guards + 1-pixel halo live in flat_ref; only its interior is ever
        # rewritten below, so the halo stays zero for both 3x3 convs.
        flat_ref[...] = jnp.zeros_like(flat_ref)

        # ---- stage 1: 1x1 channel-mixing conv (lane-dense (Cin,HW) matmul) --
        x = x_ref[0].astype(jnp.float32)                       # (Cin, H*W)
        if has_conv1:
            y_ref[...] = (jnp.dot(w1_ref[...], x,
                                  preferred_element_type=jnp.float32)
                          + b1_ref[...])                       # (Cout, H*W)
        else:
            y_ref[...] = x                                     # (Cout, H*W)

        # Commit the residual y into the interior of the padded buffer.
        for i in range(H):
            s = (i + 1) * Wp + 1
            flat_ref[:, G + s:G + s + W] = y_ref[:, i * W:(i + 1) * W]

        def conv3x3(w_ref, b_ref):
            # im2col: 9 lane-shifted windows of the padded activation, then a
            # single MXU matmul with K = 9*Cout and lane-dense N = L.
            for t, off in enumerate(offsets):
                col_ref[t * Cout:(t + 1) * Cout, :] = (
                    flat_ref[:, G + off:G + off + L])
            return (jnp.dot(w_ref[...], col_ref[...],
                            preferred_element_type=jnp.float32)
                    + b_ref[...])                              # (Cout, L)

        # ---- stage 2: 3x3 conv + ReLU (stays in VMEM) -----------------------
        work_ref[...] = jnp.maximum(conv3x3(w2_ref, b2_ref), 0.0)
        # Write its interior back into the padded buffer (halo stays zero; the
        # garbage border positions of the matmul output are never committed).
        for i in range(H):
            s = (i + 1) * Wp + 1
            flat_ref[:, G + s:G + s + W] = work_ref[:, s:s + W]

        # ---- stage 3: 3x3 conv + residual, write the NCHW output ------------
        work_ref[...] = conv3x3(w3_ref, b3_ref)
        for i in range(H):
            s = (i + 1) * Wp + 1
            o_ref[0, :, i, :] = (work_ref[:, s:s + W]
                                 + y_ref[:, i * W:(i + 1) * W]
                                 ).astype(out_dtype)

    return kernel


# ---------------------------------------------------------------------------
# Wrapper: single fused pallas_call, NCHW in / NCHW out
# ---------------------------------------------------------------------------

def ru_forward(params, x_nchw, in_channel, out_channel):
    N, Cin, H, W = x_nchw.shape
    Cout = out_channel
    HW = H * W
    has_conv1 = in_channel != out_channel

    # Free reshape (merges trailing contiguous dims); no transpose, no copy.
    x = x_nchw.reshape(N, Cin, HW)

    # Repack 3x3 weights HWIO -> (Cout, 9*Cout) so each conv becomes one
    # im2col matmul inside the kernel (tiny tensors, negligible cost).
    w2, b2 = params["conv2"]
    w3, b3 = params["conv3"]
    w2m = jnp.transpose(w2, (3, 0, 1, 2)).reshape(Cout, 9 * Cout)
    w3m = jnp.transpose(w3, (3, 0, 1, 2)).reshape(Cout, 9 * Cout)

    inputs = [x]
    in_specs = [pl.BlockSpec((1, Cin, HW), lambda n: (n, 0, 0))]
    if has_conv1:
        w1, b1 = params["conv1"]                       # (Cin, Cout), (Cout,)
        inputs += [jnp.transpose(w1), b1.reshape(Cout, 1)]
        in_specs += [pl.BlockSpec((Cout, Cin), lambda n: (0, 0)),
                     pl.BlockSpec((Cout, 1), lambda n: (0, 0))]
    inputs += [w2m, b2.reshape(Cout, 1), w3m, b3.reshape(Cout, 1)]
    in_specs += [pl.BlockSpec((Cout, 9 * Cout), lambda n: (0, 0)),
                 pl.BlockSpec((Cout, 1), lambda n: (0, 0)),
                 pl.BlockSpec((Cout, 9 * Cout), lambda n: (0, 0)),
                 pl.BlockSpec((Cout, 1), lambda n: (0, 0))]

    Wp, Hp = W + 2, H + 2
    L = Hp * Wp
    Lp = L + 2 * (Wp + 1)

    kernel = _make_ru_kernel(H, W, Cin, Cout, has_conv1, x_nchw.dtype)

    return pl.pallas_call(
        kernel,
        out_shape=jax.ShapeDtypeStruct((N, Cout, H, W), x_nchw.dtype),
        grid=(N,),
        in_specs=in_specs,
        out_specs=pl.BlockSpec((1, Cout, H, W), lambda n: (n, 0, 0, 0)),
        scratch_shapes=[
            pltpu.VMEM((Cout, Lp), jnp.float32),        # padded act + guards
            pltpu.VMEM((9 * Cout, L), jnp.float32),     # im2col matrix
            pltpu.VMEM((Cout, HW), jnp.float32),        # residual (conv1 out)
            pltpu.VMEM((Cout, L), jnp.float32),         # stage workspace
        ],
        compiler_params=pltpu.CompilerParams(
            dimension_semantics=("parallel",)),
    )(*inputs)


# ---------------------------------------------------------------------------
# Parameter init (deterministic, mimics PyTorch Conv2d default uniform init)
# ---------------------------------------------------------------------------

def init_ru_params(key, in_channel, out_channel):
    def conv_init(k, kh, kw, cin, cout):
        wk, bk = jax.random.split(k)
        fan_in = cin * kh * kw
        bound = 1.0 / math.sqrt(fan_in)
        # weights stored HWIO: (kh, kw, cin, cout)
        w = jax.random.uniform(wk, (kh, kw, cin, cout), jnp.float32,
                               minval=-bound, maxval=bound)
        b = jax.random.uniform(bk, (cout,), jnp.float32,
                               minval=-bound, maxval=bound)
        return w, b

    k1, k2, k3 = jax.random.split(key, 3)
    params = {}
    if in_channel != out_channel:
        w1, b1 = conv_init(k1, 1, 1, in_channel, out_channel)
        params["conv1"] = (w1[0, 0], b1)   # stored as (Cin, Cout) matmul weight
    params["conv2"] = conv_init(k2, 3, 3, out_channel, out_channel)
    params["conv3"] = conv_init(k3, 3, 3, out_channel, out_channel)
    return params


# ---------------------------------------------------------------------------
# Pure-JAX reference (for in-script correctness check)
# ---------------------------------------------------------------------------

def ru_reference(params, x, in_channel, out_channel):
    dn = ("NCHW", "HWIO", "NCHW")

    def conv(v, w, b, pad):
        y = jax.lax.conv_general_dilated(
            v, w, window_strides=(1, 1), padding=pad,
            dimension_numbers=dn, precision=jax.lax.Precision.HIGHEST)
        return y + b.reshape(1, -1, 1, 1)

    if in_channel != out_channel:
        w1, b1 = params["conv1"]
        x = conv(x, w1.reshape(1, 1, in_channel, out_channel), b1, "VALID")
    w2, b2 = params["conv2"]
    w3, b3 = params["conv3"]
    r = jax.nn.relu(conv(x, w2, b2, "SAME"))
    return conv(r, w3, b3, "SAME") + x


if __name__ == "__main__":
    in_channel, out_channel = 4, 8
    N, H, W = 2, 16, 16

    key = jax.random.PRNGKey(0)
    pkey, xkey = jax.random.split(key)
    params = init_ru_params(pkey, in_channel, out_channel)
    x = jax.random.normal(xkey, (N, in_channel, H, W), jnp.float32)

    fwd = jax.jit(lambda p, v: ru_forward(p, v, in_channel, out_channel))
    out = fwd(params, x)
    jax.block_until_ready(out)
    assert out.shape == (N, out_channel, H, W), out.shape

    ref = ru_reference(params, x, in_channel, out_channel)
    err = float(jnp.max(jnp.abs(out - ref)))
    assert err < 1e-2, f"max abs error vs reference: {err}"
    print("KERNEL_OK")
</pallas_src>

<mosaic_0001>
module attributes {stable_mosaic.version = 11 : i64} {
  func.func @kernel(%arg0: i32, %arg1: memref<1x4x256xf32, #tpu.memory_space<vmem>>, %arg2: memref<8x4xf32, #tpu.memory_space<vmem>>, %arg3: memref<8x1xf32, #tpu.memory_space<vmem>>, %arg4: memref<8x72xf32, #tpu.memory_space<vmem>>, %arg5: memref<8x1xf32, #tpu.memory_space<vmem>>, %arg6: memref<8x72xf32, #tpu.memory_space<vmem>>, %arg7: memref<8x1xf32, #tpu.memory_space<vmem>>, %arg8: memref<1x8x16x16xf32, #tpu.memory_space<vmem>>, %arg9: memref<8x362xf32, #tpu.memory_space<vmem>>, %arg10: memref<72x324xf32, #tpu.memory_space<vmem>>, %arg11: memref<8x256xf32, #tpu.memory_space<vmem>>, %arg12: memref<8x324xf32, #tpu.memory_space<vmem>>) attributes {dimension_semantics = [#tpu.dimension_semantics<parallel>], iteration_bounds = array<i64: 2>, scalar_prefetch = 0 : i64, scratch_operands = 4 : i64, tpu.core_type = #tpu.core_type<tc>, window_params = [{transform_indices = @transform_0, window_bounds = array<i64: 1, 4, 256>}, {pipeline_mode = #tpu.pipeline_mode<synchronous>, transform_indices = @transform_1, window_bounds = array<i64: 8, 4>}, {pipeline_mode = #tpu.pipeline_mode<synchronous>, transform_indices = @transform_2, window_bounds = array<i64: 8, 1>}, {pipeline_mode = #tpu.pipeline_mode<synchronous>, transform_indices = @transform_3, window_bounds = array<i64: 8, 72>}, {pipeline_mode = #tpu.pipeline_mode<synchronous>, transform_indices = @transform_4, window_bounds = array<i64: 8, 1>}, {pipeline_mode = #tpu.pipeline_mode<synchronous>, transform_indices = @transform_5, window_bounds = array<i64: 8, 72>}, {pipeline_mode = #tpu.pipeline_mode<synchronous>, transform_indices = @transform_6, window_bounds = array<i64: 8, 1>}, {transform_indices = @transform_7, window_bounds = array<i64: 1, 8, 16, 16>}]} {
    %cst = arith.constant 0.000000e+00 : f32
    %0 = vector.broadcast %cst : f32 to vector<8x362xf32>
    %c0 = arith.constant 0 : index
    %c0_0 = arith.constant 0 : index
    %1 = vector.load %arg9[%c0, %c0_0] : memref<8x362xf32, #tpu.memory_space<vmem>>, vector<8x362xf32>
    tpu.vector_store %arg9[%c0, %c0_0], %0 {strides = array<i32>} : memref<8x362xf32, #tpu.memory_space<vmem>>, vector<8x362xf32>,
    %c0_1 = arith.constant 0 : index
    %c0_2 = arith.constant 0 : index
    %c0_3 = arith.constant 0 : index
    %2 = vector.load %arg1[%c0_1, %c0_2, %c0_3] : memref<1x4x256xf32, #tpu.memory_space<vmem>>, vector<1x4x256xf32>
    %3 = vector.shape_cast %2 : vector<1x4x256xf32> to vector<4x256xf32>
    %c0_4 = arith.constant 0 : index
    %c0_5 = arith.constant 0 : index
    %4 = vector.load %arg2[%c0_4, %c0_5] : memref<8x4xf32, #tpu.memory_space<vmem>>, vector<8x4xf32>
    %cst_6 = arith.constant dense<0.000000e+00> : vector<8x256xf32>
    %5 = tpu.matmul %4, %3, %cst_6 {dimension_numbers = #tpu.dot_dimension_numbers<[1], [0], [0], [1], [0, 0, 1, 1], [], []>} : vector<8x4xf32>, vector<4x256xf32>, vector<8x256xf32> -> vector<8x256xf32>
    %c0_7 = arith.constant 0 : index
    %c0_8 = arith.constant 0 : index
    %6 = vector.load %arg3[%c0_7, %c0_8] : memref<8x1xf32, #tpu.memory_space<vmem>>, vector<8x1xf32>
    %7 = vector.broadcast %6 : vector<8x1xf32> to vector<8x256xf32>
    %8 = arith.addf %5, %7 : vector<8x256xf32>
    %c0_9 = arith.constant 0 : index
    %c0_10 = arith.constant 0 : index
    %9 = vector.load %arg11[%c0_9, %c0_10] : memref<8x256xf32, #tpu.memory_space<vmem>>, vector<8x256xf32>
    tpu.vector_store %arg11[%c0_9, %c0_10], %8 {strides = array<i32>} : memref<8x256xf32, #tpu.memory_space<vmem>>, vector<8x256xf32>,
    %c0_11 = arith.constant 0 : index
    %c0_12 = arith.constant 0 : index
    %10 = vector.load %arg11[%c0_11, %c0_12] : memref<8x256xf32, #tpu.memory_space<vmem>>, vector<8x16xf32>
    %c0_13 = arith.constant 0 : index
    %c38 = arith.constant 38 : index
    %11 = vector.load %arg9[%c0_13, %c38] : memref<8x362xf32, #tpu.memory_space<vmem>>, vector<8x16xf32>
    tpu.vector_store %arg9[%c0_13, %c38], %10 {strides = array<i32>} : memref<8x362xf32, #tpu.memory_space<vmem>>, vector<8x16xf32>,
    %c0_14 = arith.constant 0 : index
    %c16 = arith.constant 16 : index
    %12 = vector.load %arg11[%c0_14, %c16] : memref<8x256xf32, #tpu.memory_space<vmem>>, vector<8x16xf32>
    %c0_15 = arith.constant 0 : index
    %c56 = arith.constant 56 : index
    %13 = vector.load %arg9[%c0_15, %c56] : memref<8x362xf32, #tpu.memory_space<vmem>>, vector<8x16xf32>
    tpu.vector_store %arg9[%c0_15, %c56], %12 {strides = array<i32>} : memref<8x362xf32, #tpu.memory_space<vmem>>, vector<8x16xf32>,
    %c0_16 = arith.constant 0 : index
    %c32 = arith.constant 32 : index
    %14 = vector.load %arg11[%c0_16, %c32] : memref<8x256xf32, #tpu.memory_space<vmem>>, vector<8x16xf32>
    %c0_17 = arith.constant 0 : index
    %c74 = arith.constant 74 : index
    %15 = vector.load %arg9[%c0_17, %c74] : memref<8x362xf32, #tpu.memory_space<vmem>>, vector<8x16xf32>
    tpu.vector_store %arg9[%c0_17, %c74], %14 {strides = array<i32>} : memref<8x362xf32, #tpu.memory_space<vmem>>, vector<8x16xf32>,
    %c0_18 = arith.constant 0 : index
    %c48 = arith.constant 48 : index
    %16 = vector.load %arg11[%c0_18, %c48] : memref<8x256xf32, #tpu.memory_space<vmem>>, vector<8x16xf32>
    %c0_19 = arith.constant 0 : index
    %c92 = arith.constant 92 : index
    %17 = vector.load %arg9[%c0_19, %c92] : memref<8x362xf32, #tpu.memory_space<vmem>>, vector<8x16xf32>
    tpu.vector_store %arg9[%c0_19, %c92], %16 {strides = array<i32>} : memref<8x362xf32, #tpu.memory_space<vmem>>, vector<8x16xf32>,
    %c0_20 = arith.constant 0 : index
    %c64 = arith.constant 64 : index
    %18 = vector.load %arg11[%c0_20, %c64] : memref<8x256xf32, #tpu.memory_space<vmem>>, vector<8x16xf32>
    %c0_21 = arith.constant 0 : index
    %c110 = arith.constant 110 : index
    %19 = vector.load %arg9[%c0_21, %c110] : memref<8x362xf32, #tpu.memory_space<vmem>>, vector<8x16xf32>
    tpu.vector_store %arg9[%c0_21, %c110], %18 {strides = array<i32>} : memref<8x362xf32, #tpu.memory_space<vmem>>, vector<8x16xf32>,
    %c0_22 = arith.constant 0 : index
    %c80 = arith.constant 80 : index
    %20 = vector.load %arg11[%c0_22, %c80] : memref<8x256xf32, #tpu.memory_space<vmem>>, vector<8x16xf32>
    %c0_23 = arith.constant 0 : index
    %c128 = arith.constant 128 : index
    %21 = vector.load %arg9[%c0_23, %c128] : memref<8x362xf32, #tpu.memory_space<vmem>>, vector<8x16xf32>
    tpu.vector_store %arg9[%c0_23, %c128], %20 {strides = array<i32>} : memref<8x362xf32, #tpu.memory_space<vmem>>, vector<8x16xf32>,
    %c0_24 = arith.constant 0 : index
    %c96 = arith.constant 96 : index
    %22 = vector.load %arg11[%c0_24, %c96] : memref<8x256xf32, #tpu.memory_space<vmem>>, vector<8x16xf32>
    %c0_25 = arith.constant 0 : index
    %c146 = arith.constant 146 : index
    %23 = vector.load %arg9[%c0_25, %c146] : memref<8x362xf32, #tpu.memory_space<vmem>>, vector<8x16xf32>
    tpu.vector_store %arg9[%c0_25, %c146], %22 {strides = array<i32>} : memref<8x362xf32, #tpu.memory_space<vmem>>, vector<8x16xf32>,
    %c0_26 = arith.constant 0 : index
    %c112 = arith.constant 112 : index
    %24 = vector.load %arg11[%c0_26, %c112] : memref<8x256xf32, #tpu.memory_space<vmem>>, vector<8x16xf32>
    %c0_27 = arith.constant 0 : index
    %c164 = arith.constant 164 : index
    %25 = vector.load %arg9[%c0_27, %c164] : memref<8x362xf32, #tpu.memory_space<vmem>>, vector<8x16xf32>
    tpu.vector_store %arg9[%c0_27, %c164], %24 {strides = array<i32>} : memref<8x362xf32, #tpu.memory_space<vmem>>, vector<8x16xf32>,
    %c0_28 = arith.constant 0 : index
    %c128_29 = arith.constant 128 : index
    %26 = vector.load %arg11[%c0_28, %c128_29] : memref<8x256xf32, #tpu.memory_space<vmem>>, vector<8x16xf32>
    %c0_30 = arith.constant 0 : index
    %c182 = arith.constant 182 : index
    %27 = vector.load %arg9[%c0_30, %c182] : memref<8x362xf32, #tpu.memory_space<vmem>>, vector<8x16xf32>
    tpu.vector_store %arg9[%c0_30, %c182], %26 {strides = array<i32>} : memref<8x362xf32, #tpu.memory_space<vmem>>, vector<8x16xf32>,
    %c0_31 = arith.constant 0 : index
    %c144 = arith.constant 144 : index
    %28 = vector.load %arg11[%c0_31, %c144] : memref<8x256xf32, #tpu.memory_space<vmem>>, vector<8x16xf32>
    %c0_32 = arith.constant 0 : index
    %c200 = arith.constant 200 : index
    %29 = vector.load %arg9[%c0_32, %c200] : memref<8x362xf32, #tpu.memory_space<vmem>>, vector<8x16xf32>
    tpu.vector_store %arg9[%c0_32, %c200], %28 {strides = array<i32>} : memref<8x362xf32, #tpu.memory_space<vmem>>, vector<8x16xf32>,
    %c0_33 = arith.constant 0 : index
    %c160 = arith.constant 160 : index
    %30 = vector.load %arg11[%c0_33, %c160] : memref<8x256xf32, #tpu.memory_space<vmem>>, vector<8x16xf32>
    %c0_34 = arith.constant 0 : index
    %c218 = arith.constant 218 : index
    %31 = vector.load %arg9[%c0_34, %c218] : memref<8x362xf32, #tpu.memory_space<vmem>>, vector<8x16xf32>
    tpu.vector_store %arg9[%c0_34, %c218], %30 {strides = array<i32>} : memref<8x362xf32, #tpu.memory_space<vmem>>, vector<8x16xf32>,
    %c0_35 = arith.constant 0 : index
    %c176 = arith.constant 176 : index
    %32 = vector.load %arg11[%c0_35, %c176] : memref<8x256xf32, #tpu.memory_space<vmem>>, vector<8x16xf32>
    %c0_36 = arith.constant 0 : index
    %c236 = arith.constant 236 : index
    %33 = vector.load %arg9[%c0_36, %c236] : memref<8x362xf32, #tpu.memory_space<vmem>>, vector<8x16xf32>
    tpu.vector_store %arg9[%c0_36, %c236], %32 {strides = array<i32>} : memref<8x362xf32, #tpu.memory_space<vmem>>, vector<8x16xf32>,
    %c0_37 = arith.constant 0 : index
    %c192 = arith.constant 192 : index
    %34 = vector.load %arg11[%c0_37, %c192] : memref<8x256xf32, #tpu.memory_space<vmem>>, vector<8x16xf32>
    %c0_38 = arith.constant 0 : index
    %c254 = arith.constant 254 : index
    %35 = vector.load %arg9[%c0_38, %c254] : memref<8x362xf32, #tpu.memory_space<vmem>>, vector<8x16xf32>
    tpu.vector_store %arg9[%c0_38, %c254], %34 {strides = array<i32>} : memref<8x362xf32, #tpu.memory_space<vmem>>, vector<8x16xf32>,
    %c0_39 = arith.constant 0 : index
    %c208 = arith.constant 208 : index
    %36 = vector.load %arg11[%c0_39, %c208] : memref<8x256xf32, #tpu.memory_space<vmem>>, vector<8x16xf32>
    %c0_40 = arith.constant 0 : index
    %c272 = arith.constant 272 : index
    %37 = vector.load %arg9[%c0_40, %c272] : memref<8x362xf32, #tpu.memory_space<vmem>>, vector<8x16xf32>
    tpu.vector_store %arg9[%c0_40, %c272], %36 {strides = array<i32>} : memref<8x362xf32, #tpu.memory_space<vmem>>, vector<8x16xf32>,
    %c0_41 = arith.constant 0 : index
    %c224 = arith.constant 224 : index
    %38 = vector.load %arg11[%c0_41, %c224] : memref<8x256xf32, #tpu.memory_space<vmem>>, vector<8x16xf32>
    %c0_42 = arith.constant 0 : index
    %c290 = arith.constant 290 : index
    %39 = vector.load %arg9[%c0_42, %c290] : memref<8x362xf32, #tpu.memory_space<vmem>>, vector<8x16xf32>
    tpu.vector_store %arg9[%c0_42, %c290], %38 {strides = array<i32>} : memref<8x362xf32, #tpu.memory_space<vmem>>, vector<8x16xf32>,
    %c0_43 = arith.constant 0 : index
    %c240 = arith.constant 240 : index
    %40 = vector.load %arg11[%c0_43, %c240] : memref<8x256xf32, #tpu.memory_space<vmem>>, vector<8x16xf32>
    %c0_44 = arith.constant 0 : index
    %c308 = arith.constant 308 : index
    %41 = vector.load %arg9[%c0_44, %c308] : memref<8x362xf32, #tpu.memory_space<vmem>>, vector<8x16xf32>
    tpu.vector_store %arg9[%c0_44, %c308], %40 {strides = array<i32>} : memref<8x362xf32, #tpu.memory_space<vmem>>, vector<8x16xf32>,
    %c0_45 = arith.constant 0 : index
    %c0_46 = arith.constant 0 : index
    %42 = vector.load %arg9[%c0_45, %c0_46] : memref<8x362xf32, #tpu.memory_space<vmem>>, vector<8x324xf32>
    %c0_47 = arith.constant 0 : index
    %c0_48 = arith.constant 0 : index
    %43 = vector.load %arg10[%c0_47, %c0_48] : memref<72x324xf32, #tpu.memory_space<vmem>>, vector<8x324xf32>
    tpu.vector_store %arg10[%c0_47, %c0_48], %42 {strides = array<i32>} : memref<72x324xf32, #tpu.memory_space<vmem>>, vector<8x324xf32>,
    %c0_49 = arith.constant 0 : index
    %c1 = arith.constant 1 : index
    %44 = vector.load %arg9[%c0_49, %c1] : memref<8x362xf32, #tpu.memory_space<vmem>>, vector<8x324xf32>
    %c8 = arith.constant 8 : index
    %c0_50 = arith.constant 0 : index
    %45 = vector.load %arg10[%c8, %c0_50] : memref<72x324xf32, #tpu.memory_space<vmem>>, vector<8x324xf32>
    tpu.vector_store %arg10[%c8, %c0_50], %44 {strides = array<i32>} : memref<72x324xf32, #tpu.memory_space<vmem>>, vector<8x324xf32>,
    %c0_51 = arith.constant 0 : index
    %c2 = arith.constant 2 : index
    %46 = vector.load %arg9[%c0_51, %c2] : memref<8x362xf32, #tpu.memory_space<vmem>>, vector<8x324xf32>
    %c16_52 = arith.constant 16 : index
    %c0_53 = arith.constant 0 : index
    %47 = vector.load %arg10[%c16_52, %c0_53] : memref<72x324xf32, #tpu.memory_space<vmem>>, vector<8x324xf32>
    tpu.vector_store %arg10[%c16_52, %c0_53], %46 {strides = array<i32>} : memref<72x324xf32, #tpu.memory_space<vmem>>, vector<8x324xf32>,
    %c0_54 = arith.constant 0 : index
    %c18 = arith.constant 18 : index
    %48 = vector.load %arg9[%c0_54, %c18] : memref<8x362xf32, #tpu.memory_space<vmem>>, vector<8x324xf32>
    %c24 = arith.constant 24 : index
    %c0_55 = arith.constant 0 : index
    %49 = vector.load %arg10[%c24, %c0_55] : memref<72x324xf32, #tpu.memory_space<vmem>>, vector<8x324xf32>
    tpu.vector_store %arg10[%c24, %c0_55], %48 {strides = array<i32>} : memref<72x324xf32, #tpu.memory_space<vmem>>, vector<8x324xf32>,
    %c0_56 = arith.constant 0 : index
    %c19 = arith.constant 19 : index
    %50 = vector.load %arg9[%c0_56, %c19] : memref<8x362xf32, #tpu.memory_space<vmem>>, vector<8x324xf32>
    %c32_57 = arith.constant 32 : index
    %c0_58 = arith.constant 0 : index
    %51 = vector.load %arg10[%c32_57, %c0_58] : memref<72x324xf32, #tpu.memory_space<vmem>>, vector<8x324xf32>
    tpu.vector_store %arg10[%c32_57, %c0_58], %50 {strides = array<i32>} : memref<72x324xf32, #tpu.memory_space<vmem>>, vector<8x324xf32>,
    %c0_59 = arith.constant 0 : index
    %c20 = arith.constant 20 : index
    %52 = vector.load %arg9[%c0_59, %c20] : memref<8x362xf32, #tpu.memory_space<vmem>>, vector<8x324xf32>
    %c40 = arith.constant 40 : index
    %c0_60 = arith.constant 0 : index
    %53 = vector.load %arg10[%c40, %c0_60] : memref<72x324xf32, #tpu.memory_space<vmem>>, vector<8x324xf32>
    tpu.vector_store %arg10[%c40, %c0_60], %52 {strides = array<i32>} : memref<72x324xf32, #tpu.memory_space<vmem>>, vector<8x324xf32>,
    %c0_61 = arith.constant 0 : index
    %c36 = arith.constant 36 : index
    %54 = vector.load %arg9[%c0_61, %c36] : memref<8x362xf32, #tpu.memory_space<vmem>>, vector<8x324xf32>
    %c48_62 = arith.constant 48 : index
    %c0_63 = arith.constant 0 : index
    %55 = vector.load %arg10[%c48_62, %c0_63] : memref<72x324xf32, #tpu.memory_space<vmem>>, vector<8x324xf32>
    tpu.vector_store %arg10[%c48_62, %c0_63], %54 {strides = array<i32>} : memref<72x324xf32, #tpu.memory_space<vmem>>, vector<8x324xf32>,
    %c0_64 = arith.constant 0 : index
    %c37 = arith.constant 37 : index
    %56 = vector.load %arg9[%c0_64, %c37] : memref<8x362xf32, #tpu.memory_space<vmem>>, vector<8x324xf32>
    %c56_65 = arith.constant 56 : index
    %c0_66 = arith.constant 0 : index
    %57 = vector.load %arg10[%c56_65, %c0_66] : memref<72x324xf32, #tpu.memory_space<vmem>>, vector<8x324xf32>
    tpu.vector_store %arg10[%c56_65, %c0_66], %56 {strides = array<i32>} : memref<72x324xf32, #tpu.memory_space<vmem>>, vector<8x324xf32>,
    %c0_67 = arith.constant 0 : index
    %c38_68 = arith.constant 38 : index
    %58 = vector.load %arg9[%c0_67, %c38_68] : memref<8x362xf32, #tpu.memory_space<vmem>>, vector<8x324xf32>
    %c64_69 = arith.constant 64 : index
    %c0_70 = arith.constant 0 : index
    %59 = vector.load %arg10[%c64_69, %c0_70] : memref<72x324xf32, #tpu.memory_space<vmem>>, vector<8x324xf32>
    tpu.vector_store %arg10[%c64_69, %c0_70], %58 {strides = array<i32>} : memref<72x324xf32, #tpu.memory_space<vmem>>, vector<8x324xf32>,
    %c0_71 = arith.constant 0 : index
    %c0_72 = arith.constant 0 : index
    %60 = vector.load %arg4[%c0_71, %c0_72] : memref<8x72xf32, #tpu.memory_space<vmem>>, vector<8x72xf32>
    %c0_73 = arith.constant 0 : index
    %c0_74 = arith.constant 0 : index
    %61 = vector.load %arg10[%c0_73, %c0_74] : memref<72x324xf32, #tpu.memory_space<vmem>>, vector<72x324xf32>
    %cst_75 = arith.constant dense<0.000000e+00> : vector<8x324xf32>
    %62 = tpu.matmul %60, %61, %cst_75 {dimension_numbers = #tpu.dot_dimension_numbers<[1], [0], [0], [1], [0, 0, 1, 1], [], []>} : vector<8x72xf32>, vector<72x324xf32>, vector<8x324xf32> -> vector<8x324xf32>
    %c0_76 = arith.constant 0 : index
    %c0_77 = arith.constant 0 : index
    %63 = vector.load %arg5[%c0_76, %c0_77] : memref<8x1xf32, #tpu.memory_space<vmem>>, vector<8x1xf32>
    %64 = vector.broadcast %63 : vector<8x1xf32> to vector<8x324xf32>
    %65 = arith.addf %62, %64 : vector<8x324xf32>
    %cst_78 = arith.constant 0.000000e+00 : f32
    %66 = vector.broadcast %cst_78 : f32 to vector<8x324xf32>
    %67 = arith.maximumf %65, %66 : vector<8x324xf32>
    %c0_79 = arith.constant 0 : index
    %c0_80 = arith.constant 0 : index
    %68 = vector.load %arg12[%c0_79, %c0_80] : memref<8x324xf32, #tpu.memory_space<vmem>>, vector<8x324xf32>
    tpu.vector_store %arg12[%c0_79, %c0_80], %67 {strides = array<i32>} : memref<8x324xf32, #tpu.memory_space<vmem>>, vector<8x324xf32>,
    %c0_81 = arith.constant 0 : index
    %c19_82 = arith.constant 19 : index
    %69 = vector.load %arg12[%c0_81, %c19_82] : memref<8x324xf32, #tpu.memory_space<vmem>>, vector<8x16xf32>
    %c0_83 = arith.constant 0 : index
    %c38_84 = arith.constant 38 : index
    %70 = vector.load %arg9[%c0_83, %c38_84] : memref<8x362xf32, #tpu.memory_space<vmem>>, vector<8x16xf32>
    tpu.vector_store %arg9[%c0_83, %c38_84], %69 {strides = array<i32>} : memref<8x362xf32, #tpu.memory_space<vmem>>, vector<8x16xf32>,
    %c0_85 = arith.constant 0 : index
    %c37_86 = arith.constant 37 : index
    %71 = vector.load %arg12[%c0_85, %c37_86] : memref<8x324xf32, #tpu.memory_space<vmem>>, vector<8x16xf32>
    %c0_87 = arith.constant 0 : index
    %c56_88 = arith.constant 56 : index
    %72 = vector.load %arg9[%c0_87, %c56_88] : memref<8x362xf32, #tpu.memory_space<vmem>>, vector<8x16xf32>
    tpu.vector_store %arg9[%c0_87, %c56_88], %71 {strides = array<i32>} : memref<8x362xf32, #tpu.memory_space<vmem>>, vector<8x16xf32>,
    %c0_89 = arith.constant 0 : index
    %c55 = arith.constant 55 : index
    %73 = vector.load %arg12[%c0_89, %c55] : memref<8x324xf32, #tpu.memory_space<vmem>>, vector<8x16xf32>
    %c0_90 = arith.constant 0 : index
    %c74_91 = arith.constant 74 : index
    %74 = vector.load %arg9[%c0_90, %c74_91] : memref<8x362xf32, #tpu.memory_space<vmem>>, vector<8x16xf32>
    tpu.vector_store %arg9[%c0_90, %c74_91], %73 {strides = array<i32>} : memref<8x362xf32, #tpu.memory_space<vmem>>, vector<8x16xf32>,
    %c0_92 = arith.constant 0 : index
    %c73 = arith.constant 73 : index
    %75 = vector.load %arg12[%c0_92, %c73] : memref<8x324xf32, #tpu.memory_space<vmem>>, vector<8x16xf32>
    %c0_93 = arith.constant 0 : index
    %c92_94 = arith.constant 92 : index
    %76 = vector.load %arg9[%c0_93, %c92_94] : memref<8x362xf32, #tpu.memory_space<vmem>>, vector<8x16xf32>
    tpu.vector_store %arg9[%c0_93, %c92_94], %75 {strides = array<i32>} : memref<8x362xf32, #tpu.memory_space<vmem>>, vector<8x16xf32>,
    %c0_95 = arith.constant 0 : index
    %c91 = arith.constant 91 : index
    %77 = vector.load %arg12[%c0_95, %c91] : memref<8x324xf32, #tpu.memory_space<vmem>>, vector<8x16xf32>
    %c0_96 = arith.constant 0 : index
    %c110_97 = arith.constant 110 : index
    %78 = vector.load %arg9[%c0_96, %c110_97] : memref<8x362xf32, #tpu.memory_space<vmem>>, vector<8x16xf32>
    tpu.vector_store %arg9[%c0_96, %c110_97], %77 {strides = array<i32>} : memref<8x362xf32, #tpu.memory_space<vmem>>, vector<8x16xf32>,
    %c0_98 = arith.constant 0 : index
    %c109 = arith.constant 109 : index
    %79 = vector.load %arg12[%c0_98, %c109] : memref<8x324xf32, #tpu.memory_space<vmem>>, vector<8x16xf32>
    %c0_99 = arith.constant 0 : index
    %c128_100 = arith.constant 128 : index
    %80 = vector.load %arg9[%c0_99, %c128_100] : memref<8x362xf32, #tpu.memory_space<vmem>>, vector<8x16xf32>
    tpu.vector_store %arg9[%c0_99, %c128_100], %79 {strides = array<i32>} : memref<8x362xf32, #tpu.memory_space<vmem>>, vector<8x16xf32>,
    %c0_101 = arith.constant 0 : index
    %c127 = arith.constant 127 : index
    %81 = vector.load %arg12[%c0_101, %c127] : memref<8x324xf32, #tpu.memory_space<vmem>>, vector<8x16xf32>
    %c0_102 = arith.constant 0 : index
    %c146_103 = arith.constant 146 : index
    %82 = vector.load %arg9[%c0_102, %c146_103] : memref<8x362xf32, #tpu.memory_space<vmem>>, vector<8x16xf32>
    tpu.vector_store %arg9[%c0_102, %c146_103], %81 {strides = array<i32>} : memref<8x362xf32, #tpu.memory_space<vmem>>, vector<8x16xf32>,
    %c0_104 = arith.constant 0 : index
    %c145 = arith.constant 145 : index
    %83 = vector.load %arg12[%c0_104, %c145] : memref<8x324xf32, #tpu.memory_space<vmem>>, vector<8x16xf32>
    %c0_105 = arith.constant 0 : index
    %c164_106 = arith.constant 164 : index
    %84 = vector.load %arg9[%c0_105, %c164_106] : memref<8x362xf32, #tpu.memory_space<vmem>>, vector<8x16xf32>
    tpu.vector_store %arg9[%c0_105, %c164_106], %83 {strides = array<i32>} : memref<8x362xf32, #tpu.memory_space<vmem>>, vector<8x16xf32>,
    %c0_107 = arith.constant 0 : index
    %c163 = arith.constant 163 : index
    %85 = vector.load %arg12[%c0_107, %c163] : memref<8x324xf32, #tpu.memory_space<vmem>>, vector<8x16xf32>
    %c0_108 = arith.constant 0 : index
    %c182_109 = arith.constant 182 : index
    %86 = vector.load %arg9[%c0_108, %c182_109] : memref<8x362xf32, #tpu.memory_space<vmem>>, vector<8x16xf32>
    tpu.vector_store %arg9[%c0_108, %c182_109], %85 {strides = array<i32>} : memref<8x362xf32, #tpu.memory_space<vmem>>, vector<8x16xf32>,
    %c0_110 = arith.constant 0 : index
    %c181 = arith.constant 181 : index
    %87 = vector.load %arg12[%c0_110, %c181] : memref<8x324xf32, #tpu.memory_space<vmem>>, vector<8x16xf32>
    %c0_111 = arith.constant 0 : index
    %c200_112 = arith.constant 200 : index
    %88 = vector.load %arg9[%c0_111, %c200_112] : memref<8x362xf32, #tpu.memory_space<vmem>>, vector<8x16xf32>
    tpu.vector_store %arg9[%c0_111, %c200_112], %87 {strides = array<i32>} : memref<8x362xf32, #tpu.memory_space<vmem>>, vector<8x16xf32>,
    %c0_113 = arith.constant 0 : index
    %c199 = arith.constant 199 : index
    %89 = vector.load %arg12[%c0_113, %c199] : memref<8x324xf32, #tpu.memory_space<vmem>>, vector<8x16xf32>
    %c0_114 = arith.constant 0 : index
    %c218_115 = arith.constant 218 : index
    %90 = vector.load %arg9[%c0_114, %c218_115] : memref<8x362xf32, #tpu.memory_space<vmem>>, vector<8x16xf32>
    tpu.vector_store %arg9[%c0_114, %c218_115], %89 {strides = array<i32>} : memref<8x362xf32, #tpu.memory_space<vmem>>, vector<8x16xf32>,
    %c0_116 = arith.constant 0 : index
    %c217 = arith.constant 217 : index
    %91 = vector.load %arg12[%c0_116, %c217] : memref<8x324xf32, #tpu.memory_space<vmem>>, vector<8x16xf32>
    %c0_117 = arith.constant 0 : index
    %c236_118 = arith.constant 236 : index
    %92 = vector.load %arg9[%c0_117, %c236_118] : memref<8x362xf32, #tpu.memory_space<vmem>>, vector<8x16xf32>
    tpu.vector_store %arg9[%c0_117, %c236_118], %91 {strides = array<i32>} : memref<8x362xf32, #tpu.memory_space<vmem>>, vector<8x16xf32>,
    %c0_119 = arith.constant 0 : index
    %c235 = arith.constant 235 : index
    %93 = vector.load %arg12[%c0_119, %c235] : memref<8x324xf32, #tpu.memory_space<vmem>>, vector<8x16xf32>
    %c0_120 = arith.constant 0 : index
    %c254_121 = arith.constant 254 : index
    %94 = vector.load %arg9[%c0_120, %c254_121] : memref<8x362xf32, #tpu.memory_space<vmem>>, vector<8x16xf32>
    tpu.vector_store %arg9[%c0_120, %c254_121], %93 {strides = array<i32>} : memref<8x362xf32, #tpu.memory_space<vmem>>, vector<8x16xf32>,
    %c0_122 = arith.constant 0 : index
    %c253 = arith.constant 253 : index
    %95 = vector.load %arg12[%c0_122, %c253] : memref<8x324xf32, #tpu.memory_space<vmem>>, vector<8x16xf32>
    %c0_123 = arith.constant 0 : index
    %c272_124 = arith.constant 272 : index
    %96 = vector.load %arg9[%c0_123, %c272_124] : memref<8x362xf32, #tpu.memory_space<vmem>>, vector<8x16xf32>
    tpu.vector_store %arg9[%c0_123, %c272_124], %95 {strides = array<i32>} : memref<8x362xf32, #tpu.memory_space<vmem>>, vector<8x16xf32>,
    %c0_125 = arith.constant 0 : index
    %c271 = arith.constant 271 : index
    %97 = vector.load %arg12[%c0_125, %c271] : memref<8x324xf32, #tpu.memory_space<vmem>>, vector<8x16xf32>
    %c0_126 = arith.constant 0 : index
    %c290_127 = arith.constant 290 : index
    %98 = vector.load %arg9[%c0_126, %c290_127] : memref<8x362xf32, #tpu.memory_space<vmem>>, vector<8x16xf32>
    tpu.vector_store %arg9[%c0_126, %c290_127], %97 {strides = array<i32>} : memref<8x362xf32, #tpu.memory_space<vmem>>, vector<8x16xf32>,
    %c0_128 = arith.constant 0 : index
    %c289 = arith.constant 289 : index
    %99 = vector.load %arg12[%c0_128, %c289] : memref<8x324xf32, #tpu.memory_space<vmem>>, vector<8x16xf32>
    %c0_129 = arith.constant 0 : index
    %c308_130 = arith.constant 308 : index
    %100 = vector.load %arg9[%c0_129, %c308_130] : memref<8x362xf32, #tpu.memory_space<vmem>>, vector<8x16xf32>
    tpu.vector_store %arg9[%c0_129, %c308_130], %99 {strides = array<i32>} : memref<8x362xf32, #tpu.memory_space<vmem>>, vector<8x16xf32>,
    %c0_131 = arith.constant 0 : index
    %c0_132 = arith.constant 0 : index
    %101 = vector.load %arg9[%c0_131, %c0_132] : memref<8x362xf32, #tpu.memory_space<vmem>>, vector<8x324xf32>
    %c0_133 = arith.constant 0 : index
    %c0_134 = arith.constant 0 : index
    %102 = vector.load %arg10[%c0_133, %c0_134] : memref<72x324xf32, #tpu.memory_space<vmem>>, vector<8x324xf32>
    tpu.vector_store %arg10[%c0_133, %c0_134], %101 {strides = array<i32>} : memref<72x324xf32, #tpu.memory_space<vmem>>, vector<8x324xf32>,
    %c0_135 = arith.constant 0 : index
    %c1_136 = arith.constant 1 : index
    %103 = vector.load %arg9[%c0_135, %c1_136] : memref<8x362xf32, #tpu.memory_space<vmem>>, vector<8x324xf32>
    %c8_137 = arith.constant 8 : index
    %c0_138 = arith.constant 0 : index
    %104 = vector.load %arg10[%c8_137, %c0_138] : memref<72x324xf32, #tpu.memory_space<vmem>>, vector<8x324xf32>
    tpu.vector_store %arg10[%c8_137, %c0_138], %103 {strides = array<i32>} : memref<72x324xf32, #tpu.memory_space<vmem>>, vector<8x324xf32>,
    %c0_139 = arith.constant 0 : index
    %c2_140 = arith.constant 2 : index
    %105 = vector.load %arg9[%c0_139, %c2_140] : memref<8x362xf32, #tpu.memory_space<vmem>>, vector<8x324xf32>
    %c16_141 = arith.constant 16 : index
    %c0_142 = arith.constant 0 : index
    %106 = vector.load %arg10[%c16_141, %c0_142] : memref<72x324xf32, #tpu.memory_space<vmem>>, vector<8x324xf32>
    tpu.vector_store %arg10[%c16_141, %c0_142], %105 {strides = array<i32>} : memref<72x324xf32, #tpu.memory_space<vmem>>, vector<8x324xf32>,
    %c0_143 = arith.constant 0 : index
    %c18_144 = arith.constant 18 : index
    %107 = vector.load %arg9[%c0_143, %c18_144] : memref<8x362xf32, #tpu.memory_space<vmem>>, vector<8x324xf32>
    %c24_145 = arith.constant 24 : index
    %c0_146 = arith.constant 0 : index
    %108 = vector.load %arg10[%c24_145, %c0_146] : memref<72x324xf32, #tpu.memory_space<vmem>>, vector<8x324xf32>
    tpu.vector_store %arg10[%c24_145, %c0_146], %107 {strides = array<i32>} : memref<72x324xf32, #tpu.memory_space<vmem>>, vector<8x324xf32>,
    %c0_147 = arith.constant 0 : index
    %c19_148 = arith.constant 19 : index
    %109 = vector.load %arg9[%c0_147, %c19_148] : memref<8x362xf32, #tpu.memory_space<vmem>>, vector<8x324xf32>
    %c32_149 = arith.constant 32 : index
    %c0_150 = arith.constant 0 : index
    %110 = vector.load %arg10[%c32_149, %c0_150] : memref<72x324xf32, #tpu.memory_space<vmem>>, vector<8x324xf32>
    tpu.vector_store %arg10[%c32_149, %c0_150], %109 {strides = array<i32>} : memref<72x324xf32, #tpu.memory_space<vmem>>, vector<8x324xf32>,
    %c0_151 = arith.constant 0 : index
    %c20_152 = arith.constant 20 : index
    %111 = vector.load %arg9[%c0_151, %c20_152] : memref<8x362xf32, #tpu.memory_space<vmem>>, vector<8x324xf32>
    %c40_153 = arith.constant 40 : index
    %c0_154 = arith.constant 0 : index
    %112 = vector.load %arg10[%c40_153, %c0_154] : memref<72x324xf32, #tpu.memory_space<vmem>>, vector<8x324xf32>
    tpu.vector_store %arg10[%c40_153, %c0_154], %111 {strides = array<i32>} : memref<72x324xf32, #tpu.memory_space<vmem>>, vector<8x324xf32>,
    %c0_155 = arith.constant 0 : index
    %c36_156 = arith.constant 36 : index
    %113 = vector.load %arg9[%c0_155, %c36_156] : memref<8x362xf32, #tpu.memory_space<vmem>>, vector<8x324xf32>
    %c48_157 = arith.constant 48 : index
    %c0_158 = arith.constant 0 : index
    %114 = vector.load %arg10[%c48_157, %c0_158] : memref<72x324xf32, #tpu.memory_space<vmem>>, vector<8x324xf32>
    tpu.vector_store %arg10[%c48_157, %c0_158], %113 {strides = array<i32>} : memref<72x324xf32, #tpu.memory_space<vmem>>, vector<8x324xf32>,
    %c0_159 = arith.constant 0 : index
    %c37_160 = arith.constant 37 : index
    %115 = vector.load %arg9[%c0_159, %c37_160] : memref<8x362xf32, #tpu.memory_space<vmem>>, vector<8x324xf32>
    %c56_161 = arith.constant 56 : index
    %c0_162 = arith.constant 0 : index
    %116 = vector.load %arg10[%c56_161, %c0_162] : memref<72x324xf32, #tpu.memory_space<vmem>>, vector<8x324xf32>
    tpu.vector_store %arg10[%c56_161, %c0_162], %115 {strides = array<i32>} : memref<72x324xf32, #tpu.memory_space<vmem>>, vector<8x324xf32>,
    %c0_163 = arith.constant 0 : index
    %c38_164 = arith.constant 38 : index
    %117 = vector.load %arg9[%c0_163, %c38_164] : memref<8x362xf32, #tpu.memory_space<vmem>>, vector<8x324xf32>
    %c64_165 = arith.constant 64 : index
    %c0_166 = arith.constant 0 : index
    %118 = vector.load %arg10[%c64_165, %c0_166] : memref<72x324xf32, #tpu.memory_space<vmem>>, vector<8x324xf32>
    tpu.vector_store %arg10[%c64_165, %c0_166], %117 {strides = array<i32>} : memref<72x324xf32, #tpu.memory_space<vmem>>, vector<8x324xf32>,
    %c0_167 = arith.constant 0 : index
    %c0_168 = arith.constant 0 : index
    %119 = vector.load %arg6[%c0_167, %c0_168] : memref<8x72xf32, #tpu.memory_space<vmem>>, vector<8x72xf32>
    %c0_169 = arith.constant 0 : index
    %c0_170 = arith.constant 0 : index
    %120 = vector.load %arg10[%c0_169, %c0_170] : memref<72x324xf32, #tpu.memory_space<vmem>>, vector<72x324xf32>
    %cst_171 = arith.constant dense<0.000000e+00> : vector<8x324xf32>
    %121 = tpu.matmul %119, %120, %cst_171 {dimension_numbers = #tpu.dot_dimension_numbers<[1], [0], [0], [1], [0, 0, 1, 1], [], []>} : vector<8x72xf32>, vector<72x324xf32>, vector<8x324xf32> -> vector<8x324xf32>
    %c0_172 = arith.constant 0 : index
    %c0_173 = arith.constant 0 : index
    %122 = vector.load %arg7[%c0_172, %c0_173] : memref<8x1xf32, #tpu.memory_space<vmem>>, vector<8x1xf32>
    %123 = vector.broadcast %122 : vector<8x1xf32> to vector<8x324xf32>
    %124 = arith.addf %121, %123 : vector<8x324xf32>
    %c0_174 = arith.constant 0 : index
    %c0_175 = arith.constant 0 : index
    %125 = vector.load %arg12[%c0_174, %c0_175] : memref<8x324xf32, #tpu.memory_space<vmem>>, vector<8x324xf32>
    tpu.vector_store %arg12[%c0_174, %c0_175], %124 {strides = array<i32>} : memref<8x324xf32, #tpu.memory_space<vmem>>, vector<8x324xf32>,
    %c0_176 = arith.constant 0 : index
    %c19_177 = arith.constant 19 : index
    %126 = vector.load %arg12[%c0_176, %c19_177] : memref<8x324xf32, #tpu.memory_space<vmem>>, vector<8x16xf32>
    %c0_178 = arith.constant 0 : index
    %c0_179 = arith.constant 0 : index
    %127 = vector.load %arg11[%c0_178, %c0_179] : memref<8x256xf32, #tpu.memory_space<vmem>>, vector<8x16xf32>
    %128 = arith.addf %126, %127 : vector<8x16xf32>
    %c0_180 = arith.constant 0 : index
    %c0_181 = arith.constant 0 : index
    %c0_182 = arith.constant 0 : index
    %c0_183 = arith.constant 0 : index
    %129 = vector.load %arg8[%c0_180, %c0_181, %c0_182, %c0_183] : memref<1x8x16x16xf32, #tpu.memory_space<vmem>>, vector<1x8x1x16xf32>
    %130 = vector.shape_cast %129 : vector<1x8x1x16xf32> to vector<8x16xf32>
    %131 = vector.shape_cast %128 : vector<8x16xf32> to vector<1x8x1x16xf32>
    tpu.vector_store %arg8[%c0_180, %c0_181, %c0_182, %c0_183], %131 {strides = array<i32>} : memref<1x8x16x16xf32, #tpu.memory_space<vmem>>, vector<1x8x1x16xf32>,
    %c0_184 = arith.constant 0 : index
    %c37_185 = arith.constant 37 : index
    %132 = vector.load %arg12[%c0_184, %c37_185] : memref<8x324xf32, #tpu.memory_space<vmem>>, vector<8x16xf32>
    %c0_186 = arith.constant 0 : index
    %c16_187 = arith.constant 16 : index
    %133 = vector.load %arg11[%c0_186, %c16_187] : memref<8x256xf32, #tpu.memory_space<vmem>>, vector<8x16xf32>
    %134 = arith.addf %132, %133 : vector<8x16xf32>
    %c0_188 = arith.constant 0 : index
    %c0_189 = arith.constant 0 : index
    %c1_190 = arith.constant 1 : index
    %c0_191 = arith.constant 0 : index
    %135 = vector.load %arg8[%c0_188, %c0_189, %c1_190, %c0_191] : memref<1x8x16x16xf32, #tpu.memory_space<vmem>>, vector<1x8x1x16xf32>
    %136 = vector.shape_cast %135 : vector<1x8x1x16xf32> to vector<8x16xf32>
    %137 = vector.shape_cast %134 : vector<8x16xf32> to vector<1x8x1x16xf32>
    tpu.vector_store %arg8[%c0_188, %c0_189, %c1_190, %c0_191], %137 {strides = array<i32>} : memref<1x8x16x16xf32, #tpu.memory_space<vmem>>, vector<1x8x1x16xf32>,
    %c0_192 = arith.constant 0 : index
    %c55_193 = arith.constant 55 : index
    %138 = vector.load %arg12[%c0_192, %c55_193] : memref<8x324xf32, #tpu.memory_space<vmem>>, vector<8x16xf32>
    %c0_194 = arith.constant 0 : index
    %c32_195 = arith.constant 32 : index
    %139 = vector.load %arg11[%c0_194, %c32_195] : memref<8x256xf32, #tpu.memory_space<vmem>>, vector<8x16xf32>
    %140 = arith.addf %138, %139 : vector<8x16xf32>
    %c0_196 = arith.constant 0 : index
    %c0_197 = arith.constant 0 : index
    %c2_198 = arith.constant 2 : index
    %c0_199 = arith.constant 0 : index
    %141 = vector.load %arg8[%c0_196, %c0_197, %c2_198, %c0_199] : memref<1x8x16x16xf32, #tpu.memory_space<vmem>>, vector<1x8x1x16xf32>
    %142 = vector.shape_cast %141 : vector<1x8x1x16xf32> to vector<8x16xf32>
    %143 = vector.shape_cast %140 : vector<8x16xf32> to vector<1x8x1x16xf32>
    tpu.vector_store %arg8[%c0_196, %c0_197, %c2_198, %c0_199], %143 {strides = array<i32>} : memref<1x8x16x16xf32, #tpu.memory_space<vmem>>, vector<1x8x1x16xf32>,
    %c0_200 = arith.constant 0 : index
    %c73_201 = arith.constant 73 : index
    %144 = vector.load %arg12[%c0_200, %c73_201] : memref<8x324xf32, #tpu.memory_space<vmem>>, vector<8x16xf32>
    %c0_202 = arith.constant 0 : index
    %c48_203 = arith.constant 48 : index
    %145 = vector.load %arg11[%c0_202, %c48_203] : memref<8x256xf32, #tpu.memory_space<vmem>>, vector<8x16xf32>
    %146 = arith.addf %144, %145 : vector<8x16xf32>
    %c0_204 = arith.constant 0 : index
    %c0_205 = arith.constant 0 : index
    %c3 = arith.constant 3 : index
    %c0_206 = arith.constant 0 : index
    %147 = vector.load %arg8[%c0_204, %c0_205, %c3, %c0_206] : memref<1x8x16x16xf32, #tpu.memory_space<vmem>>, vector<1x8x1x16xf32>
    %148 = vector.shape_cast %147 : vector<1x8x1x16xf32> to vector<8x16xf32>
    %149 = vector.shape_cast %146 : vector<8x16xf32> to vector<1x8x1x16xf32>
    tpu.vector_store %arg8[%c0_204, %c0_205, %c3, %c0_206], %149 {strides = array<i32>} : memref<1x8x16x16xf32, #tpu.memory_space<vmem>>, vector<1x8x1x16xf32>,
    %c0_207 = arith.constant 0 : index
    %c91_208 = arith.constant 91 : index
    %150 = vector.load %arg12[%c0_207, %c91_208] : memref<8x324xf32, #tpu.memory_space<vmem>>, vector<8x16xf32>
    %c0_209 = arith.constant 0 : index
    %c64_210 = arith.constant 64 : index
    %151 = vector.load %arg11[%c0_209, %c64_210] : memref<8x256xf32, #tpu.memory_space<vmem>>, vector<8x16xf32>
    %152 = arith.addf %150, %151 : vector<8x16xf32>
    %c0_211 = arith.constant 0 : index
    %c0_212 = arith.constant 0 : index
    %c4 = arith.constant 4 : index
    %c0_213 = arith.constant 0 : index
    %153 = vector.load %arg8[%c0_211, %c0_212, %c4, %c0_213] : memref<1x8x16x16xf32, #tpu.memory_space<vmem>>, vector<1x8x1x16xf32>
    %154 = vector.shape_cast %153 : vector<1x8x1x16xf32> to vector<8x16xf32>
    %155 = vector.shape_cast %152 : vector<8x16xf32> to vector<1x8x1x16xf32>
    tpu.vector_store %arg8[%c0_211, %c0_212, %c4, %c0_213], %155 {strides = array<i32>} : memref<1x8x16x16xf32, #tpu.memory_space<vmem>>, vector<1x8x1x16xf32>,
    %c0_214 = arith.constant 0 : index
    %c109_215 = arith.constant 109 : index
    %156 = vector.load %arg12[%c0_214, %c109_215] : memref<8x324xf32, #tpu.memory_space<vmem>>, vector<8x16xf32>
    %c0_216 = arith.constant 0 : index
    %c80_217 = arith.constant 80 : index
    %157 = vector.load %arg11[%c0_216, %c80_217] : memref<8x256xf32, #tpu.memory_space<vmem>>, vector<8x16xf32>
    %158 = arith.addf %156, %157 : vector<8x16xf32>
    %c0_218 = arith.constant 0 : index
    %c0_219 = arith.constant 0 : index
    %c5 = arith.constant 5 : index
    %c0_220 = arith.constant 0 : index
    %159 = vector.load %arg8[%c0_218, %c0_219, %c5, %c0_220] : memref<1x8x16x16xf32, #tpu.memory_space<vmem>>, vector<1x8x1x16xf32>
    %160 = vector.shape_cast %159 : vector<1x8x1x16xf32> to vector<8x16xf32>
    %161 = vector.shape_cast %158 : vector<8x16xf32> to vector<1x8x1x16xf32>
    tpu.vector_store %arg8[%c0_218, %c0_219, %c5, %c0_220], %161 {strides = array<i32>} : memref<1x8x16x16xf32, #tpu.memory_space<vmem>>, vector<1x8x1x16xf32>,
    %c0_221 = arith.constant 0 : index
    %c127_222 = arith.constant 127 : index
    %162 = vector.load %arg12[%c0_221, %c127_222] : memref<8x324xf32, #tpu.memory_space<vmem>>, vector<8x16xf32>
    %c0_223 = arith.constant 0 : index
    %c96_224 = arith.constant 96 : index
    %163 = vector.load %arg11[%c0_223, %c96_224] : memref<8x256xf32, #tpu.memory_space<vmem>>, vector<8x16xf32>
    %164 = arith.addf %162, %163 : vector<8x16xf32>
    %c0_225 = arith.constant 0 : index
    %c0_226 = arith.constant 0 : index
    %c6 = arith.constant 6 : index
    %c0_227 = arith.constant 0 : index
    %165 = vector.load %arg8[%c0_225, %c0_226, %c6, %c0_227] : memref<1x8x16x16xf32, #tpu.memory_space<vmem>>, vector<1x8x1x16xf32>
    %166 = vector.shape_cast %165 : vector<1x8x1x16xf32> to vector<8x16xf32>
    %167 = vector.shape_cast %164 : vector<8x16xf32> to vector<1x8x1x16xf32>
    tpu.vector_store %arg8[%c0_225, %c0_226, %c6, %c0_227], %167 {strides = array<i32>} : memref<1x8x16x16xf32, #tpu.memory_space<vmem>>, vector<1x8x1x16xf32>,
    %c0_228 = arith.constant 0 : index
    %c145_229 = arith.constant 145 : index
    %168 = vector.load %arg12[%c0_228, %c145_229] : memref<8x324xf32, #tpu.memory_space<vmem>>, vector<8x16xf32>
    %c0_230 = arith.constant 0 : index
    %c112_231 = arith.constant 112 : index
    %169 = vector.load %arg11[%c0_230, %c112_231] : memref<8x256xf32, #tpu.memory_space<vmem>>, vector<8x16xf32>
    %170 = arith.addf %168, %169 : vector<8x16xf32>
    %c0_232 = arith.constant 0 : index
    %c0_233 = arith.constant 0 : index
    %c7 = arith.constant 7 : index
    %c0_234 = arith.constant 0 : index
    %171 = vector.load %arg8[%c0_232, %c0_233, %c7, %c0_234] : memref<1x8x16x16xf32, #tpu.memory_space<vmem>>, vector<1x8x1x16xf32>
    %172 = vector.shape_cast %171 : vector<1x8x1x16xf32> to vector<8x16xf32>
    %173 = vector.shape_cast %170 : vector<8x16xf32> to vector<1x8x1x16xf32>
    tpu.vector_store %arg8[%c0_232, %c0_233, %c7, %c0_234], %173 {strides = array<i32>} : memref<1x8x16x16xf32, #tpu.memory_space<vmem>>, vector<1x8x1x16xf32>,
    %c0_235 = arith.constant 0 : index
    %c163_236 = arith.constant 163 : index
    %174 = vector.load %arg12[%c0_235, %c163_236] : memref<8x324xf32, #tpu.memory_space<vmem>>, vector<8x16xf32>
    %c0_237 = arith.constant 0 : index
    %c128_238 = arith.constant 128 : index
    %175 = vector.load %arg11[%c0_237, %c128_238] : memref<8x256xf32, #tpu.memory_space<vmem>>, vector<8x16xf32>
    %176 = arith.addf %174, %175 : vector<8x16xf32>
    %c0_239 = arith.constant 0 : index
    %c0_240 = arith.constant 0 : index
    %c8_241 = arith.constant 8 : index
    %c0_242 = arith.constant 0 : index
    %177 = vector.load %arg8[%c0_239, %c0_240, %c8_241, %c0_242] : memref<1x8x16x16xf32, #tpu.memory_space<vmem>>, vector<1x8x1x16xf32>
    %178 = vector.shape_cast %177 : vector<1x8x1x16xf32> to vector<8x16xf32>
    %179 = vector.shape_cast %176 : vector<8x16xf32> to vector<1x8x1x16xf32>
    tpu.vector_store %arg8[%c0_239, %c0_240, %c8_241, %c0_242], %179 {strides = array<i32>} : memref<1x8x16x16xf32, #tpu.memory_space<vmem>>, vector<1x8x1x16xf32>,
    %c0_243 = arith.constant 0 : index
    %c181_244 = arith.constant 181 : index
    %180 = vector.load %arg12[%c0_243, %c181_244] : memref<8x324xf32, #tpu.memory_space<vmem>>, vector<8x16xf32>
    %c0_245 = arith.constant 0 : index
    %c144_246 = arith.constant 144 : index
    %181 = vector.load %arg11[%c0_245, %c144_246] : memref<8x256xf32, #tpu.memory_space<vmem>>, vector<8x16xf32>
    %182 = arith.addf %180, %181 : vector<8x16xf32>
    %c0_247 = arith.constant 0 : index
    %c0_248 = arith.constant 0 : index
    %c9 = arith.constant 9 : index
    %c0_249 = arith.constant 0 : index
    %183 = vector.load %arg8[%c0_247, %c0_248, %c9, %c0_249] : memref<1x8x16x16xf32, #tpu.memory_space<vmem>>, vector<1x8x1x16xf32>
    %184 = vector.shape_cast %183 : vector<1x8x1x16xf32> to vector<8x16xf32>
    %185 = vector.shape_cast %182 : vector<8x16xf32> to vector<1x8x1x16xf32>
    tpu.vector_store %arg8[%c0_247, %c0_248, %c9, %c0_249], %185 {strides = array<i32>} : memref<1x8x16x16xf32, #tpu.memory_space<vmem>>, vector<1x8x1x16xf32>,
    %c0_250 = arith.constant 0 : index
    %c199_251 = arith.constant 199 : index
    %186 = vector.load %arg12[%c0_250, %c199_251] : memref<8x324xf32, #tpu.memory_space<vmem>>, vector<8x16xf32>
    %c0_252 = arith.constant 0 : index
    %c160_253 = arith.constant 160 : index
    %187 = vector.load %arg11[%c0_252, %c160_253] : memref<8x256xf32, #tpu.memory_space<vmem>>, vector<8x16xf32>
    %188 = arith.addf %186, %187 : vector<8x16xf32>
    %c0_254 = arith.constant 0 : index
    %c0_255 = arith.constant 0 : index
    %c10 = arith.constant 10 : index
    %c0_256 = arith.constant 0 : index
    %189 = vector.load %arg8[%c0_254, %c0_255, %c10, %c0_256] : memref<1x8x16x16xf32, #tpu.memory_space<vmem>>, vector<1x8x1x16xf32>
    %190 = vector.shape_cast %189 : vector<1x8x1x16xf32> to vector<8x16xf32>
    %191 = vector.shape_cast %188 : vector<8x16xf32> to vector<1x8x1x16xf32>
    tpu.vector_store %arg8[%c0_254, %c0_255, %c10, %c0_256], %191 {strides = array<i32>} : memref<1x8x16x16xf32, #tpu.memory_space<vmem>>, vector<1x8x1x16xf32>,
    %c0_257 = arith.constant 0 : index
    %c217_258 = arith.constant 217 : index
    %192 = vector.load %arg12[%c0_257, %c217_258] : memref<8x324xf32, #tpu.memory_space<vmem>>, vector<8x16xf32>
    %c0_259 = arith.constant 0 : index
    %c176_260 = arith.constant 176 : index
    %193 = vector.load %arg11[%c0_259, %c176_260] : memref<8x256xf32, #tpu.memory_space<vmem>>, vector<8x16xf32>
    %194 = arith.addf %192, %193 : vector<8x16xf32>
    %c0_261 = arith.constant 0 : index
    %c0_262 = arith.constant 0 : index
    %c11 = arith.constant 11 : index
    %c0_263 = arith.constant 0 : index
    %195 = vector.load %arg8[%c0_261, %c0_262, %c11, %c0_263] : memref<1x8x16x16xf32, #tpu.memory_space<vmem>>, vector<1x8x1x16xf32>
    %196 = vector.shape_cast %195 : vector<1x8x1x16xf32> to vector<8x16xf32>
    %197 = vector.shape_cast %194 : vector<8x16xf32> to vector<1x8x1x16xf32>
    tpu.vector_store %arg8[%c0_261, %c0_262, %c11, %c0_263], %197 {strides = array<i32>} : memref<1x8x16x16xf32, #tpu.memory_space<vmem>>, vector<1x8x1x16xf32>,
    %c0_264 = arith.constant 0 : index
    %c235_265 = arith.constant 235 : index
    %198 = vector.load %arg12[%c0_264, %c235_265] : memref<8x324xf32, #tpu.memory_space<vmem>>, vector<8x16xf32>
    %c0_266 = arith.constant 0 : index
    %c192_267 = arith.constant 192 : index
    %199 = vector.load %arg11[%c0_266, %c192_267] : memref<8x256xf32, #tpu.memory_space<vmem>>, vector<8x16xf32>
    %200 = arith.addf %198, %199 : vector<8x16xf32>
    %c0_268 = arith.constant 0 : index
    %c0_269 = arith.constant 0 : index
    %c12 = arith.constant 12 : index
    %c0_270 = arith.constant 0 : index
    %201 = vector.load %arg8[%c0_268, %c0_269, %c12, %c0_270] : memref<1x8x16x16xf32, #tpu.memory_space<vmem>>, vector<1x8x1x16xf32>
    %202 = vector.shape_cast %201 : vector<1x8x1x16xf32> to vector<8x16xf32>
    %203 = vector.shape_cast %200 : vector<8x16xf32> to vector<1x8x1x16xf32>
    tpu.vector_store %arg8[%c0_268, %c0_269, %c12, %c0_270], %203 {strides = array<i32>} : memref<1x8x16x16xf32, #tpu.memory_space<vmem>>, vector<1x8x1x16xf32>,
    %c0_271 = arith.constant 0 : index
    %c253_272 = arith.constant 253 : index
    %204 = vector.load %arg12[%c0_271, %c253_272] : memref<8x324xf32, #tpu.memory_space<vmem>>, vector<8x16xf32>
    %c0_273 = arith.constant 0 : index
    %c208_274 = arith.constant 208 : index
    %205 = vector.load %arg11[%c0_273, %c208_274] : memref<8x256xf32, #tpu.memory_space<vmem>>, vector<8x16xf32>
    %206 = arith.addf %204, %205 : vector<8x16xf32>
    %c0_275 = arith.constant 0 : index
    %c0_276 = arith.constant 0 : index
    %c13 = arith.constant 13 : index
    %c0_277 = arith.constant 0 : index
    %207 = vector.load %arg8[%c0_275, %c0_276, %c13, %c0_277] : memref<1x8x16x16xf32, #tpu.memory_space<vmem>>, vector<1x8x1x16xf32>
    %208 = vector.shape_cast %207 : vector<1x8x1x16xf32> to vector<8x16xf32>
    %209 = vector.shape_cast %206 : vector<8x16xf32> to vector<1x8x1x16xf32>
    tpu.vector_store %arg8[%c0_275, %c0_276, %c13, %c0_277], %209 {strides = array<i32>} : memref<1x8x16x16xf32, #tpu.memory_space<vmem>>, vector<1x8x1x16xf32>,
    %c0_278 = arith.constant 0 : index
    %c271_279 = arith.constant 271 : index
    %210 = vector.load %arg12[%c0_278, %c271_279] : memref<8x324xf32, #tpu.memory_space<vmem>>, vector<8x16xf32>
    %c0_280 = arith.constant 0 : index
    %c224_281 = arith.constant 224 : index
    %211 = vector.load %arg11[%c0_280, %c224_281] : memref<8x256xf32, #tpu.memory_space<vmem>>, vector<8x16xf32>
    %212 = arith.addf %210, %211 : vector<8x16xf32>
    %c0_282 = arith.constant 0 : index
    %c0_283 = arith.constant 0 : index
    %c14 = arith.constant 14 : index
    %c0_284 = arith.constant 0 : index
    %213 = vector.load %arg8[%c0_282, %c0_283, %c14, %c0_284] : memref<1x8x16x16xf32, #tpu.memory_space<vmem>>, vector<1x8x1x16xf32>
    %214 = vector.shape_cast %213 : vector<1x8x1x16xf32> to vector<8x16xf32>
    %215 = vector.shape_cast %212 : vector<8x16xf32> to vector<1x8x1x16xf32>
    tpu.vector_store %arg8[%c0_282, %c0_283, %c14, %c0_284], %215 {strides = array<i32>} : memref<1x8x16x16xf32, #tpu.memory_space<vmem>>, vector<1x8x1x16xf32>,
    %c0_285 = arith.constant 0 : index
    %c289_286 = arith.constant 289 : index
    %216 = vector.load %arg12[%c0_285, %c289_286] : memref<8x324xf32, #tpu.memory_space<vmem>>, vector<8x16xf32>
    %c0_287 = arith.constant 0 : index
    %c240_288 = arith.constant 240 : index
    %217 = vector.load %arg11[%c0_287, %c240_288] : memref<8x256xf32, #tpu.memory_space<vmem>>, vector<8x16xf32>
    %218 = arith.addf %216, %217 : vector<8x16xf32>
    %c0_289 = arith.constant 0 : index
    %c0_290 = arith.constant 0 : index
    %c15 = arith.constant 15 : index
    %c0_291 = arith.constant 0 : index
    %219 = vector.load %arg8[%c0_289, %c0_290, %c15, %c0_291] : memref<1x8x16x16xf32, #tpu.memory_space<vmem>>, vector<1x8x1x16xf32>
    %220 = vector.shape_cast %219 : vector<1x8x1x16xf32> to vector<8x16xf32>
    %221 = vector.shape_cast %218 : vector<8x16xf32> to vector<1x8x1x16xf32>
    tpu.vector_store %arg8[%c0_289, %c0_290, %c15, %c0_291], %221 {strides = array<i32>} : memref<1x8x16x16xf32, #tpu.memory_space<vmem>>, vector<1x8x1x16xf32>,
    return
  }
  func.func @transform_0(%arg0: i32) -> (i32, i32, i32) {
    %c0_i32 = arith.constant 0 : i32
    %c0_i32_0 = arith.constant 0 : i32
    %c0_i32_1 = arith.constant 0 : i32
    return %arg0, %c0_i32, %c0_i32_0 : i32, i32, i32
  }
  func.func @transform_1(%arg0: i32) -> (i32, i32) {
    %c0_i32 = arith.constant 0 : i32
    %c0_i32_0 = arith.constant 0 : i32
    %c0_i32_1 = arith.constant 0 : i32
    return %c0_i32, %c0_i32_0 : i32, i32
  }
  func.func @transform_2(%arg0: i32) -> (i32, i32) {
    %c0_i32 = arith.constant 0 : i32
    %c0_i32_0 = arith.constant 0 : i32
    %c0_i32_1 = arith.constant 0 : i32
    return %c0_i32, %c0_i32_0 : i32, i32
  }
  func.func @transform_3(%arg0: i32) -> (i32, i32) {
    %c0_i32 = arith.constant 0 : i32
    %c0_i32_0 = arith.constant 0 : i32
    %c0_i32_1 = arith.constant 0 : i32
    return %c0_i32, %c0_i32_0 : i32, i32
  }
  func.func @transform_4(%arg0: i32) -> (i32, i32) {
    %c0_i32 = arith.constant 0 : i32
    %c0_i32_0 = arith.constant 0 : i32
    %c0_i32_1 = arith.constant 0 : i32
    return %c0_i32, %c0_i32_0 : i32, i32
  }
  func.func @transform_5(%arg0: i32) -> (i32, i32) {
    %c0_i32 = arith.constant 0 : i32
    %c0_i32_0 = arith.constant 0 : i32
    %c0_i32_1 = arith.constant 0 : i32
    return %c0_i32, %c0_i32_0 : i32, i32
  }
  func.func @transform_6(%arg0: i32) -> (i32, i32) {
    %c0_i32 = arith.constant 0 : i32
    %c0_i32_0 = arith.constant 0 : i32
    %c0_i32_1 = arith.constant 0 : i32
    return %c0_i32, %c0_i32_0 : i32, i32
  }
  func.func @transform_7(%arg0: i32) -> (i32, i32, i32, i32) {
    %c0_i32 = arith.constant 0 : i32
    %c0_i32_0 = arith.constant 0 : i32
    %c0_i32_1 = arith.constant 0 : i32
    %c0_i32_2 = arith.constant 0 : i32
    return %arg0, %c0_i32, %c0_i32_0, %c0_i32_1 : i32, i32, i32, i32
  }
}

</mosaic_0001>

<bundles_post_ra>
// kernel: _lambda_.1
= control target key start
LH: loop header
LB: loop body
LE: loop exit
PB: predicated region body
PF: predicated region fallthrough
CT: control target
= control target key end

     0   :  { %12 = vsyncpa [#allocation7], 0  ;;  %s5561_s0 = inlined_call_operand.vmem [shape: f32[2,4,256], index: 0, kind: input, shape index: {}]   ;;  %s5562_s1 = inlined_call_operand.vmem [shape: f32[8,4], index: 1, kind: input, shape index: {}]   ;;  %s5563_s2 = inlined_call_operand.vmem [shape: f32[8,1], index: 2, kind: input, shape index: {}]   ;;  %s5564_s3 = inlined_call_operand.vmem [shape: f32[8,72], index: 3, kind: input, shape index: {}]   ;;  %s5565_s4 = inlined_call_operand.vmem [shape: f32[8,1], index: 4, kind: input, shape index: {}]   ;;  %s5566_s5 = inlined_call_operand.vmem [shape: f32[8,72], index: 5, kind: input, shape index: {}]   ;;  %s5567_s6 = inlined_call_operand.vmem [shape: f32[8,1], index: 6, kind: input, shape index: {}]   ;;  %s5568_s7 = inlined_call_operand.hbm [shape: f32[2,8,16,16], index: 7, kind: output, shape index: {}]  }
   0x1   :  { %14 = vsyncpa [#allocation7 + $0x1], 0  ;;  %s3837_s24 = smov 0   ;;  %s3839_s25 = smov 0  }
   0x2   :  { %s3841_s26 = smov 0   ;;  %s3843_s27 = smov 0  }
   0x3 LB: > { %s3858_s28 = sadd.s32 4294967295, %s3737_s27   ;;  %s3437_s29 = sadd.s32 4294967294, %s3737_s27   ;;  %s3737_s27 = sphi %s3843_s27, %s5631_s27   ;;  %s3733_s26 = sphi %s3841_s26, %s5630_s26   ;;  %s3729_s25 = sphi %s3839_s25, %s5629_s25   ;;  %s3725_s24 = sphi %s3837_s24, %s5628_s24  }
   0x4   : > { %s3862_s30 = sadd.s32 1, %s3737_s27   ;;  %s179_s8 = sadd.s32 1, %s3733_s26 }
   0x5   : > { %s176_s9 = ssub.s32 %s3737_s27, %s3862_s30  ;;  %p189_p0 = scmp.ne.s32.totalorder %s3733_s26, %s3729_s25 }
   0x6   : > { %p177_p1 = scmp.eq.s32.totalorder %s176_s9, 0  ;;  %p190_p2 = scmp.eq.s32.totalorder %s3858_s28, 1 }
   0x7   : > { %p195_p3 = scmp.ne.s32.totalorder %s3729_s25, %s3725_s24  ;;  %p196_p4 = scmp.eq.s32.totalorder %s3437_s29, 1 }
   0x8   : > { %s3873_s10 = scalar_select %p177_p1, %s3733_s26, %s179_s8  }
   0x9   : > { %p3875_p5 = por %p190_p2, %p189_p0  ;;  %p3879_p6 = por %p196_p4, %p195_p3 }
   0xa   : > { %p3440_p7 = scmp.ge.s32.totalorder %s3737_s27, 1  ;;  %p240_p8 = scmp.lt.s32.totalorder %s3737_s27, 3 }
   0xc   : > { %p241_p9 = pnand %p3440_p7, %p240_p8 }
   0xd   : > { %p272_p10 = scmp.lt.s32.totalorder (!%p241_p9), %s3858_s28, 1  ;;  %v3739_v0 = vmov (!%p241_p9), 0.0   ;;  %v3740_v1 = vmov (!%p241_p9), 0   ;;  %v283_v2 = vld [vmem:[%s5563_s2] sm:$0xff] (!%p241_p9)  ;;  %vm295_vm0 = vcmask (!%p241_p9), 1043456   ;;  %vm291_vm1 = vcmask (!%p241_p9), 31744  }
   0xe   : > { %244 = sbr.rel (%p241_p9) target bundleno = 1753 (0x6d9), region = 48  ;;  %364 = vmatprep.mubr.f32.mxu0 (!%p241_p9), %v3739_v0  ;;  %277 = vst [vmem:[#allocation2] sm:$0xff] (!%p241_p9), %v3739_v0  ;;  %278 = vst [vmem:[#allocation2 + $0x8] sm:$0xff] (!%p241_p9), %v3739_v0  ;;  %3672 = vset.pattern.permute.xlu0 (!%p241_p9), %v3740_v1  ;;  %v282_v5 = vld [vmem:[%s5562_s1] sm:$0xff] (!%p241_p9)  ;;  %vm279_vm2 = vcmask (!%p241_p9), 867328   ;;  %s3741_s22 = smov (!%p241_p9), 50  }
   0xf   : > { %286 = vperm.xlu0 (!%p241_p9), %3672, %v283_v2   ;;  %764 = vmatprep.mubr.f32.mxu1 (!%p241_p9), %v3739_v0  ;;  %s3742_s23 = smov (!%p241_p9), 48   ;;  %280 = vst.msk [vmem:[#allocation2 + $0x10] sm:$0xff] (!%p241_p9), %vm279_vm2, %v3739_v0  ;;  %s3743_s29 = smov (!%p241_p9), 52   ;;  %vm413_vm3 = vcmask (!%p241_p9), 130048   ;;  %vm420_vm4 = vcmask (!%p241_p9), 277648   ;;  %vm427_vm5 = vcmask (!%p241_p9), 425248  }
  0x10   : > { %3673 = vset.pattern.permute.xlu1 (!%p241_p9), %v3740_v1  ;;  %s3744_s8 = smov (!%p241_p9), 40   ;;  %s3745_s9 = smov (!%p241_p9), 38   ;;  %vm378_vm6 = vcmask (!%p241_p9), 441648   ;;  %vm385_vm7 = vcmask (!%p241_p9), 589248   ;;  %vm392_vm8 = vcmask (!%p241_p9), 736848   ;;  %vm434_vm9 = vcmask (!%p241_p9), 572848  }
  0x11   : > { %s3746_s13 = smov (!%p241_p9), 44   ;;  %s3747_s14 = smov (!%p241_p9), 42   ;;  %vm399_vm10 = vcmask (!%p241_p9), 884448   ;;  %vm464_vm11 = vcmask (!%p241_p9), 113664   ;;  %vm5569_vm12 = vcmask (!%p241_p9), 720448   ;;  %vm5576_vm13 = vcmask (!%p241_p9), 868048  }
  0x12   : > { %s3750_s17 = smov (!%p241_p9), 56   ;;  %s3751_s18 = smov (!%p241_p9), 58   ;;  %vm5570_vm14 = vcmask (!%p241_p9), 261248   ;;  %vm5573_vm15 = vcmask (!%p241_p9), 408848   ;;  %vm5571_vm2 = vcmask (!%p241_p9), 556448   ;;  %v3757_v27 = vmov (!%p241_p9), 0.0|0.0  }
  0x13   : > { %s3753_s20 = smov (!%p241_p9), 66   ;;  %s3754_s21 = smov (!%p241_p9), 60   ;;  %v690_v31 = vld [vmem:[%s5565_s4] sm:$0xff] (!%p241_p9) }
  0x15   : > { %s273_s15 = scalar_select %p272_p10, %s3858_s28, 1 }
  0x17   : > { %s3456_s16 = sshll.u32 %s273_s15, 3  ;;  %s3748_s15 = smov 54  }
  0x18   : > { %s276_s19 = scalar_lea.vmem %s5561_s0, %s3456_s16  ;;  %s3749_s16 = smov 62  }
  0x19   : > { %v281_v3 = vld [vmem:[%s276_s19] sm:$0xff]  ;;  %s3752_s19 = smov 64  }
  0x1a   : > { %v290_v4 = vcombine.high %v281_v3, %v281_v3 }
  0x1c   : > { %3444 = vmatprep.subr.msk.mxu0 %vm295_vm0, %v290_v4 }
  0x1d   : > { %3445 = vmatpush1.msk.msra.mxu0 %vm295_vm0, %v281_v3  ;;  %vm5575_vm0 = vcmask 1015648  }
  0x1e   : > { %3446 = vmatmul.mubr.msk.f32.vlgmr.msra.gmra.mrb[0].mxu0 %vm291_vm1, %v282_v5  ;;  %vm5574_vm1 = vcmask 1048560   ;;  %3536 = vmatprep.subr.bf16.mxu0 %v3757_v27 }
  0x8e   : > { %v287_v6 = vpop.permute.xlu0 %286 }
  0xf1   : > { %v366_v7 = vpop.f32.mrb[0].mxu0 }
  0xf2   : > { %v3900_v8 = vadd.f32 %v366_v7, %v287_v6  ;;  %v368_v9 = vpop.f32.mrb[1].mxu0 }
  0xf3   : > { %v3909_v10 = vadd.f32 %v368_v9, %v287_v6 }
  0xf4   : > { %417 = vrot.lane.b32.xlu1 %v3900_v8, %s3741_s22  ;;  %410 = vrot.lane.b32.xlu0 %v3900_v8, %s3742_s23  ;;  %s3755_s22 = smov 68   ;;  %s3756_s23 = smov 46  }
  0xf8   : > { %424 = vrot.lane.b32.xlu1 %v3900_v8, %s3743_s29  ;;  %382 = vrot.lane.b32.xlu0 %v3900_v8, %s3744_s8  ;;  %s3758_s29 = smov 127   ;;  %s3759_s8 = smov 126  }
  0xfc   : > { %375 = vrot.lane.b32.xlu1 %v3900_v8, %s3745_s9  ;;  %396 = vrot.lane.b32.xlu0 %v3900_v8, %s3746_s13  ;;  %s3760_s9 = smov 109   ;;  %s3761_s13 = smov 110  }
 0x100   : > { %389 = vrot.lane.b32.xlu1 %v3900_v8, %s3747_s14  ;;  %431 = vrot.lane.b32.xlu0 %v3909_v10, %s3748_s15  ;;  %s3762_s14 = smov 92   ;;  %s3763_s15 = smov 108  }
 0x104   : > { %459 = vrot.lane.b32.xlu1 %v3909_v10, %s3749_s16  ;;  %438 = vrot.lane.b32.xlu0 %v3909_v10, %s3750_s17  ;;  %s3764_s16 = smov 91   ;;  %s3766_s17 = smov 90  }
 0x108   : > { %445 = vrot.lane.b32.xlu1 %v3909_v10, %s3751_s18  ;;  %468 = vrot.lane.b32.xlu0 %v3909_v10, %s3752_s19  ;;  %s3770_s19 = smov 27   ;;  %s3779_s18 = smov 41  }
 0x10c   : > { %475 = vrot.lane.b32.xlu1 %v3909_v10, %s3753_s20  ;;  %452 = vrot.lane.b32.xlu0 %v3909_v10, %s3754_s21  ;;  %s3774_s20 = smov 33   ;;  %s3775_s21 = smov 35  }
 0x110   : > { %482 = vrot.lane.b32.xlu1 %v3909_v10, %s3755_s22  ;;  %403 = vrot.lane.b32.xlu0 %v3900_v8, %s3756_s23  ;;  %s3767_s22 = smov 19   ;;  %s3768_s23 = smov 23  }
 0x166   : > { %v418_v11 = vpop.permute.xlu1 %417  ;;  %v411_v12 = vpop.permute.xlu0 %410 }
 0x167   : > { %414 = vst.msk [vmem:[#allocation2 + $0x8] sm:$0xff] %vm413_vm3, %v411_v12 }
 0x168   : > { %421 = vst.msk [vmem:[#allocation2 + $0x8] sm:$0xff] %vm420_vm4, %v418_v11 }
 0x16a   : > { %v425_v13 = vpop.permute.xlu1 %424  ;;  %v383_v14 = vpop.permute.xlu0 %382 }
 0x16b   : > { %428 = vst.msk [vmem:[#allocation2 + $0x8] sm:$0xff] %vm427_vm5, %v425_v13 }
 0x16e   : > { %v376_v15 = vpop.permute.xlu1 %375  ;;  %v397_v16 = vpop.permute.xlu0 %396 }
 0x16f   : > { %379 = vst.msk [vmem:[#allocation2] sm:$0xff] %vm378_vm6, %v376_v15 }
 0x170   : > { %386 = vst.msk [vmem:[#allocation2] sm:$0xff] %vm385_vm7, %v383_v14 }
 0x172   : > { %v390_v17 = vpop.permute.xlu1 %389  ;;  %v432_v18 = vpop.permute.xlu0 %431 }
 0x173   : > { %393 = vst.msk [vmem:[#allocation2] sm:$0xff] %vm392_vm8, %v390_v17 }
 0x174   : > { %435 = vst.msk [vmem:[#allocation2 + $0x8] sm:$0xff] %vm434_vm9, %v432_v18 }
 0x175   : > { %400 = vst.msk [vmem:[#allocation2] sm:$0xff] %vm399_vm10, %v397_v16 }
 0x176   : > { %v460_v19 = vpop.permute.xlu1 %459  ;;  %v439_v20 = vpop.permute.xlu0 %438 }
 0x177   : > { %465 = vst.msk [vmem:[#allocation2 + $0x10] sm:$0xff] %vm464_vm11, %v460_v19 }
 0x178   : > { %442 = vst.msk [vmem:[#allocation2 + $0x8] sm:$0xff] %vm5569_vm12, %v439_v20  ;;  %vm5572_vm12 = vcmask 1032048  }
 0x17a   : > { %v446_v21 = vpop.permute.xlu1 %445  ;;  %v469_v22 = vpop.permute.xlu0 %468 }
 0x17b   : > { %449 = vst.msk [vmem:[#allocation2 + $0x8] sm:$0xff] %vm5576_vm13, %v446_v21  ;;  %vm569_vm13 = vcmask 891904  }
 0x17c   : > { %472 = vst.msk [vmem:[#allocation2 + $0x10] sm:$0xff] %vm5570_vm14, %v469_v22  ;;  %vm492_vm14 = vcmask 556032  }
 0x17e   : > { %v476_v23 = vpop.permute.xlu1 %475  ;;  %v453_v24 = vpop.permute.xlu0 %452 }
 0x17f   : > { %479 = vst.msk [vmem:[#allocation2 + $0x10] sm:$0xff] %vm5573_vm15, %v476_v23  ;;  %vm5577_vm15 = vcmask 1039360  }
 0x180   : > { %456 = vst.msk [vmem:[#allocation2 + $0x8] sm:$0xff] %vm5575_vm0, %v453_v24  ;;  %vm5579_vm0 = vcmask 883712  }
 0x181   : > { %463 = vst.msk [vmem:[#allocation2 + $0x8] sm:$0xff] %vm5574_vm1, %v460_v19  ;;  %vm527_vm1 = vcmask 1031168  }
 0x182   : > { %v483_v25 = vpop.permute.xlu1 %482  ;;  %v404_v26 = vpop.permute.xlu0 %403 }
 0x183   : > { %486 = vst.msk [vmem:[#allocation2 + $0x10] sm:$0xff] %vm5571_vm2, %v483_v25  ;;  %vm3765_vm2 = vmmov 0  }
 0x184   : > { %407 = vst.msk [vmem:[#allocation2] sm:$0xff] %vm5572_vm12, %v404_v26  ;;  %3496 = vmatprep.mubr.msk.f32.mxu0 %vm3765_vm2, %v3739_v0  ;;  %vm5578_vm12 = vcmask 900096  }
 0x188   : > { %v3955_v30 = vld [vmem:[#allocation2 + $0x8] sm:$0xff] }
 0x18a   : > { %v489_v28 = vld [vmem:[#allocation2 + $0x10] sm:$0xff] }
 0x18b   : > { %v3939_v29 = vld [vmem:[#allocation2] sm:$0xff]  ;;  %493 = vst.msk [vmem:[#allocation3 + $0x10] sm:$0xff] %vm492_vm14, %v489_v28  ;;  %504 = vrot.lane.b32.xlu0 %v489_v28, %s3758_s29 }
 0x18c   : > { %500 = vrot.lane.b32.xlu1 %v3939_v29, %s3758_s29 }
 0x18f   : > { %521 = vrot.lane.b32.xlu0 %v3939_v29, %s3759_s8 }
 0x190   : > { %525 = vrot.lane.b32.xlu1 %v489_v28, %s3759_s8 }
 0x192   : > { %v665_v38 = vld [vmem:[#allocation3 + $0x10] sm:$0xff] }
 0x193   : > { %563 = vrot.lane.b32.xlu0 %v3939_v29, %s3760_s9 }
 0x194   : > { %546 = vrot.lane.b32.xlu1 %v489_v28, %s3761_s13 }
 0x197   : > { %605 = vrot.lane.b32.xlu0 %v3939_v29, %s3762_s14 }
 0x198   : > { %542 = vrot.lane.b32.xlu1 %v3939_v29, %s3761_s13 }
 0x19b   : > { %523 = vrot.lane.b32.xlu0 %v3955_v30, %s3759_s8 }
 0x19c   : > { %567 = vrot.lane.b32.xlu1 %v489_v28, %s3760_s9 }
 0x19f   : > { %544 = vrot.lane.b32.xlu0 %v3955_v30, %s3761_s13 }
 0x1a0   : > { %588 = vrot.lane.b32.xlu1 %v489_v28, %s3763_s15 }
 0x1a3   : > { %565 = vrot.lane.b32.xlu0 %v3955_v30, %s3760_s9 }
 0x1a4   : > { %502 = vrot.lane.b32.xlu1 %v3955_v30, %s3758_s29 }
 0x1a7   : > { %586 = vrot.lane.b32.xlu0 %v3955_v30, %s3763_s15 }
 0x1a8   : > { %584 = vrot.lane.b32.xlu1 %v3939_v29, %s3763_s15 }
 0x1ab   : > { %607 = vrot.lane.b32.xlu0 %v3955_v30, %s3762_s14 }
 0x1ac   : > { %609 = vrot.lane.b32.xlu1 %v489_v28, %s3762_s14 }
 0x1af   : > { %628 = vrot.lane.b32.xlu0 %v3955_v30, %s3764_s16 }
 0x1b0   : > { %630 = vrot.lane.b32.xlu1 %v489_v28, %s3764_s16 }
 0x1b3   : > { %649 = vrot.lane.b32.xlu0 %v3955_v30, %s3766_s17 }
 0x1b4   : > { %626 = vrot.lane.b32.xlu1 %v3939_v29, %s3764_s16 }
 0x1b7   : > { %647 = vrot.lane.b32.xlu0 %v3939_v29, %s3766_s17 }
 0x1b8   : > { %651 = vrot.lane.b32.xlu1 %v489_v28, %s3766_s17 }
 0x1bc   : > { %693 = vperm.xlu1 %3673, %v690_v31   ;;  %v662_v31 = vld [vmem:[%s5564_s3] sm:$0xff] }
 0x1fd   : > { %v505_v33 = vpop.permute.xlu0 %504 }
 0x1fe   : > { %v501_v32 = vpop.permute.xlu1 %500  ;;  %514 = vst.msk [vmem:[#allocation3 + $0x28] sm:$0xff] %vm492_vm14, %v505_v33 }
 0x201   : > { %v522_v35 = vpop.permute.xlu0 %521 }
 0x202   : > { %v526_v34 = vpop.permute.xlu1 %525 }
 0x203   : > { %535 = vst.msk [vmem:[#allocation3 + $0x40] sm:$0xff] %vm492_vm14, %v526_v34 }
 0x205   : > { %v564_v37 = vpop.permute.xlu0 %563  ;;  %v668_v39 = vld [vmem:[#allocation3 + $0x28] sm:$0xff] }
 0x206   : > { %v547_v36 = vpop.permute.xlu1 %546  ;;  %v3537_v40 = vpack.c.bf16 %v668_v39, %v665_v38 }
 0x207   : > { %556 = vst.msk [vmem:[#allocation3 + $0x58] sm:$0xff] %vm492_vm14, %v547_v36 }
 0x208   : > { %3538 = vmatpush3.bf16.msra.mxu0 %v3537_v40 }
 0x209   : > { %v3992_v42 = vpop.permute.xlu0 %605  ;;  %3539 = vmatprep.subr.bf16.mxu0 %v3757_v27 }
 0x20a   : > { %v543_v41 = vpop.permute.xlu1 %542  ;;  %v671_v45 = vld [vmem:[#allocation3 + $0x40] sm:$0xff] }
 0x20d   : > { %v524_v44 = vpop.permute.xlu0 %523 }
 0x20e   : > { %v568_v43 = vpop.permute.xlu1 %567  ;;  %v674_v46 = vld [vmem:[#allocation3 + $0x58] sm:$0xff]  ;;  %v529_v57 = vsel %vm527_vm1, %v524_v44, %v526_v34  ;;  %v528_v3 = vsel %vm527_vm1, %v522_v35, %v524_v44 }
 0x20f   : > { %577 = vst.msk [vmem:[#allocation3 + $0x70] sm:$0xff] %vm492_vm14, %v568_v43  ;;  %v3540_v47 = vpack.c.bf16 %v674_v46, %v671_v45 }
 0x211   : > { %3541 = vmatpush3.bf16.msra.mxu0 %v3540_v47  ;;  %v545_v49 = vpop.permute.xlu0 %544 }
 0x212   : > { %v589_v48 = vpop.permute.xlu1 %588  ;;  %3542 = vmatprep.subr.bf16.mxu0 %v3757_v27  ;;  %v550_v52 = vsel %vm5578_vm12, %v545_v49, %v547_v36  ;;  %v549_v58 = vsel %vm5578_vm12, %v543_v41, %v545_v49  ;;  %vm632_vm12 = vcmask 744448  }
 0x213   : > { %598 = vst.msk [vmem:[#allocation3 + $0x88] sm:$0xff] %vm492_vm14, %v589_v48  ;;  %v3524_v63 = vpack.c.bf16 %v550_v52, %v529_v57  ;;  %v3526_v5 = vpack.c.bf16 %v549_v58, %v528_v3 }
 0x215   : > { %v566_v51 = vpop.permute.xlu0 %565 }
 0x216   : > { %v503_v50 = vpop.permute.xlu1 %502  ;;  %v677_v61 = vld [vmem:[#allocation3 + $0x70] sm:$0xff]  ;;  %v571_v4 = vsel %vm569_vm13, %v566_v51, %v568_v43  ;;  %v570_v12 = vsel %vm569_vm13, %v564_v37, %v566_v51 }
 0x217   : > { %v507_v53 = vsel %vm5577_vm15, %v501_v32, %v503_v50  ;;  %v508_v54 = vsel %vm5577_vm15, %v503_v50, %v505_v33  ;;  %vm5580_vm15 = vcmask 752640  }
 0x218   : > { %v3520_v55 = vpack.c.bf16 %v508_v54, %v3955_v30  ;;  %v3522_v56 = vpack.c.bf16 %v507_v53, %v3939_v29 }
 0x219   : > { %v587_v60 = vpop.permute.xlu0 %586 }
 0x21a   : > { %v585_v59 = vpop.permute.xlu1 %584  ;;  %v680_v62 = vld [vmem:[#allocation3 + $0x88] sm:$0xff]  ;;  %3521 = vmatprep.subr.bf16.mxu1 %v3520_v55  ;;  %v592_v1 = vsel %vm5579_vm0, %v587_v60, %v589_v48 }
 0x21b   : > { %v3543_v2 = vpack.c.bf16 %v680_v62, %v677_v61  ;;  %3523 = vmatpush1.bf16.msra.mxu1 %v3522_v56  ;;  %v591_v6 = vsel %vm5579_vm0, %v585_v59, %v587_v60  ;;  %v3528_v11 = vpack.c.bf16 %v592_v1, %v571_v4  ;;  %vm653_vm0 = vcmask 736256  }
 0x21c   : > { %3525 = vmatprep.subr.bf16.mxu1 %v3524_v63  ;;  %v3530_v13 = vpack.c.bf16 %v591_v6, %v570_v12  ;;  %v1149_v6 = vld [vmem:[%s5567_s6] sm:$0xff] }
 0x21d   : > { %3544 = vmatpush3.bf16.msra.mxu0 %v3543_v2  ;;  %v608_v9 = vpop.permute.xlu0 %607 }
 0x21e   : > { %v610_v7 = vpop.permute.xlu1 %609  ;;  %3545 = vmatprep.subr.bf16.mxu0 %v3757_v27  ;;  %v612_v21 = vsel %vm5580_vm15, %v3992_v42, %v608_v9 }
 0x21f   : > { %619 = vst.msk [vmem:[#allocation3 + $0xa0] sm:$0xff] %vm492_vm14, %v610_v7  ;;  %3527 = vmatpush1.bf16.msra.mxu1 %v3526_v5  ;;  %v613_v16 = vsel %vm5580_vm15, %v608_v9, %v610_v7  ;;  %vm696_vm15 = vcmask 588800  }
 0x220   : > { %3529 = vmatprep.subr.bf16.mxu1 %v3528_v11 }
 0x221   : > { %v629_v15 = vpop.permute.xlu0 %628 }
 0x222   : > { %v631_v14 = vpop.permute.xlu1 %630 }
 0x223   : > { %640 = vst.msk [vmem:[#allocation3 + $0xb8] sm:$0xff] %vm492_vm14, %v631_v14  ;;  %v634_v17 = vsel %vm632_vm12, %v629_v15, %v631_v14  ;;  %3531 = vmatpush1.bf16.msra.mxu1 %v3530_v13 }
 0x224   : > { %v3532_v18 = vpack.c.bf16 %v634_v17, %v613_v16 }
 0x225   : > { %v650_v20 = vpop.permute.xlu0 %649 }
 0x226   : > { %v627_v19 = vpop.permute.xlu1 %626  ;;  %3533 = vmatprep.subr.bf16.mxu1 %v3532_v18  ;;  %v683_v26 = vld [vmem:[#allocation3 + $0xa0] sm:$0xff] }
 0x227   : > { %v633_v22 = vsel %vm632_vm12, %v627_v19, %v629_v15 }
 0x228   : > { %v3534_v23 = vpack.c.bf16 %v633_v22, %v612_v21 }
 0x229   : > { %v648_v25 = vpop.permute.xlu0 %647 }
 0x22a   : > { %v652_v24 = vpop.permute.xlu1 %651  ;;  %v686_v28 = vld [vmem:[#allocation3 + $0xb8] sm:$0xff]  ;;  %3535 = vmatpush1.bf16.msra.mxu1 %v3534_v23  ;;  %v654_v32 = vsel %vm653_vm0, %v648_v25, %v650_v20 }
 0x22b   : > { %v655_v29 = vsel %vm653_vm0, %v650_v20, %v652_v24  ;;  %661 = vst.msk [vmem:[#allocation3 + $0xd0] sm:$0xff] %vm492_vm14, %v652_v24  ;;  %v3546_v30 = vpack.c.bf16 %v686_v28, %v683_v26 }
 0x22c   : > { %716 = vmatprep.subr.mxu1 %v655_v29 }
 0x22d   : > { %3547 = vmatpush3.bf16.msra.mxu0 %v3546_v30 }
 0x22e   : > { %3494 = vmatprep.subr.mxu0 %v3739_v0  ;;  %717 = vmatpush1.msra.mxu1 %v654_v32 }
 0x22f   : > { %3447 = vmatmul.mubr.msk.f32.vlgmr.msra.gmra.mrb[0].mxu1 %vm696_vm15, %v662_v31 }
 0x230   : > { %1222 = vmatprep.mubr.f32.mxu1 %v3739_v0 }
 0x232   : > { %v689_v33 = vld [vmem:[#allocation3 + $0xd0] sm:$0xff] }
 0x233   : > { %3495 = vmatpush3.msra.mxu0 %v689_v33 }
 0x234   : > { %3497 = vmatmul.mubr.msk.f32.vlgmr.msra.gmra.mrb[2].mxu0 %vm696_vm15, %v662_v31  ;;  %3564 = vmatprep.subr.bf16.mxu0 %v3757_v27 }
 0x235   : > { %3517 = vmatprep.mubr.msk.f32.mxu0 %vm3765_vm2, %v3739_v0  ;;  %vm891_vm2 = vcmask 154624  }
 0x23b   : > { %v694_v36 = vpop.permute.xlu1 %693 }
 0x302   : > { %v766_v34 = vpop.f32.mrb[0].mxu1 }
 0x303   : > { %v768_v35 = vpop.f32.mrb[1].mxu1  ;;  %v767_v41 = vadd.f32 %v766_v34, %v694_v36 }
 0x304   : > { %v769_v44 = vadd.f32 %v768_v35, %v694_v36 }
 0x305   : > { %v841_v43 = vmax.f32 %v767_v41, 0.0 }
 0x306   : > { %v842_v45 = vmax.f32 %v769_v44, 0.0 }
 0x307   : > { %v837_v37 = vpop.f32.mrb[2].mxu0 }
 0x308   : > { %v838_v38 = vadd.f32 %v837_v37, %v694_v36  ;;  %v3498_v39 = vpop.f32.mrb[3].mxu0 }
 0x30a   : > { %v843_v40 = vmax.f32 %v838_v38, 0.0 }
 0x30c   : > { %846 = vst.msk [vmem:[#allocation5 + $0x10] sm:$0xff] %vm492_vm14, %v843_v40 }
 0x313   : > { %v943_v42 = vld [vmem:[#allocation5 + $0x10] sm:$0xff] }
 0x314   : > { %945 = vrot.lane.b32.xlu0 %v943_v42, %s3767_s22  ;;  %938 = vrot.lane.b32.xlu1 %v943_v42, %s3767_s22 }
 0x318   : > { %887 = vrot.lane.b32.xlu1 %v841_v43, %s3767_s22  ;;  %879 = vrot.lane.b32.xlu0 %v841_v43, %s3767_s22 }
 0x31c   : > { %855 = vrot.lane.b32.xlu0 %v841_v43, %s3767_s22  ;;  %849 = vrot.lane.b32.xlu1 %v841_v43, %s3767_s22 }
 0x320   : > { %861 = vrot.lane.b32.xlu0 %v841_v43, %s3767_s22  ;;  %867 = vrot.lane.b32.xlu1 %v841_v43, %s3767_s22 }
 0x324   : > { %889 = vrot.lane.b32.xlu0 %v842_v45, %s3767_s22  ;;  %897 = vrot.lane.b32.xlu1 %v842_v45, %s3767_s22 }
 0x328   : > { %903 = vrot.lane.b32.xlu0 %v842_v45, %s3767_s22  ;;  %927 = vrot.lane.b32.xlu1 %v842_v45, %s3767_s22 }
 0x32c   : > { %909 = vrot.lane.b32.xlu0 %v842_v45, %s3767_s22  ;;  %915 = vrot.lane.b32.xlu1 %v842_v45, %s3767_s22 }
 0x330   : > { %936 = vrot.lane.b32.xlu0 %v842_v45, %s3767_s22  ;;  %921 = vrot.lane.b32.xlu1 %v842_v45, %s3767_s22 }
 0x334   : > { %951 = vrot.lane.b32.xlu0 %v943_v42, %s3767_s22  ;;  %873 = vrot.lane.b32.xlu1 %v841_v43, %s3767_s22 }
 0x386   : > { %v939_v46 = vpop.permute.xlu1 %938  ;;  %v946_v47 = vpop.permute.xlu0 %945 }
 0x38a   : > { %v888_v48 = vpop.permute.xlu1 %887  ;;  %v880_v49 = vpop.permute.xlu0 %879 }
 0x38b   : > { %882 = vst.msk [vmem:[#allocation2 + $0x8] sm:$0xff] %vm413_vm3, %v880_v49  ;;  %vm5591_vm3 = vcmask 720448  }
 0x38e   : > { %v850_v50 = vpop.permute.xlu1 %849  ;;  %v856_v51 = vpop.permute.xlu0 %855 }
 0x38f   : > { %852 = vst.msk [vmem:[#allocation2] sm:$0xff] %vm378_vm6, %v850_v50  ;;  %vm5592_vm6 = vcmask 868048  }
 0x390   : > { %858 = vst.msk [vmem:[#allocation2] sm:$0xff] %vm385_vm7, %v856_v51  ;;  %vm5593_vm7 = vcmask 1015648  }
 0x392   : > { %v868_v52 = vpop.permute.xlu1 %867  ;;  %v862_v53 = vpop.permute.xlu0 %861 }
 0x393   : > { %864 = vst.msk [vmem:[#allocation2] sm:$0xff] %vm392_vm8, %v862_v53  ;;  %vm5596_vm8 = vcmask 408848  }
 0x394   : > { %870 = vst.msk [vmem:[#allocation2] sm:$0xff] %vm399_vm10, %v868_v52  ;;  %vm5598_vm10 = vcmask 556448  }
 0x396   : > { %v898_v54 = vpop.permute.xlu1 %897  ;;  %v890_v55 = vpop.permute.xlu0 %889 }
 0x397   : > { %v892_v56 = vsel %vm891_vm2, %v888_v48, %v890_v55 }
 0x398   : > { %894 = vst.msk [vmem:[#allocation2 + $0x8] sm:$0xff] %vm420_vm4, %v892_v56  ;;  %vm5594_vm4 = vcmask 1048560  }
 0x399   : > { %900 = vst.msk [vmem:[#allocation2 + $0x8] sm:$0xff] %vm427_vm5, %v898_v54  ;;  %vm5595_vm5 = vcmask 261248  }
 0x39a   : > { %v928_v57 = vpop.permute.xlu1 %927  ;;  %v904_v58 = vpop.permute.xlu0 %903 }
 0x39b   : > { %931 = vst.msk [vmem:[#allocation2 + $0x10] sm:$0xff] %vm464_vm11, %v928_v57  ;;  %vm5599_vm11 = vcmask 900096  }
 0x39c   : > { %906 = vst.msk [vmem:[#allocation2 + $0x8] sm:$0xff] %vm434_vm9, %v904_v58  ;;  %vm5597_vm9 = vcmask 1032048  }
 0x39e   : > { %v916_v59 = vpop.permute.xlu1 %915  ;;  %v910_v60 = vpop.permute.xlu0 %909 }
 0x39f   : > { %912 = vst.msk [vmem:[#allocation2 + $0x8] sm:$0xff] %vm5591_vm3, %v910_v60 }
 0x3a0   : > { %918 = vst.msk [vmem:[#allocation2 + $0x8] sm:$0xff] %vm5592_vm6, %v916_v59  ;;  %vm5603_vm6 = vcmask 752640  }
 0x3a2   : > { %v922_v61 = vpop.permute.xlu1 %921  ;;  %v937_v62 = vpop.permute.xlu0 %936 }
 0x3a3   : > { %924 = vst.msk [vmem:[#allocation2 + $0x8] sm:$0xff] %vm5593_vm7, %v922_v61  ;;  %v940_v63 = vsel %vm891_vm2, %v937_v62, %v939_v46  ;;  %vm5600_vm2 = vmmov %vm5599_vm11 }
 0x3a4   : > { %930 = vst.msk [vmem:[#allocation2 + $0x8] sm:$0xff] %vm5594_vm4, %v928_v57  ;;  %vm5604_vm7 = vmmov %vm5603_vm6  ;;  %v1121_v57 = vld [vmem:[%s5566_s5] sm:$0xff] }
 0x3a5   : > { %942 = vst.msk [vmem:[#allocation2 + $0x10] sm:$0xff] %vm5595_vm5, %v940_v63 }
 0x3a6   : > { %948 = vst.msk [vmem:[#allocation2 + $0x10] sm:$0xff] %vm5596_vm8, %v946_v47  ;;  %v874_v1 = vpop.permute.xlu1 %873  ;;  %v952_v2 = vpop.permute.xlu0 %951 }
 0x3a7   : > { %876 = vst.msk [vmem:[#allocation2] sm:$0xff] %vm5597_vm9, %v874_v1 }
 0x3a8   : > { %954 = vst.msk [vmem:[#allocation2 + $0x10] sm:$0xff] %vm5598_vm10, %v952_v2 }
 0x3ab   : > { %v4069_v3 = vld [vmem:[#allocation2 + $0x8] sm:$0xff] }
 0x3ae   : > { %v4071_v4 = vld [vmem:[#allocation2] sm:$0xff] }
 0x3af   : > { %v957_v5 = vld [vmem:[#allocation2 + $0x10] sm:$0xff]  ;;  %967 = vrot.lane.b32.xlu0 %v4071_v4, %s3758_s29 }
 0x3b0   : > { %960 = vst.msk [vmem:[#allocation3 + $0x10] sm:$0xff] %vm492_vm14, %v957_v5  ;;  %971 = vrot.lane.b32.xlu1 %v957_v5, %s3758_s29 }
 0x3b3   : > { %991 = vrot.lane.b32.xlu0 %v957_v5, %s3759_s8 }
 0x3b4   : > { %987 = vrot.lane.b32.xlu1 %v4071_v4, %s3759_s8 }
 0x3b7   : > { %1011 = vrot.lane.b32.xlu0 %v957_v5, %s3761_s13  ;;  %v1124_v14 = vld [vmem:[#allocation3 + $0x10] sm:$0xff] }
 0x3b8   : > { %1027 = vrot.lane.b32.xlu1 %v4071_v4, %s3760_s9 }
 0x3bb   : > { %1007 = vrot.lane.b32.xlu0 %v4071_v4, %s3761_s13 }
 0x3bc   : > { %1067 = vrot.lane.b32.xlu1 %v4071_v4, %s3762_s14 }
 0x3bf   : > { %1031 = vrot.lane.b32.xlu0 %v957_v5, %s3760_s9 }
 0x3c0   : > { %1107 = vrot.lane.b32.xlu1 %v4071_v4, %s3766_s17 }
 0x3c3   : > { %1051 = vrot.lane.b32.xlu0 %v957_v5, %s3763_s15 }
 0x3c4   : > { %1305 = vrot.lane.b32.xlu1 %v3900_v8, %s3767_s22 }
 0x3c7   : > { %1047 = vrot.lane.b32.xlu0 %v4071_v4, %s3763_s15 }
 0x3c8   : > { %1548 = vrot.lane.b32.xlu1 %v3900_v8, %s3768_s23  ;;  %s3776_s23 = smov 37  }
 0x3cb   : > { %1071 = vrot.lane.b32.xlu0 %v957_v5, %s3762_s14 }
 0x3cc   : > { %989 = vrot.lane.b32.xlu1 %v4069_v3, %s3759_s8  ;;  %s3777_s8 = smov 45  }
 0x3cf   : > { %1091 = vrot.lane.b32.xlu0 %v957_v5, %s3764_s16 }
 0x3d0   : > { %1009 = vrot.lane.b32.xlu1 %v4069_v3, %s3761_s13  ;;  %s3769_s13 = smov 21  }
 0x3d3   : > { %1087 = vrot.lane.b32.xlu0 %v4071_v4, %s3764_s16 }
 0x3d4   : > { %1029 = vrot.lane.b32.xlu1 %v4069_v3, %s3760_s9 }
 0x3d7   : > { %1111 = vrot.lane.b32.xlu0 %v957_v5, %s3766_s17 }
 0x3d8   : > { %1049 = vrot.lane.b32.xlu1 %v4069_v3, %s3763_s15  ;;  %s3771_s15 = smov 25  }
 0x3db   : > { %969 = vrot.lane.b32.xlu0 %v4069_v3, %s3758_s29  ;;  %s3772_s29 = smov 29  }
 0x3dc   : > { %1069 = vrot.lane.b32.xlu1 %v4069_v3, %s3762_s14  ;;  %s3773_s14 = smov 31  }
 0x3df   : > { %1152 = vperm.xlu0 %3672, %v1149_v6  }
 0x3e0   : > { %1089 = vrot.lane.b32.xlu1 %v4069_v3, %s3764_s16 }
 0x3e3   : > { %1427 = vrot.lane.b32.xlu0 %v3900_v8, %s3769_s13 }
 0x3e4   : > { %1790 = vrot.lane.b32.xlu1 %v3900_v8, %s3770_s19  ;;  %s3780_s19 = smov 43  }
 0x3e7   : > { %1669 = vrot.lane.b32.xlu0 %v3900_v8, %s3771_s15  ;;  %s3781_s15 = smov 47  }
 0x3e8   : > { %1109 = vrot.lane.b32.xlu1 %v4069_v3, %s3766_s17  ;;  %s3778_s17 = smov 39  }
 0x3eb   : > { %1911 = vrot.lane.b32.xlu0 %v3900_v8, %s3772_s29  ;;  %s3782_s29 = smov 49  }
 0x3ec   : > { %2033 = vrot.lane.b32.xlu1 %v3900_v8, %s3773_s14  ;;  %s3790_s14 = smov 75  }
 0x3ef   : > { %2214 = vrot.lane.b32.xlu0 %v3900_v8, %s3774_s20  ;;  %s3791_s20 = smov 57  }
 0x3f0   : > { %2335 = vrot.lane.b32.xlu1 %v3909_v10, %s3775_s21  ;;  %s3784_s21 = smov 113  }
 0x3f3   : > { %2456 = vrot.lane.b32.xlu0 %v3909_v10, %s3776_s23 }
 0x3f4   : > { %2941 = vrot.lane.b32.xlu1 %v3909_v10, %s3777_s8  ;;  %s5581_s8 = smov 95  }
 0x3f7   : > { %2577 = vrot.lane.b32.xlu0 %v3909_v10, %s3778_s17 }
 0x3f8   : > { %2698 = vrot.lane.b32.xlu1 %v3909_v10, %s3779_s18  ;;  %s5588_s18 = smov 73  }
 0x3fb   : > { %2819 = vrot.lane.b32.xlu0 %v3909_v10, %s3780_s19  ;;  %s3787_s19 = smov 55  }
 0x3fc   : > { %3122 = vrot.lane.b32.xlu1 %v3909_v10, %s3781_s15  ;;  %s3788_s15 = smov 111  }
 0x3ff   : > { %3243 = vrot.lane.b32.xlu0 %v3909_v10, %s3782_s29  ;;  %s5586_s29 = smov 93  }
 0x421   : > { %v968_v7 = vpop.permute.xlu0 %967 }
 0x422   : > { %v4137_v8 = vpop.permute.xlu1 %971 }
 0x423   : > { %980 = vst.msk [vmem:[#allocation3 + $0x28] sm:$0xff] %vm492_vm14, %v4137_v8 }
 0x425   : > { %v992_v11 = vpop.permute.xlu0 %991 }
 0x426   : > { %v988_v9 = vpop.permute.xlu1 %987  ;;  %1000 = vst.msk [vmem:[#allocation3 + $0x40] sm:$0xff] %vm492_vm14, %v992_v11 }
 0x429   : > { %v1012_v13 = vpop.permute.xlu0 %1011 }
 0x42a   : > { %v1028_v12 = vpop.permute.xlu1 %1027  ;;  %v1127_v15 = vld [vmem:[#allocation3 + $0x28] sm:$0xff]  ;;  %1020 = vst.msk [vmem:[#allocation3 + $0x58] sm:$0xff] %vm492_vm14, %v1012_v13 }
 0x42b   : > { %v3565_v16 = vpack.c.bf16 %v1127_v15, %v1124_v14 }
 0x42d   : > { %3566 = vmatpush3.bf16.msra.mxu0 %v3565_v16  ;;  %v1008_v10 = vpop.permute.xlu0 %1007  ;;  %v1130_v20 = vld [vmem:[#allocation3 + $0x40] sm:$0xff] }
 0x42e   : > { %v1068_v17 = vpop.permute.xlu1 %1067  ;;  %3567 = vmatprep.subr.bf16.mxu0 %v3757_v27 }
 0x431   : > { %v1032_v19 = vpop.permute.xlu0 %1031  ;;  %v1133_v21 = vld [vmem:[#allocation3 + $0x58] sm:$0xff] }
 0x432   : > { %v4144_v18 = vpop.permute.xlu1 %1107  ;;  %1040 = vst.msk [vmem:[#allocation3 + $0x70] sm:$0xff] %vm492_vm14, %v1032_v19  ;;  %v3568_v22 = vpack.c.bf16 %v1133_v21, %v1130_v20  ;;  %v3783_v21 = vmov 1966171168  }
 0x434   : > { %3569 = vmatpush3.bf16.msra.mxu0 %v3568_v22  ;;  %v1312_v22 = vunpack.c.l.s4 %v3783_v21 }
 0x435   : > { %v1052_v24 = vpop.permute.xlu0 %1051  ;;  %3570 = vmatprep.subr.bf16.mxu0 %v3757_v27 }
 0x436   : > { %v4147_v23 = vpop.permute.xlu1 %1305  ;;  %1060 = vst.msk [vmem:[#allocation3 + $0x88] sm:$0xff] %vm492_vm14, %v1052_v24 }
 0x439   : > { %v1048_v26 = vpop.permute.xlu0 %1047  ;;  %v1136_v30 = vld [vmem:[#allocation3 + $0x70] sm:$0xff] }
 0x43a   : > { %v4151_v25 = vpop.permute.xlu1 %1548 }
 0x43d   : > { %v1072_v29 = vpop.permute.xlu0 %1071  ;;  %v1139_v31 = vld [vmem:[#allocation3 + $0x88] sm:$0xff] }
 0x43e   : > { %v990_v28 = vpop.permute.xlu1 %989  ;;  %1080 = vst.msk [vmem:[#allocation3 + $0xa0] sm:$0xff] %vm492_vm14, %v1072_v29  ;;  %v3571_v34 = vpack.c.bf16 %v1139_v31, %v1136_v30 }
 0x43f   : > { %v993_v32 = vsel %vm527_vm1, %v988_v9, %v990_v28  ;;  %v994_v33 = vsel %vm527_vm1, %v990_v28, %v992_v11  ;;  %vm5601_vm1 = vcmask 883712  }
 0x440   : > { %3572 = vmatpush3.bf16.msra.mxu0 %v3571_v34  ;;  %vm5602_vm3 = vmmov %vm5601_vm1 }
 0x441   : > { %v1092_v36 = vpop.permute.xlu0 %1091  ;;  %3573 = vmatprep.subr.bf16.mxu0 %v3757_v27 }
 0x442   : > { %v1010_v35 = vpop.permute.xlu1 %1009  ;;  %1100 = vst.msk [vmem:[#allocation3 + $0xb8] sm:$0xff] %vm492_vm14, %v1092_v36 }
 0x443   : > { %v1013_v37 = vsel %vm5599_vm11, %v1008_v10, %v1010_v35  ;;  %v1014_v38 = vsel %vm5600_vm2, %v1010_v35, %v1012_v13 }
 0x444   : > { %v3554_v62 = vpack.c.bf16 %v1013_v37, %v993_v32 }
 0x445   : > { %v1088_v40 = vpop.permute.xlu0 %1087  ;;  %v1142_v45 = vld [vmem:[#allocation3 + $0xa0] sm:$0xff] }
 0x446   : > { %v1030_v39 = vpop.permute.xlu1 %1029 }
 0x447   : > { %v1033_v41 = vsel %vm569_vm13, %v1028_v12, %v1030_v39  ;;  %v1034_v42 = vsel %vm569_vm13, %v1030_v39, %v1032_v19  ;;  %vm5605_vm13 = vcmask 1039360  }
 0x448   : > { %vm5606_vm4 = vmmov %vm5605_vm13 }
 0x449   : > { %v1112_v44 = vpop.permute.xlu0 %1111  ;;  %v1145_v46 = vld [vmem:[#allocation3 + $0xb8] sm:$0xff] }
 0x44a   : > { %v1050_v43 = vpop.permute.xlu1 %1049  ;;  %1120 = vst.msk [vmem:[#allocation3 + $0xd0] sm:$0xff] %vm492_vm14, %v1112_v44  ;;  %v3574_v48 = vpack.c.bf16 %v1145_v46, %v1142_v45 }
 0x44b   : > { %v1053_v47 = vsel %vm5601_vm1, %v1048_v26, %v1050_v43  ;;  %v1054_v27 = vsel %vm5602_vm3, %v1050_v43, %v1052_v24  ;;  %v1314_v24 = vlaneseq }
 0x44c   : > { %3575 = vmatpush3.bf16.msra.mxu0 %v3574_v48  ;;  %v3556_v1 = vpack.c.bf16 %v1054_v27, %v1034_v42  ;;  %v3558_v2 = vpack.c.bf16 %v1053_v47, %v1033_v41 }
 0x44d   : > { %v970_v50 = vpop.permute.xlu0 %969  ;;  %3515 = vmatprep.subr.mxu0 %v3739_v0  ;;  %v3552_v0 = vpack.c.bf16 %v1014_v38, %v994_v33  ;;  %v4208_v30 = vshrl.u32 %v1314_v24, 7 }
 0x44e   : > { %v1070_v49 = vpop.permute.xlu1 %1069  ;;  %v973_v53 = vsel %vm5605_vm13, %v968_v7, %v970_v50  ;;  %v974_v54 = vsel %vm5606_vm4, %v970_v50, %v4137_v8 }
 0x44f   : > { %v1073_v51 = vsel %vm5603_vm6, %v1068_v17, %v1070_v49  ;;  %v1074_v52 = vsel %vm5604_vm7, %v1070_v49, %v1072_v29  ;;  %v3548_v55 = vpack.c.bf16 %v974_v54, %v4069_v3  ;;  %v3550_v56 = vpack.c.bf16 %v973_v53, %v4071_v4 }
 0x450   : > { %v1313_v29 = vunpack.c.0.s8 %v1312_v22  ;;  %v4218_v37 = vsub.s32 0, %v4208_v30 }
 0x451   : > { %v1148_v59 = vld [vmem:[#allocation3 + $0xd0] sm:$0xff]  ;;  %3549 = vmatprep.subr.bf16.mxu1 %v3548_v55 }
 0x452   : > { %v1090_v58 = vpop.permute.xlu1 %1089  ;;  %3516 = vmatpush3.msra.mxu0 %v1148_v59  ;;  %3551 = vmatpush1.bf16.msra.mxu1 %v3550_v56  ;;  %v4211_v31 = vsub.s32 %v1313_v29, %v4208_v30 }
 0x453   : > { %v1093_v60 = vsel %vm632_vm12, %v1088_v40, %v1090_v58  ;;  %v1094_v61 = vsel %vm632_vm12, %v1090_v58, %v1092_v36  ;;  %3518 = vmatmul.mubr.msk.f32.vlgmr.msra.gmra.mrb[4].mxu0 %vm696_vm15, %v1121_v57  ;;  %3553 = vmatprep.subr.bf16.mxu1 %v3552_v0  ;;  %vm1415_vm12 = vcmask 122880  }
 0x454   : > { %v3560_v4 = vpack.c.bf16 %v1094_v61, %v1074_v52  ;;  %v3562_v8 = vpack.c.bf16 %v1093_v60, %v1073_v51 }
 0x456   : > { %v4179_v63 = vpop.permute.xlu1 %1790  ;;  %3555 = vmatpush1.bf16.msra.mxu1 %v3554_v62 }
 0x457   : > { %3557 = vmatprep.subr.bf16.mxu1 %v3556_v1 }
 0x45a   : > { %v1110_v3 = vpop.permute.xlu1 %1109  ;;  %3559 = vmatpush1.bf16.msra.mxu1 %v3558_v2 }
 0x45b   : > { %v1113_v5 = vsel %vm653_vm0, %v4144_v18, %v1110_v3  ;;  %v1114_v6 = vsel %vm653_vm0, %v1110_v3, %v1112_v44  ;;  %3561 = vmatprep.subr.bf16.mxu1 %v3560_v4 }
 0x45e   : > { %3563 = vmatpush1.bf16.msra.mxu1 %v3562_v8  ;;  %v1153_v7 = vpop.permute.xlu0 %1152  ;;  %v4191_v13 = vpop.permute.xlu1 %2033 }
 0x45f   : > { %1174 = vmatprep.subr.mxu1 %v1114_v6 }
 0x462   : > { %1175 = vmatpush1.msra.mxu1 %v1113_v5  ;;  %v4185_v9 = vpop.permute.xlu0 %1427  ;;  %v4195_v15 = vpop.permute.xlu1 %2335 }
 0x463   : > { %3449 = vmatmul.mubr.msk.f32.vlgmr.msra.gmra.mrb[2].mxu1 %vm696_vm15, %v1121_v57  ;;  %vm3094_vm15 = vcmask 23552  }
 0x466   : > { %v4187_v11 = vpop.permute.xlu0 %1669  ;;  %v4199_v17 = vpop.permute.xlu1 %2941 }
 0x46a   : > { %v4189_v12 = vpop.permute.xlu0 %1911  ;;  %v4204_v26 = vpop.permute.xlu1 %2698 }
 0x46e   : > { %v4193_v14 = vpop.permute.xlu0 %2214  ;;  %v3123_v32 = vpop.permute.xlu1 %3122 }
 0x472   : > { %v4197_v16 = vpop.permute.xlu0 %2456 }
 0x476   : > { %v4201_v10 = vpop.permute.xlu0 %2577 }
 0x47a   : > { %v4206_v28 = vpop.permute.xlu0 %2819 }
 0x47e   : > { %v3244_v33 = vpop.permute.xlu0 %3243 }
 0x526   : > { %v1295_v18 = vpop.f32.mrb[4].mxu0 }
 0x527   : > { %v1296_v19 = vadd.f32 %v1295_v18, %v1153_v7  ;;  %v3519_v20 = vpop.f32.mrb[5].mxu0 }
 0x529   : > { %1301 = vst.msk [vmem:[#allocation5 + $0x10] sm:$0xff] %vm492_vm14, %v1296_v19  ;;  %vm2186_vm14 = vcmask 7168  }
 0x530   : > { %v4213_v34 = vld [vmem:[#allocation5 + $0x10] sm:$0xff] }
 0x531   : > { %v3125_v35 = vadd.f32 %v3123_v32, %v4213_v34  ;;  %v3246_v36 = vadd.f32 %v3244_v33, %v4213_v34 }
 0x533   : > { %v3134_v38 = vrot.slane %v3125_v35, %v4211_v31  ;;  %v3255_v39 = vrot.slane %v3246_v36, %v4211_v31  ;;  %v3127_v43 = vcombine.high %v3125_v35, %v3125_v35  ;;  %v3248_v58 = vcombine.high %v3246_v36, %v3246_v36 }
 0x535   : > { %v3150_v40 = vrot.slane %v3134_v38, %v4211_v31  ;;  %v3142_v41 = vcombine.high %v3134_v38, %v3134_v38  ;;  %v3263_v42 = vcombine.high %v3255_v39, %v3255_v39  ;;  %v3271_v47 = vrot.slane %v3255_v39, %v4211_v31 }
 0x536   : > { %v1224_v44 = vpop.f32.mrb[2].mxu1  ;;  %v3141_v52 = vrot.slane %v3127_v43, %v4211_v31  ;;  %v3262_v62 = vrot.slane %v3248_v58, %v4211_v31 }
 0x537   : > { %v3179_v45 = vrot.slane %v3150_v40, %v4218_v37  ;;  %v3164_v46 = vrot.slane %v3142_v41, %v4211_v31  ;;  %v4226_v27 = vadd.f32 %v1224_v44, %v1153_v7  ;;  %v1226_v48 = vpop.f32.mrb[3].mxu1  ;;  %v3285_v51 = vrot.slane %v3263_v42, %v4211_v31 }
 0x538   : > { %v4228_v49 = vadd.f32 %v1226_v48, %v1153_v7  ;;  %v3300_v53 = vrot.slane %v3271_v47, %v4218_v37  ;;  %v3172_v54 = vcombine.high %v3150_v40, %v3150_v40  ;;  %v3143_v57 = vcombine.high %v3141_v52, %v3141_v52 }
 0x539   : > { %3208 = vrot.lane.b32.xlu1 %v3179_v45, %s3784_s21  ;;  %v3183_v50 = vrot.slane %v3164_v46, %v4218_v37  ;;  %v3304_v55 = vrot.slane %v3285_v51, %v4218_v37  ;;  %v3174_v56 = vcombine.high %v3164_v46, %v3164_v46  ;;  %v3157_v0 = vrot.slane %v3141_v52, %v4211_v31 }
 0x53a   : > { %v3187_v59 = vrot.slane %v3172_v54, %v4218_v37  ;;  %v4244_v61 = vrot.slane %v3143_v57, %v4211_v31  ;;  %v3293_v2 = vcombine.high %v3271_v47, %v3271_v47  ;;  %v3295_v4 = vcombine.high %v3285_v51, %v3285_v51 }
 0x53b   : > { %3210 = vrot.lane.b32.xlu0 %v3183_v50, %s3784_s21  ;;  %v3191_v60 = vrot.slane %v3174_v56, %v4218_v37  ;;  %v3195_v1 = vrot.slane %v3157_v0, %v4218_v37  ;;  %v3264_v5 = vcombine.high %v3262_v62, %v3262_v62  ;;  %v4254_v6 = vadd.f32 %v4147_v23, %v4226_v27 }
 0x53c   : > { %v3199_v3 = vrot.slane %v4244_v61, %v4218_v37  ;;  %v3308_v8 = vrot.slane %v3293_v2, %v4218_v37  ;;  %v4259_v7 = vrot.slane %v3262_v62, %v4211_v31  ;;  %v4263_v18 = vadd.f32 %v4185_v9, %v4226_v27 }
 0x53d   : > { %3329 = vrot.lane.b32.xlu1 %v3300_v53, %s5581_s8  ;;  %v3312_v19 = vrot.slane %v3295_v4, %v4218_v37  ;;  %v4268_v20 = vrot.slane %v3264_v5, %v4211_v31  ;;  %v4272_v23 = vrot.slane %v4254_v6, %v4211_v31  ;;  %v4276_v21 = vadd.f32 %v4151_v25, %v4226_v27 }
 0x53e   : > { %v3316_v9 = vrot.slane %v4259_v7, %v4218_v37  ;;  %v3173_v22 = vcombine.high %v3157_v0, %v3157_v0  ;;  %v4283_v24 = vrot.slane %v4263_v18, %v4211_v31  ;;  %v4287_v29 = vadd.f32 %v4187_v11, %v4226_v27 }
 0x53f   : > { %3331 = vrot.lane.b32.xlu0 %v3304_v55, %s5581_s8  ;;  %v3320_v25 = vrot.slane %v4268_v20, %v4218_v37  ;;  %v4294_v32 = vrot.slane %v4272_v23, %v4211_v31  ;;  %v4298_v33 = vrot.slane %v4276_v21, %v4211_v31  ;;  %v4302_v35 = vadd.f32 %v4179_v63, %v4226_v27 }
 0x540   : > { %v4306_v11 = vadd.f32 %v4189_v12, %v4226_v27  ;;  %v3203_v36 = vrot.slane %v3173_v22, %v4218_v37  ;;  %v4312_v38 = vrot.slane %v4283_v24, %v4211_v31  ;;  %v4316_v39 = vrot.slane %v4287_v29, %v4211_v31 }
 0x541   : > { %3212 = vrot.lane.b32.xlu1 %v3187_v59, %s3784_s21  ;;  %v1362_v63 = vrot.slane %v4294_v32, %v4218_v37  ;;  %v4323_v12 = vrot.slane %v4298_v33, %v4211_v31  ;;  %v4327_v40 = vrot.slane %v4302_v35, %v4211_v31  ;;  %v4342_v44 = vadd.f32 %v4193_v14, %v4228_v49 }
 0x542   : > { %v4331_v41 = vrot.slane %v4306_v11, %v4211_v31  ;;  %v1484_v42 = vrot.slane %v4312_v38, %v4218_v37  ;;  %v4338_v43 = vrot.slane %v4316_v39, %v4211_v31  ;;  %v2036_v45 = vadd.f32 %v4191_v13, %v4226_v27 }
 0x543   : > { %3214 = vrot.lane.b32.xlu0 %v3191_v60, %s3784_s21  ;;  %v2037_v46 = vadd.f32 %v4191_v13, %v4228_v49  ;;  %v1605_v47 = vrot.slane %v4323_v12, %v4218_v37  ;;  %v4353_v48 = vrot.slane %v4327_v40, %v4211_v31  ;;  %v4357_v50 = vadd.f32 %v4195_v15, %v4228_v49 }
 0x544   : > { %v1726_v13 = vrot.slane %v4338_v43, %v4218_v37  ;;  %v4364_v27 = vrot.slane %v4331_v41, %v4211_v31  ;;  %v4368_v52 = vrot.slane %v4342_v44, %v4211_v31  ;;  %v4372_v15 = vadd.f32 %v4197_v16, %v4228_v49 }
 0x545   : > { %3216 = vrot.lane.b32.xlu1 %v3195_v1, %s3784_s21  ;;  %v2040_v14 = vcombine.low %v2036_v45, %v2037_v46  ;;  %v2041_v51 = vcombine.high %v2036_v45, %v2037_v46  ;;  %v4381_v55 = vsub.s32 1, %v4208_v30  ;;  %v1847_v56 = vrot.slane %v4353_v48, %v4218_v37 }
 0x546   : > { %v3175_v57 = vcombine.high %v4244_v61, %v4244_v61  ;;  %v4390_v16 = vrot.slane %v4357_v50, %v4211_v31  ;;  %v4394_v58 = vadd.f32 %v4201_v10, %v4228_v49  ;;  %v1968_v0 = vrot.slane %v4364_v27, %v4218_v37 }
 0x547   : > { %3218 = vrot.lane.b32.xlu0 %v3199_v3, %s3784_s21  ;;  %v4375_v53 = vrot.slane %v2040_v14, %v4211_v31  ;;  %v4378_v54 = vrot.slane %v2041_v51, %v4211_v31  ;;  %v4409_v60 = vrot.slane %v4368_v52, %v4211_v31  ;;  %v4413_v10 = vrot.slane %v4372_v15, %v4211_v31 }
 0x548   : > { %v3207_v62 = vrot.slane %v3175_v57, %v4218_v37  ;;  %v4421_v1 = vrot.slane %v4390_v16, %v4211_v31  ;;  %v1310_v2 = vcombine.high %v4254_v6, %v4254_v6  ;;  %v4429_v4 = vrot.slane %v4394_v58, %v4211_v31 }
 0x549   : > { %3333 = vrot.lane.b32.xlu1 %v3308_v8, %s5581_s8  ;;  %v4398_v30 = vrot.slane %v4375_v53, %v4211_v31  ;;  %v4402_v59 = vrot.slane %v4378_v54, %v4211_v31  ;;  %v2271_v5 = vrot.slane %v4409_v60, %v4218_v37  ;;  %v4436_v8 = vrot.slane %v4413_v10, %v4211_v31 }
 0x54a   : > { %v2945_v6 = vadd.f32 %v4213_v34, %v4199_v17  ;;  %v1355_v22 = vcombine.high %v4294_v32, %v4294_v32  ;;  %v4467_v32 = vadd.f32 %v4206_v28, %v4228_v49 }
 0x54b   : > { %3335 = vrot.lane.b32.xlu0 %v3312_v19, %s5581_s8  ;;  %v4440_v19 = vadd.f32 %v4204_v26, %v4228_v49  ;;  %v4456_v26 = vrot.slane %v4429_v4, %v4211_v31  ;;  %v2513_v34 = vrot.slane %v4436_v8, %v4218_v37 }
 0x54c   : > { %v1370_v45 = vrot.slane %v1355_v22, %v4218_v37  ;;  %v1325_v22 = vcombine.high %v4272_v23, %v4272_v23  ;;  %v1432_v23 = vcombine.high %v4263_v18, %v4263_v18  ;;  %v1477_v18 = vcombine.high %v4312_v38, %v4312_v38 }
 0x54d   : > { %3337 = vrot.lane.b32.xlu1 %v3316_v9, %s5581_s8  ;;  %v2392_v9 = vrot.slane %v4421_v1, %v4218_v37  ;;  %v4572_v38 = vcombine.high %v4398_v30, %v4398_v30 }
 0x54f   : > { %3339 = vrot.lane.b32.xlu0 %v3320_v25, %s5581_s8  ;;  %v4450_v25 = vrot.slane %v1310_v2, %v4211_v31  ;;  %s5585_s8 = sand.u32 1, %s3729_s25  }
 0x551   : > { %3220 = vrot.lane.b32.xlu1 %v3203_v36, %s3784_s21  ;;  %v2944_v36 = vadd.f32 %v4199_v17, %v4228_v49  ;;  %v4473_v46 = vrot.slane %v4450_v25, %v4211_v31  ;;  %v2634_v49 = vrot.slane %v4456_v26, %v4218_v37 }
 0x553   : > { %1391 = vrot.lane.b32.xlu0 %v1362_v63, %s3760_s9  ;;  %v4463_v63 = vrot.slane %v4440_v19, %v4211_v31  ;;  %v2949_v17 = vcombine.high %v2944_v36, %v2945_v6  ;;  %v1378_v57 = vrot.slane %v4473_v46, %v4218_v37 }
 0x555   : > { %1513 = vrot.lane.b32.xlu1 %v1484_v42, %s3764_s16  ;;  %v2948_v42 = vcombine.low %v2944_v36, %v2945_v6  ;;  %v4481_v28 = vrot.slane %v2949_v17, %v4211_v31  ;;  %v4488_v51 = vrot.slane %v4463_v63, %v4211_v31  ;;  %v1598_v36 = vcombine.high %v4323_v12, %v4323_v12 }
 0x556   : > { %v4535_v17 = vrot.slane %v1325_v22, %v4211_v31  ;;  %v1795_v22 = vcombine.high %v4302_v35, %v4302_v35 }
 0x557   : > { %1634 = vrot.lane.b32.xlu0 %v1605_v47, %s5588_s18  ;;  %v1447_v47 = vcombine.high %v4283_v24, %v4283_v24  ;;  %v4478_v14 = vrot.slane %v2948_v42, %v4211_v31  ;;  %v2755_v6 = vrot.slane %v4488_v51, %v4218_v37  ;;  %v1613_v12 = vrot.slane %v1598_v36, %v4218_v37 }
 0x559   : > { %1755 = vrot.lane.b32.xlu1 %v1726_v13, %s3787_s19  ;;  %v4492_v13 = vrot.slane %v4467_v32, %v4211_v31  ;;  %v4496_v24 = vrot.slane %v4478_v14, %v4211_v31 }
 0x55b   : > { %1876 = vrot.lane.b32.xlu0 %v1847_v56, %s3776_s23  ;;  %v4500_v56 = vrot.slane %v4481_v28, %v4211_v31 }
 0x55d   : > { %1997 = vrot.lane.b32.xlu1 %v1968_v0, %s3767_s22  ;;  %v4506_v0 = vrot.slane %v1447_v47, %v4211_v31 }
 0x55f   : > { %3222 = vrot.lane.b32.xlu0 %v3207_v62, %s3784_s21  ;;  %v1553_v62 = vcombine.high %v4276_v21, %v4276_v21  ;;  %v1488_v21 = vrot.slane %v4506_v0, %v4218_v37  ;;  %s5583_s21 = smov 1  }
 0x561   : > { %2300 = vrot.lane.b32.xlu1 %v2271_v5, %s3788_s15 }
 0x563   : > { %2421 = vrot.lane.b32.xlu0 %v2392_v9, %s5586_s29  ;;  %v4519_v9 = vrot.slane %v4492_v13, %v4211_v31 }
 0x565   : > { %2542 = vrot.lane.b32.xlu1 %v2513_v34, %s3790_s14  ;;  %v4529_v34 = vrot.slane %v1553_v62, %v4211_v31  ;;  %v2876_v42 = vrot.slane %v4519_v9, %v4218_v37  ;;  %v2057_v62 = vcombine.high %v4378_v54, %v4378_v54  ;;  %v1492_v54 = vrot.slane %v1477_v18, %v4218_v37 }
 0x567   : > { %1395 = vrot.lane.b32.xlu0 %v1370_v45, %s3760_s9  ;;  %v1689_v45 = vcombine.high %v4316_v39, %v4316_v39  ;;  %v4545_v47 = vrot.slane %v4529_v34, %v4211_v31  ;;  %v4555_v39 = vrot.slane %v1432_v23, %v4211_v31  ;;  %v4583_v35 = vrot.slane %v2057_v62, %v4211_v31 }
 0x568   : > { %v1840_v23 = vcombine.high %v4353_v48, %v4353_v48  ;;  %v1674_v62 = vcombine.high %v4287_v29, %v4287_v29 }
 0x569   : > { %2663 = vrot.lane.b32.xlu1 %v2634_v49, %s3791_s20  ;;  %v2056_v49 = vcombine.high %v4375_v53, %v4375_v53  ;;  %v1621_v53 = vrot.slane %v4545_v47, %v4218_v37  ;;  %v4578_v36 = vrot.slane %v4555_v39, %v4211_v31 }
 0x56b   : > { %1399 = vrot.lane.b32.xlu0 %v1378_v57, %s3760_s9  ;;  %v1366_v57 = vrot.slane %v4535_v17, %v4218_v37  ;;  %v1500_v48 = vrot.slane %v4578_v36, %v4218_v37 }
 0x56d   : > { %2784 = vrot.lane.b32.xlu1 %v2755_v6, %s3778_s17  ;;  %v4560_v6 = vrot.slane %v1689_v45, %v4211_v31  ;;  %v4589_v45 = vcombine.high %v4402_v59, %v4402_v59 }
 0x56f   : > { %1515 = vrot.lane.b32.xlu0 %v1488_v21, %s3764_s16  ;;  %v4568_v21 = vrot.slane %v2056_v49, %v4211_v31  ;;  %v4595_v49 = vrot.slane %v1795_v22, %v4211_v31  ;;  %v4627_v22 = vrot.slane %v1674_v62, %v4211_v31 }
 0x571   : > { %2905 = vrot.lane.b32.xlu1 %v2876_v42, %s3769_s13  ;;  %v1568_v42 = vcombine.high %v4298_v33, %v4298_v33  ;;  %v4650_v62 = vrot.slane %v4627_v22, %v4211_v31  ;;  %v4682_v33 = vcombine.high %v4568_v21, %v4568_v21 }
 0x573   : > { %1638 = vrot.lane.b32.xlu0 %v1613_v12, %s5588_s18  ;;  %v1730_v12 = vrot.slane %v4560_v6, %v4218_v37  ;;  %v4605_v18 = vrot.slane %v1568_v42, %v4211_v31  ;;  %v1931_v42 = vcombine.high %v4331_v41, %v4331_v41 }
 0x575   : > { %1393 = vrot.lane.b32.xlu1 %v1366_v57, %s3760_s9  ;;  %v1609_v29 = vrot.slane %v4605_v18, %v4218_v37  ;;  %v4635_v41 = vrot.slane %v1931_v42, %v4211_v31  ;;  %v2965_v42 = vcombine.high %v4481_v28, %v4481_v28 }
 0x577   : > { %1642 = vrot.lane.b32.xlu0 %v1621_v53, %s5588_s18  ;;  %v1719_v53 = vcombine.high %v4338_v43, %v4338_v43  ;;  %v4644_v43 = vcombine.high %v4496_v24, %v4496_v24 }
 0x579   : > { %1517 = vrot.lane.b32.xlu1 %v1492_v54, %s3764_s16  ;;  %v1855_v54 = vrot.slane %v1840_v23, %v4218_v37  ;;  %v2964_v23 = vcombine.high %v4478_v14, %v4478_v14  ;;  %v1734_v14 = vrot.slane %v1719_v53, %v4218_v37  ;;  %v4662_v53 = vrot.slane %v2965_v42, %v4211_v31 }
 0x57b   : > { %1757 = vrot.lane.b32.xlu0 %v1730_v12, %s3787_s19  ;;  %v4617_v12 = vrot.slane %v4595_v49, %v4211_v31  ;;  %v4640_v57 = vrot.slane %v2964_v23, %v4211_v31  ;;  %v1972_v23 = vrot.slane %v4635_v41, %v4218_v37  ;;  %v4719_v5 = vcombine.high %v4662_v53, %v4662_v53 }
 0x57d   : > { %1521 = vrot.lane.b32.xlu1 %v1500_v48, %s3764_s16  ;;  %v1863_v48 = vrot.slane %v4617_v12, %v4218_v37 }
 0x57f   : > { %1880 = vrot.lane.b32.xlu0 %v1855_v54, %s3776_s23  ;;  %v1810_v54 = vcombine.high %v4327_v40, %v4327_v40  ;;  %v1961_v40 = vcombine.high %v4364_v27, %v4364_v27 }
 0x581   : > { %1636 = vrot.lane.b32.xlu1 %v1609_v29, %s5588_s18  ;;  %v4669_v28 = vrot.slane %v1810_v54, %v4211_v31  ;;  %v1742_v29 = vrot.slane %v4650_v62, %v4218_v37  ;;  %v2093_v54 = vrot.slane %v4398_v30, %v4218_v37 }
 0x583   : > { %1884 = vrot.lane.b32.xlu0 %v1863_v48, %s3776_s23  ;;  %v4666_v48 = vcombine.high %v4500_v56, %v4500_v56  ;;  %v1851_v42 = vrot.slane %v4669_v28, %v4218_v37 }
 0x585   : > { %1759 = vrot.lane.b32.xlu1 %v1734_v14, %s3787_s19  ;;  %v1916_v14 = vcombine.high %v4306_v11, %v4306_v11  ;;  %v4691_v11 = vcombine.high %v4583_v35, %v4583_v35 }
 0x587   : > { %1999 = vrot.lane.b32.xlu0 %v1972_v23, %s3767_s22  ;;  %v2234_v23 = vcombine.high %v4368_v52, %v4368_v52  ;;  %v2125_v52 = vrot.slane %v4402_v59, %v4218_v37 }
 0x589   : > { %1763 = vrot.lane.b32.xlu1 %v1742_v29, %s3787_s19  ;;  %v4699_v29 = vrot.slane %v1916_v14, %v4211_v31  ;;  %v4707_v2 = vrot.slane %v2234_v23, %v4211_v31  ;;  %v4715_v14 = vcombine.high %v4640_v57, %v4640_v57 }
 0x58b   : > { %2154 = vrot.lane.b32.xlu0 %v2093_v54, %s5583_s21  ;;  %v2340_v54 = vcombine.high %v4357_v50, %v4357_v50  ;;  %v4725_v23 = vrot.slane %v4699_v29, %v4211_v31  ;;  %v2275_v3 = vrot.slane %v4707_v2, %v4218_v37  ;;  %v2476_v50 = vcombine.high %v4413_v10, %v4413_v10 }
 0x58c   : > { %v2264_v10 = vcombine.high %v4409_v60, %v4409_v60 }
 0x58d   : > { %1878 = vrot.lane.b32.xlu1 %v1851_v42, %s3776_s23  ;;  %v1976_v42 = vrot.slane %v1961_v40, %v4218_v37  ;;  %v4737_v40 = vrot.slane %v2340_v54, %v4211_v31  ;;  %v1984_v61 = vrot.slane %v4725_v23, %v4218_v37  ;;  %v4760_v54 = vrot.slane %v2476_v50, %v4211_v31 }
 0x58e   : > { %v2279_v60 = vrot.slane %v2264_v10, %v4218_v37 }
 0x58f   : > { %2170 = vrot.lane.b32.xlu0 %v2125_v52, %s5583_s21  ;;  %v2385_v52 = vcombine.high %v4421_v1, %v4421_v1  ;;  %v2219_v1 = vcombine.high %v4342_v44, %v4342_v44 }
 0x591   : > { %2001 = vrot.lane.b32.xlu1 %v1976_v42, %s3767_s22  ;;  %v2400_v27 = vrot.slane %v2385_v52, %v4218_v37  ;;  %v4746_v42 = vrot.slane %v4737_v40, %v4211_v31  ;;  %v2597_v52 = vcombine.high %v4429_v4, %v4429_v4  ;;  %v4768_v44 = vrot.slane %v2219_v1, %v4211_v31 }
 0x592   : > { %v2718_v4 = vcombine.high %v4463_v63, %v4463_v63  ;;  %v2839_v63 = vcombine.high %v4492_v13, %v4492_v13 }
 0x593   : > { %2302 = vrot.lane.b32.xlu0 %v2275_v3, %s3788_s15  ;;  %v5607_v3 = vrot.slane %v4398_v30, %v4381_v55  ;;  %v5608_v30 = vrot.slane %v4402_v59, %v4381_v55  ;;  %v4777_v50 = vrot.slane %v2597_v52, %v4211_v31  ;;  %v4785_v1 = vrot.slane %v4768_v44, %v4211_v31 }
 0x594   : > { %v2355_v59 = vcombine.high %v4390_v16, %v4390_v16  ;;  %v2461_v16 = vcombine.high %v4372_v15, %v4372_v15 }
 0x595   : > { %2005 = vrot.lane.b32.xlu1 %v1984_v61, %s3767_s22  ;;  %v2408_v61 = vrot.slane %v4746_v42, %v4218_v37  ;;  %v2287_v52 = vrot.slane %v4785_v1, %v4218_v37 }
 0x596   : > { %v4801_v10 = vrot.slane %v2355_v59, %v4211_v31  ;;  %v4820_v15 = vrot.slane %v2461_v16, %v4211_v31 }
 0x597   : > { %2425 = vrot.lane.b32.xlu0 %v2400_v27, %s5586_s29  ;;  %v2517_v27 = vrot.slane %v4760_v54, %v4218_v37 }
 0x598   : > { %v2396_v13 = vrot.slane %v4801_v10, %v4218_v37 }
 0x599   : > { %2156 = vrot.lane.b32.xlu1 %v5607_v3, %s5583_s21  ;;  %v2638_v3 = vrot.slane %v4777_v50, %v4218_v37 }
 0x59b   : > { %2429 = vrot.lane.b32.xlu0 %v2408_v61, %s5586_s29  ;;  %v4793_v61 = vrot.slane %v2718_v4, %v4211_v31  ;;  %v2506_v4 = vcombine.high %v4436_v8, %v4436_v8  ;;  %v2582_v8 = vcombine.high %v4394_v58, %v4394_v58  ;;  %v5609_v58 = vrot.slane %v4496_v24, %v4381_v55 }
 0x59d   : > { %2172 = vrot.lane.b32.xlu1 %v5608_v30, %s5583_s21  ;;  %v2759_v30 = vrot.slane %v4793_v61, %v4218_v37  ;;  %s3441_s21 = sshll.u32 %s5585_s8, 7 }
 0x59e   : > { %s4833_s8 = scalar_lea.vmem [#allocation6], %s3441_s21  ;;  %s5611_s21 = smov 1  }
 0x59f   : > { %2544 = vrot.lane.b32.xlu0 %v2517_v27, %s3790_s14  ;;  %v4810_v27 = vrot.slane %v2839_v63, %v4211_v31  ;;  %v4829_v63 = vrot.slane %v4820_v15, %v4211_v31 }
 0x5a1   : > { %2304 = vrot.lane.b32.xlu1 %v2279_v60, %s3788_s15  ;;  %v2880_v60 = vrot.slane %v4810_v27, %v4218_v37 }
 0x5a3   : > { %2665 = vrot.lane.b32.xlu0 %v2638_v3, %s3791_s20  ;;  %v2521_v3 = vrot.slane %v2506_v4, %v4218_v37  ;;  %v4849_v4 = vrot.slane %v2582_v8, %v4211_v31 }
 0x5a5   : > { %2308 = vrot.lane.b32.xlu1 %v2287_v52, %s3788_s15  ;;  %v4865_v8 = vrot.slane %v4849_v4, %v4211_v31 }
 0x5a7   : > { %2786 = vrot.lane.b32.xlu0 %v2759_v30, %s3778_s17  ;;  %v2529_v30 = vrot.slane %v4829_v63, %v4218_v37 }
 0x5a9   : > { %2423 = vrot.lane.b32.xlu1 %v2396_v13, %s5586_s29  ;;  %s3793_s29 = smov 3   ;;  %v2627_v13 = vcombine.high %v4456_v26, %v4456_v26 }
 0x5ab   : > { %v3209_v59 = vpop.permute.xlu1 %3208  ;;  %2907 = vrot.lane.b32.xlu0 %v2880_v60, %s3769_s13  ;;  %v2642_v26 = vrot.slane %v2627_v13, %v4218_v37  ;;  %v1448_v13 = vcombine.high %v4555_v39, %v4555_v39 }
 0x5ac   : > { %3232 = vst.msk [vmem:[%s4833_s8 + $0xe] sm:$0x1] %vm1415_vm12, %v3209_v59  ;;  %v1356_v59 = vcombine.high %v4473_v46, %v4473_v46 }
 0x5ad   : > { %2546 = vrot.lane.b32.xlu1 %v2521_v3, %s3790_s14  ;;  %v3211_v52 = vpop.permute.xlu0 %3210 }
 0x5ae   : > { %3233 = vst.msk [vmem:[%s4833_s8 + $0x1e] sm:$0x1] %vm1415_vm12, %v3211_v52  ;;  %v5610_v52 = vrot.slane %v4500_v56, %v4381_v55 }
 0x5af   : > { %v3330_v16 = vpop.permute.xlu1 %3329  ;;  %3064 = vrot.lane.b32.xlu0 %v5609_v58, %s3793_s29  ;;  %v1386_v58 = vrot.slane %v1356_v59, %v4218_v37 }
 0x5b0   : > { %3353 = vst.msk [vmem:[%s4833_s8 + $0xf] sm:$0x1] %vm1415_vm12, %v3330_v16  ;;  %v2703_v16 = vcombine.high %v4440_v19, %v4440_v19  ;;  %v2650_v19 = vrot.slane %v4865_v8, %v4218_v37 }
 0x5b1   : > { %2550 = vrot.lane.b32.xlu1 %v2529_v30, %s3790_s14  ;;  %v3332_v60 = vpop.permute.xlu0 %3331  ;;  %v1479_v30 = vcombine.high %v4506_v0, %v4506_v0 }
 0x5b2   : > { %3354 = vst.msk [vmem:[%s4833_s8 + $0x1f] sm:$0x1] %vm1415_vm12, %v3332_v60  ;;  %v4885_v59 = vrot.slane %v2703_v16, %v4211_v31 }
 0x5b3   : > { %v3213_v3 = vpop.permute.xlu1 %3212  ;;  %3080 = vrot.lane.b32.xlu0 %v5610_v52, %s3793_s29  ;;  %v1496_v39 = vrot.slane %v1479_v30, %v4218_v37  ;;  %v4892_v52 = vrot.slane %v1448_v13, %v4211_v31  ;;  %v1599_v13 = vcombine.high %v4545_v47, %v4545_v47 }
 0x5b4   : > { %3234 = vst.msk [vmem:[%s4833_s8 + $0x2e] sm:$0x1] %vm1415_vm12, %v3213_v3  ;;  %v2748_v3 = vcombine.high %v4488_v51, %v4488_v51  ;;  %v4900_v16 = vrot.slane %v4885_v59, %v4211_v31 }
 0x5b5   : > { %2667 = vrot.lane.b32.xlu1 %v2642_v26, %s3791_s20  ;;  %v3215_v46 = vpop.permute.xlu0 %3214  ;;  %v1504_v30 = vrot.slane %v4892_v52, %v4218_v37 }
 0x5b6   : > { %3235 = vst.msk [vmem:[%s4833_s8 + $0x3e] sm:$0x1] %vm1415_vm12, %v3215_v46  ;;  %v2763_v51 = vrot.slane %v2748_v3, %v4218_v37  ;;  %v2824_v46 = vcombine.high %v4467_v32, %v4467_v32  ;;  %v2771_v32 = vrot.slane %v4900_v16, %v4218_v37 }
 0x5b7   : > { %v3217_v60 = vpop.permute.xlu1 %3216  ;;  %1403 = vrot.lane.b32.xlu0 %v1386_v58, %s3760_s9 }
 0x5b8   : > { %3236 = vst.msk [vmem:[%s4833_s8 + $0x4e] sm:$0x1] %vm1415_vm12, %v3217_v60  ;;  %v4919_v3 = vrot.slane %v2824_v46, %v4211_v31 }
 0x5b9   : > { %2671 = vrot.lane.b32.xlu1 %v2650_v19, %s3791_s20  ;;  %v3219_v0 = vpop.permute.xlu0 %3218  ;;  %v2869_v19 = vcombine.high %v4519_v9, %v4519_v9 }
 0x5ba   : > { %3237 = vst.msk [vmem:[%s4833_s8 + $0x5e] sm:$0x1] %vm1415_vm12, %v3219_v0  ;;  %v1629_v0 = vrot.slane %v1599_v13, %v4218_v37  ;;  %v4935_v46 = vrot.slane %v4919_v3, %v4211_v31 }
 0x5bb   : > { %v3334_v26 = vpop.permute.xlu1 %3333  ;;  %1519 = vrot.lane.b32.xlu0 %v1496_v39, %s3764_s16  ;;  %v1721_v39 = vcombine.high %v4560_v6, %v4560_v6 }
 0x5bc   : > { %3355 = vst.msk [vmem:[%s4833_s8 + $0x2f] sm:$0x1] %vm1415_vm12, %v3334_v26  ;;  %v1690_v26 = vcombine.high %v4627_v22, %v4627_v22  ;;  %v2892_v13 = vrot.slane %v4935_v46, %v4218_v37 }
 0x5bd   : > { %2788 = vrot.lane.b32.xlu1 %v2763_v51, %s3778_s17  ;;  %v3336_v58 = vpop.permute.xlu0 %3335  ;;  %v2884_v51 = vrot.slane %v2869_v19, %v4218_v37  ;;  %v1738_v22 = vrot.slane %v1721_v39, %v4218_v37  ;;  %v1841_v19 = vcombine.high %v4617_v12, %v4617_v12  ;;  %v1963_v12 = vcombine.high %v4635_v41, %v4635_v41 }
 0x5be   : > { %3356 = vst.msk [vmem:[%s4833_s8 + $0x3f] sm:$0x1] %vm1415_vm12, %v3336_v58  ;;  %v4942_v58 = vrot.slane %v1690_v26, %v4211_v31 }
 0x5bf   : > { %v3338_v60 = vpop.permute.xlu1 %3337  ;;  %1523 = vrot.lane.b32.xlu0 %v1504_v30, %s3764_s16  ;;  %v1871_v26 = vrot.slane %v1841_v19, %v4218_v37 }
 0x5c0   : > { %3357 = vst.msk [vmem:[%s4833_s8 + $0x4f] sm:$0x1] %vm1415_vm12, %v3338_v60 }
 0x5c1   : > { %2792 = vrot.lane.b32.xlu1 %v2771_v32, %s3778_s17  ;;  %v3340_v47 = vpop.permute.xlu0 %3339  ;;  %v1746_v32 = vrot.slane %v4942_v58, %v4218_v37 }
 0x5c2   : > { %3358 = vst.msk [vmem:[%s4833_s8 + $0x5f] sm:$0x1] %vm1415_vm12, %v3340_v47 }
 0x5c3   : > { %v3221_v9 = vpop.permute.xlu1 %3220  ;;  %1646 = vrot.lane.b32.xlu0 %v1629_v0, %s5588_s18  ;;  %v3001_v0 = vrot.slane %v4496_v24, %v4218_v37  ;;  %v3033_v24 = vrot.slane %v4500_v56, %v4218_v37 }
 0x5c4   : > { %3238 = vst.msk [vmem:[%s4833_s8 + $0x6e] sm:$0x1] %vm1415_vm12, %v3221_v9  ;;  %v1932_v9 = vcombine.high %v4699_v29, %v4699_v29  ;;  %v1980_v29 = vrot.slane %v1963_v12, %v4218_v37 }
 0x5c5   : > { %2909 = vrot.lane.b32.xlu1 %v2884_v51, %s3769_s13  ;;  %v1392_v6 = vpop.permute.xlu0 %1391 }
 0x5c6   : > { %1416 = vst.msk [vmem:[%s4833_s8] sm:$0x1] %vm1415_vm12, %v1392_v6  ;;  %v1357_v6 = vcombine.high %v4535_v17, %v4535_v17 }
 0x5c7   : > { %v1514_v30 = vpop.permute.xlu1 %1513  ;;  %1761 = vrot.lane.b32.xlu0 %v1738_v22, %s3787_s19  ;;  %v1326_v22 = vcombine.high %v4450_v25, %v4450_v25 }
 0x5c8   : > { %1537 = vst.msk [vmem:[%s4833_s8 + $0x1] sm:$0x1] %vm1415_vm12, %v1514_v30  ;;  %v4983_v30 = vrot.slane %v1932_v9, %v4211_v31  ;;  %v1374_v17 = vrot.slane %v1357_v6, %v4218_v37  ;;  %v1569_v9 = vcombine.high %v4529_v34, %v4529_v34 }
 0x5c9   : > { %2913 = vrot.lane.b32.xlu1 %v2892_v13, %s3769_s13  ;;  %v1635_v60 = vpop.permute.xlu0 %1634  ;;  %v4990_v25 = vrot.slane %v1326_v22, %v4211_v31 }
 0x5ca   : > { %1658 = vst.msk [vmem:[%s4833_s8 + $0x2] sm:$0x1] %vm1415_vm12, %v1635_v60  ;;  %v1988_v60 = vrot.slane %v4983_v30, %v4218_v37 }
 0x5cb   : > { %v1756_v47 = vpop.permute.xlu1 %1755  ;;  %1765 = vrot.lane.b32.xlu0 %v1746_v32, %s3787_s19  ;;  %v1382_v19 = vrot.slane %v4990_v25, %v4218_v37 }
 0x5cc   : > { %1779 = vst.msk [vmem:[%s4833_s8 + $0x3] sm:$0x1] %vm1415_vm12, %v1756_v47  ;;  %v1478_v47 = vcombine.high %v4578_v36, %v4578_v36  ;;  %v1600_v36 = vcombine.high %v4605_v18, %v4605_v18  ;;  %v5027_v18 = vrot.slane %v1569_v9, %v4211_v31 }
 0x5cd   : > { %3062 = vrot.lane.b32.xlu1 %v3001_v0, %s3793_s29  ;;  %v1877_v39 = vpop.permute.xlu0 %1876 }
 0x5ce   : > { %1900 = vst.msk [vmem:[%s4833_s8 + $0x4] sm:$0x1] %vm1415_vm12, %v1877_v39  ;;  %v2101_v39 = vrot.slane %v4568_v21, %v4218_v37  ;;  %v1508_v12 = vrot.slane %v1478_v47, %v4218_v37  ;;  %v1617_v22 = vrot.slane %v1600_v36, %v4218_v37 }
 0x5cf   : > { %v1998_v51 = vpop.permute.xlu1 %1997  ;;  %1888 = vrot.lane.b32.xlu0 %v1871_v26, %s3776_s23 }
 0x5d0   : > { %2021 = vst.msk [vmem:[%s4833_s8 + $0x5] sm:$0x1] %vm1415_vm12, %v1998_v51 }
 0x5d1   : > { %3078 = vrot.lane.b32.xlu1 %v3033_v24, %s3793_s29  ;;  %v3223_v41 = vpop.permute.xlu0 %3222  ;;  %v2109_v24 = vrot.slane %v4572_v38, %v4218_v37 }
 0x5d2   : > { %3239 = vst.msk [vmem:[%s4833_s8 + $0x7e] sm:$0x1] %vm1415_vm12, %v3223_v41  ;;  %v2133_v41 = vrot.slane %v4583_v35, %v4218_v37 }
 0x5d3   : > { %v2301_v56 = vpop.permute.xlu1 %2300  ;;  %2003 = vrot.lane.b32.xlu0 %v1980_v29, %s3767_s22 }
 0x5d4   : > { %2324 = vst.msk [vmem:[%s4833_s8 + $0x7] sm:$0x1] %vm1415_vm12, %v2301_v56  ;;  %v1625_v56 = vrot.slane %v5027_v18, %v4218_v37 }
 0x5d5   : > { %1397 = vrot.lane.b32.xlu1 %v1374_v17, %s3760_s9  ;;  %v2422_v13 = vpop.permute.xlu0 %2421  ;;  %v1720_v17 = vcombine.high %v4650_v62, %v4650_v62 }
 0x5d6   : > { %2445 = vst.msk [vmem:[%s4833_s8 + $0x8] sm:$0x1] %vm1415_vm12, %v2422_v13 }
 0x5d7   : > { %v2543_v32 = vpop.permute.xlu1 %2542  ;;  %2007 = vrot.lane.b32.xlu0 %v1988_v60, %s3767_s22  ;;  %v2141_v60 = vrot.slane %v4589_v45, %v4218_v37  ;;  %v1750_v62 = vrot.slane %v1720_v17, %v4218_v37 }
 0x5d8   : > { %2566 = vst.msk [vmem:[%s4833_s8 + $0x9] sm:$0x1] %vm1415_vm12, %v2543_v32  ;;  %v2266_v32 = vcombine.high %v4707_v2, %v4707_v2 }
 0x5d9   : > { %1401 = vrot.lane.b32.xlu1 %v1382_v19, %s3760_s9  ;;  %v1396_v0 = vpop.permute.xlu0 %1395  ;;  %v2235_v19 = vcombine.high %v4768_v44, %v4768_v44 }
 0x5da   : > { %1418 = vst.msk [vmem:[%s4833_s8 + $0x20] sm:$0x1] %vm1415_vm12, %v1396_v0  ;;  %v1842_v0 = vcombine.high %v4669_v28, %v4669_v28  ;;  %v2283_v44 = vrot.slane %v2266_v32, %v4218_v37 }
 0x5db   : > { %v2664_v26 = vpop.permute.xlu1 %2663  ;;  %2158 = vrot.lane.b32.xlu0 %v2101_v39, %s5611_s21  ;;  %v1811_v39 = vcombine.high %v4595_v49, %v4595_v49 }
 0x5dc   : > { %2687 = vst.msk [vmem:[%s4833_s8 + $0xa] sm:$0x1] %vm1415_vm12, %v2664_v26  ;;  %v5063_v26 = vrot.slane %v2235_v19, %v4211_v31  ;;  %v1859_v28 = vrot.slane %v1842_v0, %v4218_v37 }
 0x5dd   : > { %1525 = vrot.lane.b32.xlu1 %v1508_v12, %s3764_s16  ;;  %v1400_v51 = vpop.permute.xlu0 %1399  ;;  %v5070_v49 = vrot.slane %v1811_v39, %v4211_v31 }
 0x5de   : > { %1420 = vst.msk [vmem:[%s4833_s8 + $0x40] sm:$0x1] %vm1415_vm12, %v1400_v51  ;;  %v2291_v9 = vrot.slane %v5063_v26, %v4218_v37  ;;  %v2386_v51 = vcombine.high %v4746_v42, %v4746_v42 }
 0x5df   : > { %v2785_v6 = vpop.permute.xlu1 %2784  ;;  %2162 = vrot.lane.b32.xlu0 %v2109_v24, %s5611_s21 }
 0x5e0   : > { %2808 = vst.msk [vmem:[%s4833_s8 + $0xb] sm:$0x1] %vm1415_vm12, %v2785_v6  ;;  %v1867_v6 = vrot.slane %v5070_v49, %v4218_v37  ;;  %v2416_v42 = vrot.slane %v2386_v51, %v4218_v37  ;;  %v2265_v51 = vcombine.high %v4785_v1, %v4785_v1 }
 0x5e1   : > { %1640 = vrot.lane.b32.xlu1 %v1617_v22, %s5588_s18  ;;  %v1516_v34 = vpop.permute.xlu0 %1515  ;;  %v1962_v22 = vcombine.high %v4725_v23, %v4725_v23 }
 0x5e2   : > { %1538 = vst.msk [vmem:[%s4833_s8 + $0x11] sm:$0x1] %vm1415_vm12, %v1516_v34  ;;  %v2295_v1 = vrot.slane %v2265_v51, %v4218_v37 }
 0x5e3   : > { %v2906_v29 = vpop.permute.xlu1 %2905  ;;  %2174 = vrot.lane.b32.xlu0 %v2133_v41, %s5611_s21  ;;  %v2508_v41 = vcombine.high %v4760_v54, %v4760_v54  ;;  %v1992_v23 = vrot.slane %v1962_v22, %v4218_v37  ;;  %v2387_v22 = vcombine.high %v4801_v10, %v4801_v10 }
 0x5e4   : > { %2929 = vst.msk [vmem:[%s4833_s8 + $0xc] sm:$0x1] %vm1415_vm12, %v2906_v29  ;;  %v2477_v29 = vcombine.high %v4820_v15, %v4820_v15 }
 0x5e5   : > { %1644 = vrot.lane.b32.xlu1 %v1625_v56, %s5588_s18  ;;  %v1639_v13 = vpop.permute.xlu0 %1638  ;;  %s5612_s18 = smov 93  }
 0x5e6   : > { %1660 = vst.msk [vmem:[%s4833_s8 + $0x22] sm:$0x1] %vm1415_vm12, %v1639_v13  ;;  %v2525_v13 = vrot.slane %v2508_v41, %v4218_v37  ;;  %v5103_v54 = vrot.slane %v2477_v29, %v4211_v31  ;;  %v2871_v41 = vcombine.high %v4810_v27, %v4810_v27  ;;  %v2840_v29 = vcombine.high %v4919_v3, %v4919_v3 }
 0x5e7   : > { %v1394_v47 = vpop.permute.xlu1 %1393  ;;  %2178 = vrot.lane.b32.xlu0 %v2141_v60, %s5611_s21  ;;  %v5613_v60 = vrot.slane %v4568_v21, %v4381_v55  ;;  %v5614_v21 = vrot.slane %v4572_v38, %v4381_v55 }
 0x5e8   : > { %1417 = vst.msk [vmem:[%s4833_s8 + $0x10] sm:$0x1] %vm1415_vm12, %v1394_v47  ;;  %v2533_v19 = vrot.slane %v5103_v54, %v4218_v37  ;;  %v2629_v47 = vcombine.high %v4777_v50, %v4777_v50  ;;  %v2888_v3 = vrot.slane %v2871_v41, %v4218_v37  ;;  %v1964_v41 = vcombine.high %v4983_v30, %v4983_v30 }
 0x5e9   : > { %1767 = vrot.lane.b32.xlu1 %v1750_v62, %s3787_s19  ;;  %v1643_v2 = vpop.permute.xlu0 %1642  ;;  %v2598_v62 = vcombine.high %v4849_v4, %v4849_v4 }
 0x5ea   : > { %1662 = vst.msk [vmem:[%s4833_s8 + $0x42] sm:$0x1] %vm1415_vm12, %v1643_v2  ;;  %v2646_v2 = vrot.slane %v2629_v47, %v4218_v37 }
 0x5eb   : > { %v1518_v12 = vpop.permute.xlu1 %1517  ;;  %2306 = vrot.lane.b32.xlu0 %v2283_v44, %s3788_s15  ;;  %v5131_v50 = vrot.slane %v2598_v62, %v4211_v31  ;;  %v5615_v44 = vrot.slane %v4583_v35, %v4381_v55  ;;  %v5616_v35 = vrot.slane %v4589_v45, %v4381_v55  ;;  %v2356_v45 = vcombine.high %v4737_v40, %v4737_v40 }
 0x5ec   : > { %1539 = vst.msk [vmem:[%s4833_s8 + $0x21] sm:$0x1] %vm1415_vm12, %v1518_v12  ;;  %v2404_v40 = vrot.slane %v2387_v22, %v4218_v37 }
 0x5ed   : > { %1882 = vrot.lane.b32.xlu1 %v1859_v28, %s3776_s23  ;;  %v1758_v36 = vpop.permute.xlu0 %1757  ;;  %v2654_v12 = vrot.slane %v5131_v50, %v4218_v37  ;;  %v2750_v28 = vcombine.high %v4793_v61, %v4793_v61 }
 0x5ee   : > { %1780 = vst.msk [vmem:[%s4833_s8 + $0x13] sm:$0x1] %vm1415_vm12, %v1758_v36  ;;  %v2719_v36 = vcombine.high %v4885_v59, %v4885_v59 }
 0x5ef   : > { %v1522_v24 = vpop.permute.xlu1 %1521  ;;  %2310 = vrot.lane.b32.xlu0 %v2291_v9, %s3788_s15  ;;  %v2767_v61 = vrot.slane %v2750_v28, %v4218_v37 }
 0x5f0   : > { %1541 = vst.msk [vmem:[%s4833_s8 + $0x41] sm:$0x1] %vm1415_vm12, %v1522_v24 }
 0x5f1   : > { %1886 = vrot.lane.b32.xlu1 %v1867_v6, %s3776_s23  ;;  %v1881_v34 = vpop.permute.xlu0 %1880  ;;  %v5157_v6 = vrot.slane %v2719_v36, %v4211_v31 }
 0x5f2   : > { %1902 = vst.msk [vmem:[%s4833_s8 + $0x24] sm:$0x1] %vm1415_vm12, %v1881_v34 }
 0x5f3   : > { %v1637_v56 = vpop.permute.xlu1 %1636  ;;  %2433 = vrot.lane.b32.xlu0 %v2416_v42, %s5612_s18  ;;  %v2775_v42 = vrot.slane %v5157_v6, %v4218_v37 }
 0x5f4   : > { %1659 = vst.msk [vmem:[%s4833_s8 + $0x12] sm:$0x1] %vm1415_vm12, %v1637_v56  ;;  %v5181_v56 = vrot.slane %v2356_v45, %v4211_v31 }
 0x5f5   : > { %2009 = vrot.lane.b32.xlu1 %v1992_v23, %s3767_s22  ;;  %v1885_v17 = vpop.permute.xlu0 %1884 }
 0x5f6   : > { %1904 = vst.msk [vmem:[%s4833_s8 + $0x44] sm:$0x1] %vm1415_vm12, %v1885_v17  ;;  %v5189_v17 = vrot.slane %v2840_v29, %v4211_v31 }
 0x5f7   : > { %v1760_v15 = vpop.permute.xlu1 %1759  ;;  %2548 = vrot.lane.b32.xlu0 %v2525_v13, %s3790_s14 }
 0x5f8   : > { %1781 = vst.msk [vmem:[%s4833_s8 + $0x23] sm:$0x1] %vm1415_vm12, %v1760_v15  ;;  %v2412_v15 = vrot.slane %v5181_v56, %v4218_v37 }
 0x5f9   : > { %2160 = vrot.lane.b32.xlu1 %v5613_v60, %s5611_s21  ;;  %v2000_v32 = vpop.permute.xlu0 %1999  ;;  %v2507_v60 = vcombine.high %v4829_v63, %v4829_v63  ;;  %v2628_v63 = vcombine.high %v4865_v8, %v4865_v8  ;;  %v2749_v8 = vcombine.high %v4900_v16, %v4900_v16  ;;  %v2870_v16 = vcombine.high %v4935_v46, %v4935_v46 }
 0x5fa   : > { %2022 = vst.msk [vmem:[%s4833_s8 + $0x15] sm:$0x1] %vm1415_vm12, %v2000_v32 }
 0x5fb   : > { %v1764_v0 = vpop.permute.xlu1 %1763  ;;  %2552 = vrot.lane.b32.xlu0 %v2533_v19, %s3790_s14  ;;  %v2896_v19 = vrot.slane %v5189_v17, %v4218_v37  ;;  %v2537_v62 = vrot.slane %v2507_v60, %v4218_v37  ;;  %v2900_v51 = vrot.slane %v2870_v16, %v4218_v37  ;;  %v2267_v60 = vcombine.high %v5063_v26, %v5063_v26 }
 0x5fc   : > { %1783 = vst.msk [vmem:[%s4833_s8 + $0x43] sm:$0x1] %vm1415_vm12, %v1764_v0  ;;  %v2509_v26 = vcombine.high %v5103_v54, %v5103_v54  ;;  %v2630_v54 = vcombine.high %v5131_v50, %v5131_v50  ;;  %v2751_v50 = vcombine.high %v5157_v6, %v5157_v6 }
 0x5fd   : > { %2164 = vrot.lane.b32.xlu1 %v5614_v21, %s5611_s21  ;;  %v2155_v39 = vpop.permute.xlu0 %2154 }
 0x5fe   : > { %v2783_v16 = vrot.slane %v2751_v50, %v4218_v37 }
 0x5ff   : > { %v1879_v4 = vpop.permute.xlu1 %1878  ;;  %2669 = vrot.lane.b32.xlu0 %v2646_v2, %s3791_s20  ;;  %v2658_v2 = vrot.slane %v2628_v63, %v4218_v37 }
 0x600   : > { %1901 = vst.msk [vmem:[%s4833_s8 + $0x14] sm:$0x1] %vm1415_vm12, %v1879_v4 }
 0x601   : > { %2176 = vrot.lane.b32.xlu1 %v5615_v44, %s5611_s21  ;;  %v2171_v38 = vpop.permute.xlu0 %2170 }
 0x603   : > { %v2002_v9 = vpop.permute.xlu1 %2001  ;;  %2673 = vrot.lane.b32.xlu0 %v2654_v12, %s3791_s20  ;;  %v2779_v12 = vrot.slane %v2749_v8, %v4218_v37 }
 0x604   : > { %2023 = vst.msk [vmem:[%s4833_s8 + $0x25] sm:$0x1] %vm1415_vm12, %v2002_v9  ;;  %v5619_v9 = vrot.slane %v4662_v53, %v4381_v55 }
 0x605   : > { %2180 = vrot.lane.b32.xlu1 %v5616_v35, %s5611_s21  ;;  %v2303_v24 = vpop.permute.xlu0 %2302  ;;  %v1480_v35 = vcombine.high %v4892_v52, %v4892_v52  ;;  %v1722_v52 = vcombine.high %v4942_v58, %v4942_v58 }
 0x606   : > { %2325 = vst.msk [vmem:[%s4833_s8 + $0x17] sm:$0x1] %vm1415_vm12, %v2303_v24 }
 0x607   : > { %v2006_v59 = vpop.permute.xlu1 %2005  ;;  %2790 = vrot.lane.b32.xlu0 %v2767_v61, %s3778_s17  ;;  %v5620_v61 = vrot.slane %v4666_v48, %v4381_v55  ;;  %v1512_v22 = vrot.slane %v1480_v35, %v4218_v37 }
 0x608   : > { %2025 = vst.msk [vmem:[%s4833_s8 + $0x45] sm:$0x1] %vm1415_vm12, %v2006_v59  ;;  %v3009_v59 = vrot.slane %v4640_v57, %v4218_v37 }
 0x609   : > { %2312 = vrot.lane.b32.xlu1 %v2295_v1, %s3788_s15  ;;  %v2426_v34 = vpop.permute.xlu0 %2425 }
 0x60a   : > { %2447 = vst.msk [vmem:[%s4833_s8 + $0x28] sm:$0x1] %vm1415_vm12, %v2426_v34  ;;  %v3017_v34 = vrot.slane %v4644_v43, %v4218_v37 }
 0x60b   : > { %v2157_v10 = vpop.permute.xlu1 %2156  ;;  %2794 = vrot.lane.b32.xlu0 %v2775_v42, %s3778_s17  ;;  %v1754_v42 = vrot.slane %v1722_v52, %v4218_v37 }
 0x60c   : > { %v2187_v23 = vsel %vm2186_vm14, %v2155_v39, %v2157_v10  ;;  %v5617_v39 = vrot.slane %v4640_v57, %v4381_v55  ;;  %v1996_v10 = vrot.slane %v1964_v41, %v4218_v37 }
 0x60d   : > { %2203 = vst.msk [vmem:[%s4833_s8 + $0x6] sm:$0x1] %vm1415_vm12, %v2187_v23  ;;  %2427 = vrot.lane.b32.xlu1 %v2404_v40, %s5612_s18  ;;  %v2430_v27 = vpop.permute.xlu0 %2429  ;;  %v3049_v40 = vrot.slane %v4666_v48, %v4218_v37 }
 0x60e   : > { %2449 = vst.msk [vmem:[%s4833_s8 + $0x48] sm:$0x1] %vm1415_vm12, %v2430_v27  ;;  %v2117_v27 = vrot.slane %v4682_v33, %v4218_v37 }
 0x60f   : > { %v2173_v13 = vpop.permute.xlu1 %2172  ;;  %2911 = vrot.lane.b32.xlu0 %v2888_v3, %s3769_s13 }
 0x610   : > { %v2191_v32 = vsel %vm2186_vm14, %v2171_v38, %v2173_v13  ;;  %v5618_v38 = vrot.slane %v4644_v43, %v4381_v55  ;;  %v3041_v43 = vrot.slane %v4662_v53, %v4218_v37  ;;  %v1358_v53 = vcombine.high %v4990_v25, %v4990_v25 }
 0x611   : > { %2207 = vst.msk [vmem:[%s4833_s8 + $0x46] sm:$0x1] %vm1415_vm12, %v2191_v32  ;;  %2431 = vrot.lane.b32.xlu1 %v2412_v15, %s5612_s18  ;;  %v2545_v31 = vpop.permute.xlu0 %2544  ;;  %v1601_v13 = vcombine.high %v5027_v18, %v5027_v18  ;;  %v2149_v15 = vrot.slane %v4691_v11, %v4218_v37 }
 0x612   : > { %2567 = vst.msk [vmem:[%s4833_s8 + $0x19] sm:$0x1] %vm1415_vm12, %v2545_v31  ;;  %v1390_v48 = vrot.slane %v1358_v53, %v4218_v37  ;;  %v1843_v31 = vcombine.high %v5070_v49, %v5070_v49 }
 0x613   : > { %v2305_v47 = vpop.permute.xlu1 %2304  ;;  %2915 = vrot.lane.b32.xlu0 %v2896_v19, %s3769_s13  ;;  %v1633_v18 = vrot.slane %v1601_v13, %v4218_v37 }
 0x614   : > { %2326 = vst.msk [vmem:[%s4833_s8 + $0x27] sm:$0x1] %vm1415_vm12, %v2305_v47  ;;  %v2299_v47 = vrot.slane %v2267_v60, %v4218_v37  ;;  %v1875_v63 = vrot.slane %v1843_v31, %v4218_v37 }
 0x615   : > { %2554 = vrot.lane.b32.xlu1 %v2537_v62, %s3790_s14  ;;  %v2666_v0 = vpop.permute.xlu0 %2665 }
 0x616   : > { %2688 = vst.msk [vmem:[%s4833_s8 + $0x1a] sm:$0x1] %vm1415_vm12, %v2666_v0  ;;  %v2541_v0 = vrot.slane %v2509_v26, %v4218_v37 }
 0x617   : > { %v2309_v21 = vpop.permute.xlu1 %2308  ;;  %3068 = vrot.lane.b32.xlu0 %v5617_v39, %s3793_s29 }
 0x618   : > { %2328 = vst.msk [vmem:[%s4833_s8 + $0x47] sm:$0x1] %vm1415_vm12, %v2309_v21 }
 0x619   : > { %2675 = vrot.lane.b32.xlu1 %v2658_v2, %s3791_s20  ;;  %v2787_v4 = vpop.permute.xlu0 %2786  ;;  %v5622_v2 = vrot.slane %v4682_v33, %v4381_v55 }
 0x61a   : > { %2809 = vst.msk [vmem:[%s4833_s8 + $0x1b] sm:$0x1] %vm1415_vm12, %v2787_v4  ;;  %v2662_v4 = vrot.slane %v2630_v54, %v4218_v37 }
 0x61b   : > { %v2424_v44 = vpop.permute.xlu1 %2423  ;;  %3072 = vrot.lane.b32.xlu0 %v5618_v38, %s3793_s29  ;;  %v2388_v38 = vcombine.high %v5181_v56, %v5181_v56 }
 0x61c   : > { %2446 = vst.msk [vmem:[%s4833_s8 + $0x18] sm:$0x1] %vm1415_vm12, %v2424_v44 }
 0x61d   : > { %2796 = vrot.lane.b32.xlu1 %v2779_v12, %s3778_s17  ;;  %v2908_v28 = vpop.permute.xlu0 %2907  ;;  %v5623_v12 = vrot.slane %v4691_v11, %v4381_v55 }
 0x61e   : > { %2930 = vst.msk [vmem:[%s4833_s8 + $0x1c] sm:$0x1] %vm1415_vm12, %v2908_v28  ;;  %v2872_v28 = vcombine.high %v5189_v17, %v5189_v17  ;;  %v3025_v17 = vrot.slane %v4715_v14, %v4218_v37 }
 0x61f   : > { %v2547_v36 = vpop.permute.xlu1 %2546  ;;  %3084 = vrot.lane.b32.xlu0 %v5619_v9, %s3793_s29 }
 0x620   : > { %2568 = vst.msk [vmem:[%s4833_s8 + $0x29] sm:$0x1] %vm1415_vm12, %v2547_v36  ;;  %v2420_v36 = vrot.slane %v2388_v38, %v4218_v37  ;;  %v2904_v9 = vrot.slane %v2872_v28, %v4218_v37 }
 0x621   : > { %2917 = vrot.lane.b32.xlu1 %v2900_v51, %s3769_s13  ;;  %v5247_v46 = vpop.permute.xlu0 %3064 }
 0x623   : > { %v2551_v24 = vpop.permute.xlu1 %2550  ;;  %3088 = vrot.lane.b32.xlu0 %v5620_v61, %s3793_s29  ;;  %v3057_v61 = vrot.slane %v4719_v5, %v4218_v37 }
 0x624   : > { %2570 = vst.msk [vmem:[%s4833_s8 + $0x49] sm:$0x1] %vm1415_vm12, %v2551_v24  ;;  %v5624_v24 = vrot.slane %v4715_v14, %v4381_v55  ;;  %v5625_v14 = vrot.slane %v4719_v5, %v4381_v55 }
 0x625   : > { %3066 = vrot.lane.b32.xlu1 %v3009_v59, %s3793_s29  ;;  %v5260_v1 = vpop.permute.xlu0 %3080  ;;  %v3294_v59 = vcombine.high %v4259_v7, %v4259_v7 }
 0x627   : > { %v2668_v45 = vpop.permute.xlu1 %2667  ;;  %1527 = vrot.lane.b32.xlu0 %v1512_v22, %s3764_s16  ;;  %v3296_v22 = vcombine.high %v4268_v20, %v4268_v20  ;;  %s5626_s16 = smov 95  }
 0x628   : > { %2689 = vst.msk [vmem:[%s4833_s8 + $0x2a] sm:$0x1] %vm1415_vm12, %v2668_v45  ;;  %v3324_v45 = vrot.slane %v3294_v59, %v4218_v37 }
 0x629   : > { %3070 = vrot.lane.b32.xlu1 %v3017_v34, %s3793_s29  ;;  %v1404_v57 = vpop.permute.xlu0 %1403  ;;  %v3328_v34 = vrot.slane %v3296_v22, %v4218_v37 }
 0x62a   : > { %1422 = vst.msk [vmem:[%s4833_s8 + $0x60] sm:$0x1] %vm1415_vm12, %v1404_v57 }
 0x62b   : > { %v2672_v58 = vpop.permute.xlu1 %2671  ;;  %1769 = vrot.lane.b32.xlu0 %v1754_v42, %s3787_s19 }
 0x62c   : > { %2691 = vst.msk [vmem:[%s4833_s8 + $0x4a] sm:$0x1] %vm1415_vm12, %v2672_v58 }
 0x62d   : > { %3082 = vrot.lane.b32.xlu1 %v3041_v43, %s3793_s29  ;;  %v1520_v29 = vpop.permute.xlu0 %1519 }
 0x62e   : > { %1540 = vst.msk [vmem:[%s4833_s8 + $0x31] sm:$0x1] %vm1415_vm12, %v1520_v29 }
 0x62f   : > { %v2789_v30 = vpop.permute.xlu1 %2788  ;;  %2011 = vrot.lane.b32.xlu0 %v1996_v10, %s3767_s22  ;;  %s3457_s22 = sshll.u32 %s3858_s28, 11  ;;  %s5627_s28 = sand.u32 1, %s3729_s25  }
 0x630   : > { %2810 = vst.msk [vmem:[%s4833_s8 + $0x2b] sm:$0x1] %vm1415_vm12, %v2789_v30  ;;  %s5520_s19 = scalar_lea.sflag [#allocation7], %s5627_s28 }
 0x631   : > { %3086 = vrot.lane.b32.xlu1 %v3049_v40, %s3793_s29  ;;  %v1524_v23 = vpop.permute.xlu0 %1523 }
 0x632   : > { %1542 = vst.msk [vmem:[%s4833_s8 + $0x51] sm:$0x1] %vm1415_vm12, %v1524_v23 }
 0x633   : > { %v2793_v3 = vpop.permute.xlu1 %2792  ;;  %2166 = vrot.lane.b32.xlu0 %v2117_v27, %s5611_s21 }
 0x634   : > { %2812 = vst.msk [vmem:[%s4833_s8 + $0x4b] sm:$0x1] %vm1415_vm12, %v2793_v3 }
 0x635   : > { %1405 = vrot.lane.b32.xlu1 %v1390_v48, %s3760_s9  ;;  %v1647_v25 = vpop.permute.xlu0 %1646  ;;  %s5621_s9 = smov 73  }
 0x636   : > { %1664 = vst.msk [vmem:[%s4833_s8 + $0x62] sm:$0x1] %vm1415_vm12, %v1647_v25 }
 0x637   : > { %v2910_v32 = vpop.permute.xlu1 %2909  ;;  %2182 = vrot.lane.b32.xlu0 %v2149_v15, %s5611_s21 }
 0x638   : > { %2931 = vst.msk [vmem:[%s4833_s8 + $0x2c] sm:$0x1] %vm1415_vm12, %v2910_v32 }
 0x639   : > { %1648 = vrot.lane.b32.xlu1 %v1633_v18, %s5621_s9  ;;  %v1762_v19 = vpop.permute.xlu0 %1761 }
 0x63a   : > { %1782 = vst.msk [vmem:[%s4833_s8 + $0x33] sm:$0x1] %vm1415_vm12, %v1762_v19 }
 0x63b   : > { %v2914_v62 = vpop.permute.xlu1 %2913  ;;  %2314 = vrot.lane.b32.xlu0 %v2299_v47, %s3788_s15 }
 0x63c   : > { %2933 = vst.msk [vmem:[%s4833_s8 + $0x4c] sm:$0x1] %vm1415_vm12, %v2914_v62 }
 0x63d   : > { %1890 = vrot.lane.b32.xlu1 %v1875_v63, %s3776_s23  ;;  %v1766_v49 = vpop.permute.xlu0 %1765 }
 0x63e   : > { %1784 = vst.msk [vmem:[%s4833_s8 + $0x53] sm:$0x1] %vm1415_vm12, %v1766_v49 }
 0x63f   : > { %v3063_v21 = vpop.permute.xlu1 %3062  ;;  %2556 = vrot.lane.b32.xlu0 %v2541_v0, %s3790_s14 }
 0x640   : > { %v3095_v39 = vsel %vm3094_vm15, %v3063_v21, %v5247_v46 }
 0x641   : > { %3111 = vst.msk [vmem:[%s4833_s8 + $0xd] sm:$0x1] %vm1415_vm12, %v3095_v39  ;;  %2168 = vrot.lane.b32.xlu1 %v5622_v2, %s5611_s21  ;;  %v1889_v8 = vpop.permute.xlu0 %1888 }
 0x642   : > { %1906 = vst.msk [vmem:[%s4833_s8 + $0x64] sm:$0x1] %vm1415_vm12, %v1889_v8 }
 0x643   : > { %v3079_v44 = vpop.permute.xlu1 %3078  ;;  %2677 = vrot.lane.b32.xlu0 %v2662_v4, %s3791_s20 }
 0x644   : > { %v3099_v33 = vsel %vm3094_vm15, %v3079_v44, %v5260_v1 }
 0x645   : > { %3115 = vst.msk [vmem:[%s4833_s8 + $0x4d] sm:$0x1] %vm1415_vm12, %v3099_v33  ;;  %2184 = vrot.lane.b32.xlu1 %v5623_v12, %s5611_s21  ;;  %v2004_v6 = vpop.permute.xlu0 %2003 }
 0x646   : > { %2024 = vst.msk [vmem:[%s4833_s8 + $0x35] sm:$0x1] %vm1415_vm12, %v2004_v6 }
 0x647   : > { %v1398_v56 = vpop.permute.xlu1 %1397  ;;  %2798 = vrot.lane.b32.xlu0 %v2783_v16, %s3778_s17 }
 0x648   : > { %1419 = vst.msk [vmem:[%s4833_s8 + $0x30] sm:$0x1] %vm1415_vm12, %v1398_v56 }
 0x649   : > { %2435 = vrot.lane.b32.xlu1 %v2420_v36, %s5612_s18  ;;  %v2008_v11 = vpop.permute.xlu0 %2007  ;;  %s5510_s18 = scalar_lea.hbm %s5568_s7, %s3457_s22 }
 0x64a   : > { %2026 = vst.msk [vmem:[%s4833_s8 + $0x55] sm:$0x1] %vm1415_vm12, %v2008_v11 }
 0x64b   : > { %v1402_v51 = vpop.permute.xlu1 %1401  ;;  %2919 = vrot.lane.b32.xlu0 %v2904_v9, %s3769_s13  ;;  %s3375_s13 = sshll.u32 %s4833_s8, 4  ;;  %s5512_s13 = int_to_ptr.vmem [resolvable:$true] %s3375_s13 }
 0x64c   : > { %1421 = vst.msk [vmem:[%s4833_s8 + $0x50] sm:$0x1] %vm1415_vm12, %v1402_v51  ;;  %s3675_s15 = scalar_lea.vmem %s5512_s13, 2048 }
 0x64d   : > { %3074 = vrot.lane.b32.xlu1 %v3025_v17, %s3793_s29  ;;  %v2159_v46 = vpop.permute.xlu0 %2158  ;;  %p3676_p11 = scmp.ne.s32.totalorder %s5512_s13, %s3675_s15 }
 0x64f   : > { %v1526_v35 = vpop.permute.xlu1 %1525  ;;  %3076 = vrot.lane.b32.xlu0 %v5624_v24, %s3793_s29  ;;  %p3677_p12 = pnand %p3676_p11, %p3875_p5 }
 0x650   : > { %1543 = vst.msk [vmem:[%s4833_s8 + $0x61] sm:$0x1] %vm1415_vm12, %v1526_v35 }
 0x651   : > { %3090 = vrot.lane.b32.xlu1 %v3057_v61, %s3793_s29  ;;  %v2163_v1 = vpop.permute.xlu0 %2162  ;;  %p3678_p13 = pneg %p3677_p12 }
 0x653   : > { %v1641_v52 = vpop.permute.xlu1 %1640  ;;  %3092 = vrot.lane.b32.xlu0 %v5625_v14, %s3793_s29  ;;  %s3794_s29 = smov [#allocation6]  }
 0x654   : > { %1661 = vst.msk [vmem:[%s4833_s8 + $0x32] sm:$0x1] %vm1415_vm12, %v1641_v52  ;;  %s3679_s14 = sshll.u32 %s3794_s29, 4  ;;  %s3680_s14 = int_to_ptr.vmem [resolvable:$false] %s3679_s14 }
 0x655   : > { %3341 = vrot.lane.b32.xlu1 %v3324_v45, %s5626_s16  ;;  %v2175_v7 = vpop.permute.xlu0 %2174  ;;  %s3681_s20 = scalar_lea.vmem %s3680_s14, 4096  ;;  %p3682_p0 = scmp.lt.s32.totalorder %s5512_s13, %s3680_s14 }
 0x656   : > { %p3683_p1 = scmp.lt.s32.totalorder %s3681_s20, %s3675_s15 }
 0x657   : > { %v1645_v20 = vpop.permute.xlu1 %1644  ;;  %3343 = vrot.lane.b32.xlu0 %v3328_v34, %s5626_s16 }
 0x658   : > { %1663 = vst.msk [vmem:[%s4833_s8 + $0x52] sm:$0x1] %vm1415_vm12, %v1645_v20  ;;  %p3684_p2 = por %p3683_p1, %p3682_p0 }
 0x659   : > { %v2179_v55 = vpop.permute.xlu0 %2178 }
 0x65a   : > { %p3685_p3 = pnand %p3684_p2, %p3678_p13 }
 0x65b   : > { %v1768_v5 = vpop.permute.xlu1 %1767 }
 0x65c   : > { %1785 = vst.msk [vmem:[%s4833_s8 + $0x63] sm:$0x1] %vm1415_vm12, %v1768_v5 }
 0x65d   : > { %v2307_v57 = vpop.permute.xlu0 %2306 }
 0x65e   : > { %2327 = vst.msk [vmem:[%s4833_s8 + $0x37] sm:$0x1] %vm1415_vm12, %v2307_v57 }
 0x65f   : > { %v1883_v42 = vpop.permute.xlu1 %1882 }
 0x660   : > { %1903 = vst.msk [vmem:[%s4833_s8 + $0x34] sm:$0x1] %vm1415_vm12, %v1883_v42 }
 0x661   : > { %v2311_v37 = vpop.permute.xlu0 %2310 }
 0x662   : > { %2329 = vst.msk [vmem:[%s4833_s8 + $0x57] sm:$0x1] %vm1415_vm12, %v2311_v37 }
 0x663   : > { %v1887_v41 = vpop.permute.xlu1 %1886 }
 0x664   : > { %1905 = vst.msk [vmem:[%s4833_s8 + $0x54] sm:$0x1] %vm1415_vm12, %v1887_v41 }
 0x665   : > { %v2434_v58 = vpop.permute.xlu0 %2433 }
 0x666   : > { %2451 = vst.msk [vmem:[%s4833_s8 + $0x68] sm:$0x1] %vm1415_vm12, %v2434_v58 }
 0x667   : > { %v2010_v43 = vpop.permute.xlu1 %2009 }
 0x668   : > { %2027 = vst.msk [vmem:[%s4833_s8 + $0x65] sm:$0x1] %vm1415_vm12, %v2010_v43 }
 0x669   : > { %v2549_v29 = vpop.permute.xlu0 %2548 }
 0x66a   : > { %2569 = vst.msk [vmem:[%s4833_s8 + $0x39] sm:$0x1] %vm1415_vm12, %v2549_v29 }
 0x66b   : > { %v2161_v10 = vpop.permute.xlu1 %2160 }
 0x66c   : > { %v2188_v30 = vsel %vm2186_vm14, %v2159_v46, %v2161_v10 }
 0x66d   : > { %2204 = vst.msk [vmem:[%s4833_s8 + $0x16] sm:$0x1] %vm1415_vm12, %v2188_v30  ;;  %v2553_v40 = vpop.permute.xlu0 %2552 }
 0x66e   : > { %2571 = vst.msk [vmem:[%s4833_s8 + $0x59] sm:$0x1] %vm1415_vm12, %v2553_v40 }
 0x66f   : > { %v2165_v53 = vpop.permute.xlu1 %2164 }
 0x670   : > { %v2189_v23 = vsel %vm2186_vm14, %v2163_v1, %v2165_v53 }
 0x671   : > { %2205 = vst.msk [vmem:[%s4833_s8 + $0x26] sm:$0x1] %vm1415_vm12, %v2189_v23  ;;  %v2670_v27 = vpop.permute.xlu0 %2669 }
 0x672   : > { %2690 = vst.msk [vmem:[%s4833_s8 + $0x3a] sm:$0x1] %vm1415_vm12, %v2670_v27 }
 0x673   : > { %v2177_v3 = vpop.permute.xlu1 %2176 }
 0x674   : > { %v2192_v48 = vsel %vm2186_vm14, %v2175_v7, %v2177_v3 }
 0x675   : > { %2208 = vst.msk [vmem:[%s4833_s8 + $0x56] sm:$0x1] %vm1415_vm12, %v2192_v48  ;;  %v2674_v13 = vpop.permute.xlu0 %2673 }
 0x676   : > { %2692 = vst.msk [vmem:[%s4833_s8 + $0x5a] sm:$0x1] %vm1415_vm12, %v2674_v13 }
 0x677   : > { %v2181_v25 = vpop.permute.xlu1 %2180 }
 0x678   : > { %v2193_v15 = vsel %vm2186_vm14, %v2179_v55, %v2181_v25 }
 0x679   : > { %2209 = vst.msk [vmem:[%s4833_s8 + $0x66] sm:$0x1] %vm1415_vm12, %v2193_v15  ;;  %v2791_v60 = vpop.permute.xlu0 %2790 }
 0x67a   : > { %2811 = vst.msk [vmem:[%s4833_s8 + $0x3b] sm:$0x1] %vm1415_vm12, %v2791_v60 }
 0x67b   : > { %v2313_v32 = vpop.permute.xlu1 %2312 }
 0x67c   : > { %2330 = vst.msk [vmem:[%s4833_s8 + $0x67] sm:$0x1] %vm1415_vm12, %v2313_v32 }
 0x67d   : > { %v2795_v18 = vpop.permute.xlu0 %2794 }
 0x67e   : > { %2813 = vst.msk [vmem:[%s4833_s8 + $0x5b] sm:$0x1] %vm1415_vm12, %v2795_v18 }
 0x67f   : > { %v2428_v31 = vpop.permute.xlu1 %2427 }
 0x680   : > { %2448 = vst.msk [vmem:[%s4833_s8 + $0x38] sm:$0x1] %vm1415_vm12, %v2428_v31 }
 0x681   : > { %v2912_v19 = vpop.permute.xlu0 %2911 }
 0x682   : > { %2932 = vst.msk [vmem:[%s4833_s8 + $0x3c] sm:$0x1] %vm1415_vm12, %v2912_v19 }
 0x683   : > { %v2432_v47 = vpop.permute.xlu1 %2431 }
 0x684   : > { %2450 = vst.msk [vmem:[%s4833_s8 + $0x58] sm:$0x1] %vm1415_vm12, %v2432_v47 }
 0x685   : > { %v2916_v26 = vpop.permute.xlu0 %2915 }
 0x686   : > { %2934 = vst.msk [vmem:[%s4833_s8 + $0x5c] sm:$0x1] %vm1415_vm12, %v2916_v26 }
 0x687   : > { %v2555_v62 = vpop.permute.xlu1 %2554 }
 0x688   : > { %2572 = vst.msk [vmem:[%s4833_s8 + $0x69] sm:$0x1] %vm1415_vm12, %v2555_v62 }
 0x689   : > { %v3069_v63 = vpop.permute.xlu0 %3068 }
 0x68b   : > { %v2676_v49 = vpop.permute.xlu1 %2675 }
 0x68c   : > { %2693 = vst.msk [vmem:[%s4833_s8 + $0x6a] sm:$0x1] %vm1415_vm12, %v2676_v49 }
 0x68d   : > { %v3073_v0 = vpop.permute.xlu0 %3072 }
 0x68f   : > { %v2797_v54 = vpop.permute.xlu1 %2796 }
 0x690   : > { %2814 = vst.msk [vmem:[%s4833_s8 + $0x6b] sm:$0x1] %vm1415_vm12, %v2797_v54 }
 0x691   : > { %v3085_v21 = vpop.permute.xlu0 %3084 }
 0x693   : > { %v2918_v39 = vpop.permute.xlu1 %2917 }
 0x694   : > { %2935 = vst.msk [vmem:[%s4833_s8 + $0x6c] sm:$0x1] %vm1415_vm12, %v2918_v39 }
 0x695   : > { %v3089_v2 = vpop.permute.xlu0 %3088 }
 0x697   : > { %v3067_v8 = vpop.permute.xlu1 %3066 }
 0x698   : > { %v3096_v4 = vsel %vm3094_vm15, %v3067_v8, %v3069_v63 }
 0x699   : > { %3112 = vst.msk [vmem:[%s4833_s8 + $0x1d] sm:$0x1] %vm1415_vm12, %v3096_v4  ;;  %v1528_v50 = vpop.permute.xlu0 %1527 }
 0x69a   : > { %1544 = vst.msk [vmem:[%s4833_s8 + $0x71] sm:$0x1] %vm1415_vm12, %v1528_v50 }
 0x69b   : > { %v3071_v44 = vpop.permute.xlu1 %3070 }
 0x69c   : > { %v3097_v38 = vsel %vm3094_vm15, %v3071_v44, %v3073_v0 }
 0x69d   : > { %3113 = vst.msk [vmem:[%s4833_s8 + $0x2d] sm:$0x1] %vm1415_vm12, %v3097_v38  ;;  %v1770_v33 = vpop.permute.xlu0 %1769 }
 0x69e   : > { %1786 = vst.msk [vmem:[%s4833_s8 + $0x73] sm:$0x1] %vm1415_vm12, %v1770_v33 }
 0x69f   : > { %v3083_v12 = vpop.permute.xlu1 %3082 }
 0x6a0   : > { %v3100_v6 = vsel %vm3094_vm15, %v3083_v12, %v3085_v21 }
 0x6a1   : > { %3116 = vst.msk [vmem:[%s4833_s8 + $0x5d] sm:$0x1] %vm1415_vm12, %v3100_v6  ;;  %v2012_v16 = vpop.permute.xlu0 %2011 }
 0x6a2   : > { %2028 = vst.msk [vmem:[%s4833_s8 + $0x75] sm:$0x1] %vm1415_vm12, %v2012_v16 }
 0x6a3   : > { %v3087_v28 = vpop.permute.xlu1 %3086 }
 0x6a4   : > { %v3101_v56 = vsel %vm3094_vm15, %v3087_v28, %v3089_v2 }
 0x6a5   : > { %3117 = vst.msk [vmem:[%s4833_s8 + $0x6d] sm:$0x1] %vm1415_vm12, %v3101_v56  ;;  %v2167_v36 = vpop.permute.xlu0 %2166 }
 0x6a7   : > { %v1406_v11 = vpop.permute.xlu1 %1405 }
 0x6a8   : > { %1423 = vst.msk [vmem:[%s4833_s8 + $0x70] sm:$0x1] %vm1415_vm12, %v1406_v11 }
 0x6a9   : > { %v2183_v9 = vpop.permute.xlu0 %2182 }
 0x6ab   : > { %v1649_v51 = vpop.permute.xlu1 %1648 }
 0x6ac   : > { %1665 = vst.msk [vmem:[%s4833_s8 + $0x72] sm:$0x1] %vm1415_vm12, %v1649_v51 }
 0x6ad   : > { %v2315_v17 = vpop.permute.xlu0 %2314 }
 0x6ae   : > { %2331 = vst.msk [vmem:[%s4833_s8 + $0x77] sm:$0x1] %vm1415_vm12, %v2315_v17 }
 0x6af   : > { %v1891_v46 = vpop.permute.xlu1 %1890 }
 0x6b0   : > { %1907 = vst.msk [vmem:[%s4833_s8 + $0x74] sm:$0x1] %vm1415_vm12, %v1891_v46 }
 0x6b1   : > { %v2557_v35 = vpop.permute.xlu0 %2556 }
 0x6b2   : > { %2573 = vst.msk [vmem:[%s4833_s8 + $0x79] sm:$0x1] %vm1415_vm12, %v2557_v35 }
 0x6b3   : > { %v2169_v24 = vpop.permute.xlu1 %2168 }
 0x6b4   : > { %v2190_v61 = vsel %vm2186_vm14, %v2167_v36, %v2169_v24 }
 0x6b5   : > { %2206 = vst.msk [vmem:[%s4833_s8 + $0x36] sm:$0x1] %vm1415_vm12, %v2190_v61  ;;  %v2678_v59 = vpop.permute.xlu0 %2677 }
 0x6b6   : > { %2694 = vst.msk [vmem:[%s4833_s8 + $0x7a] sm:$0x1] %vm1415_vm12, %v2678_v59 }
 0x6b7   : > { %v2185_v1 = vpop.permute.xlu1 %2184 }
 0x6b8   : > { %v2194_v22 = vsel %vm2186_vm14, %v2183_v9, %v2185_v1 }
 0x6b9   : > { %2210 = vst.msk [vmem:[%s4833_s8 + $0x76] sm:$0x1] %vm1415_vm12, %v2194_v22  ;;  %v2799_v52 = vpop.permute.xlu0 %2798 }
 0x6ba   : > { %2815 = vst.msk [vmem:[%s4833_s8 + $0x7b] sm:$0x1] %vm1415_vm12, %v2799_v52 }
 0x6bb   : > { %v2436_v14 = vpop.permute.xlu1 %2435 }
 0x6bc   : > { %2452 = vst.msk [vmem:[%s4833_s8 + $0x78] sm:$0x1] %vm1415_vm12, %v2436_v14 }
 0x6bd   : > { %v2920_v45 = vpop.permute.xlu0 %2919 }
 0x6be   : > { %2936 = vst.msk [vmem:[%s4833_s8 + $0x7c] sm:$0x1] %vm1415_vm12, %v2920_v45 }
 0x6bf   : > { %v3075_v7 = vpop.permute.xlu1 %3074 }
 0x6c1   : > { %v3077_v34 = vpop.permute.xlu0 %3076 }
 0x6c2   : > { %v3098_v20 = vsel %vm3094_vm15, %v3075_v7, %v3077_v34 }
 0x6c3   : > { %3114 = vst.msk [vmem:[%s4833_s8 + $0x3d] sm:$0x1] %vm1415_vm12, %v3098_v20  ;;  %v3091_v55 = vpop.permute.xlu1 %3090 }
 0x6c5   : > { %v3093_v5 = vpop.permute.xlu0 %3092 }
 0x6c6   : > { %v3102_v57 = vsel %vm3094_vm15, %v3091_v55, %v3093_v5 }
 0x6c7   : > { %3118 = vst.msk [vmem:[%s4833_s8 + $0x7d] sm:$0x1] %vm1415_vm12, %v3102_v57  ;;  %v3342_v42 = vpop.permute.xlu1 %3341 }
 0x6c8   : > { %3359 = vst.msk [vmem:[%s4833_s8 + $0x6f] sm:$0x1] %vm1415_vm12, %v3342_v42 }
 0x6c9   : > { %v3344_v37 = vpop.permute.xlu0 %3343 }
 0x6ca   : > { %3360 = vst.msk [vmem:[%s4833_s8 + $0x7f] sm:$0x1] %vm1415_vm12, %v3344_v37 }
 0x6cb   : > { %3688 = shalt.err (!%p3685_p3)
}
 0x6cc   : > { %s3689_s8 = scalar_lea.hbm %s5510_s18, 2048  ;;  %s3693_s16 = scalar_lea.hbm %s5568_s7, 4096 }
 0x6cd   : > { %p3690_p4 = scmp.ne.s32.totalorder %s5510_s18, %s3689_s8  ;;  %p3694_p9 = scmp.lt.u32.totalorder %s5510_s18, %s5568_s7 }
 0x6ce   : > { %p3695_p10 = scmp.lt.u32.totalorder %s3693_s16, %s3689_s8  ;;  %p3697_p12 = scmp.lt.u32.totalorder %s3689_s8, %s5510_s18 }
 0x6cf   : > { %p3691_p7 = pnand %p3690_p4, %p3875_p5 }
 0x6d0   : > { %p3696_p11 = por %p3695_p10, %p3694_p9 }
 0x6d1   : > { %p3692_p8 = pneg %p3691_p7 }
 0x6d2   : > { %p3698_p13 = por %p3697_p12, %p3696_p11 }
 0x6d4   : > { %p3699_p0 = pnand %p3698_p13, %p3692_p8 }
 0x6d6   : > { %3702 = shalt.err (!%p3699_p0)
}
 0x6d7   : > { %s3795_s17 = smov 128   ;;  %s3796_s28 = smov 8  }
 0x6d8   : > { %3576 = dma.vmem_to_hbm [thread:$0]  (%p3875_p5), %s5512_s13, 2048, %s5510_s18, %s5520_s19, %s3795_s17, %s3795_s17, %s3796_s28  }
 0x6d9 PF: > { %p3582_p1 = scmp.ge.s32.totalorder %s3737_s27, 2  ;;  %s3390_s15 = sand.u32 1, %s3725_s24  }
 0x6da   : > { %s3391_s29 = scalar_lea.sflag [#allocation7], %s3390_s15 }
 0x6db   : > { %p3579_p2 = pnand %p3582_p1, %p3879_p6 }
 0x6dd   : > { %3720 = dma.done.wait (!%p3579_p2), %s3391_s29, 2048  }
 0x6de   : > { %3722 = vsyncadd (!%p3579_p2), %s3391_s29, 4294965248  ;;  %p17_p3 = scmp.ge.s32.totalorder %s3862_s30, 4   ;;  %s5628_s24 = smov %s3729_s25 }
 0x6df   : > { %s5629_s25 = smov %s3733_s26  ;;  %s5630_s26 = smov %s3873_s10 }
 0x6e0   : > { %s5631_s27 = smov %s3862_s30  ;;  %19 = sbr.rel (!%p17_p3) target bundleno = 3 (0x3), region = 83 }
 0x6e7   :  { %3396 = vsyncpa [#allocation7], 1 }
 0x6e8   :  { %3398 = vsyncpa [#allocation7 + $0x1], 1 }

</bundles_post_ra>
